<compile_context>
chip_gen: v5e
topology: v5e:2x2
jax: 0.10.0
libtpu: 0.0.40
codegen_flags: <defaults>
</compile_context>

<pallas_src>
import numpy as np
import jax
import jax.numpy as jnp
from jax.experimental import pallas as pl
from jax.experimental.pallas import tpu as pltpu

# ---------------- model hyper-parameters (small, synthetic) ----------------
BATCH = 2
C_IN, HW = 4, 16          # input x: (2, 4, 16, 16) NCHW (PyTorch-style)
C1, C2 = 8, 16            # conv channels
FEAT_LEN = 64             # feature_length (input to each Tree)
N_TREE = 4
DEPTH = 4
N_LEAF = 2 ** DEPTH       # 16 decision slots / leaves per tree (heap slot 0 unused)
N_CLASS = 8               # vector_length of each leaf distribution

S1 = HW // 2              # 8  : spatial size after pool1 (conv2 input/output)
S2 = HW // 4              # 4  : spatial size after pool2
NPIX1 = BATCH * S1 * S1   # 128: rows per parity-coset block of conv1 output
NPIX2 = BATCH * S2 * S2   # 32 : rows per parity-coset block of conv2 output
NTL = N_TREE * N_LEAF     # 64 : lane-packed (tree, leaf) axis


# ======================= the single fused Pallas kernel ======================
def _ndf_fused_kernel(x1_ref, w1_ref, b1_ref, g2_ref, w2_ref, b2_ref,
                      wfc_ref, bfc_ref, mask2_ref, route_ref, pi_ref,
                      pred_ref, mu_ref, p2_ref):
    f32 = jnp.float32

    # --- conv1 (3x3, pad 1) + bias + ReLU: one MXU matmul over coset-ordered
    #     im2col patches the wrapper staged into VMEM.
    h1 = jnp.dot(x1_ref[...], w1_ref[...], preferred_element_type=f32)     # (512, C1)
    h1 = jnp.maximum(h1 + b1_ref[...], 0.0)

    # --- maxpool 2x2: rows are ordered (parity-coset, b, Y, X), so the pool is
    #     an elementwise max of the four contiguous 128-row coset blocks.
    p1 = jnp.maximum(jnp.maximum(h1[0 * NPIX1:1 * NPIX1], h1[1 * NPIX1:2 * NPIX1]),
                     jnp.maximum(h1[2 * NPIX1:3 * NPIX1], h1[3 * NPIX1:4 * NPIX1]))

    # --- conv2 (3x3, pad 1) as 9 shifted taps; pad+shift folded into constant
    #     0/1 gather matmuls so the activations never leave VMEM.
    acc2 = jnp.zeros((4 * NPIX2, C2), f32)
    for t in range(9):
        tap = jnp.dot(g2_ref[t], p1, preferred_element_type=f32)           # (128, C1)
        acc2 = acc2 + jnp.dot(tap, w2_ref[t], preferred_element_type=f32)  # (128, C2)
    h2 = jnp.maximum(acc2 + b2_ref[...], 0.0)

    # --- maxpool 2x2 again via coset-block max (rows ordered (coset, s, b)).
    p2 = jnp.maximum(jnp.maximum(h2[0 * NPIX2:1 * NPIX2], h2[1 * NPIX2:2 * NPIX2]),
                     jnp.maximum(h2[2 * NPIX2:3 * NPIX2], h2[3 * NPIX2:4 * NPIX2]))
    p2_ref[...] = p2                                                        # (32, C2)

    # --- FC: feats = flatten(pool2) @ Wfc + b, done as 16 accumulating matmuls
    #     over spatial positions (avoids a lane-expanding in-kernel reshape).
    feats = jnp.zeros((BATCH, FEAT_LEN), f32)
    for s in range(S2 * S2):
        blk = p2_ref[pl.ds(s * BATCH, BATCH), :]                            # (B, C2)
        feats = feats + jnp.dot(blk, wfc_ref[s], preferred_element_type=f32)
    feats = feats + bfc_ref[...]                                            # (B, 64)

    # --- forest: all 4 trees lane-packed to 64 wide.
    #     decisions: one (B,64)@(64,128) matmul against [mask | mask];
    #     sigmoid + its complement built with an iota select (no concat needed).
    zz = jnp.dot(feats, mask2_ref[...], preferred_element_type=f32)         # (B, 128)
    sig = pl.reciprocal(1.0 + jnp.exp(-zz), approx=True)                    # sigmoid (EUP)
    lane = jax.lax.broadcasted_iota(jnp.int32, zz.shape, 1)
    ddc = jnp.where(lane < NTL, sig, 1.0 - sig)                             # [d | 1-d]

    #     soft routing: ONE stacked block-diagonal [RL; RR] matmul per layer.
    mu = jnp.ones((BATCH, NTL), f32)
    for layer in range(DEPTH):
        mu = mu * jnp.dot(ddc, route_ref[layer], preferred_element_type=f32)
    mu_ref[...] = mu                                  # == Tree.forward routing probabilities

    # --- leaf class distributions (softmax over pi, computed once) + mixing +
    #     average over trees, as a single (B,64)@(64,n_class) matmul.
    pi = pi_ref[...]                                                        # (64, n_class)
    e = jnp.exp(pi - jnp.max(pi, axis=-1, keepdims=True))
    lp = e * pl.reciprocal(jnp.sum(e, axis=-1, keepdims=True), approx=True)
    pred_ref[...] = jnp.dot(mu, lp, preferred_element_type=f32) * (1.0 / N_TREE)


# ============================ wrapper / layout glue ==========================
def _conv1_coset_im2col(x_nhwc):
    """(B,16,16,C) NHWC -> (512, 9*C) conv1 patches, rows ordered
    (parity-coset, b, Y, X) so the in-kernel 2x2 maxpool is a block max."""
    xp = jnp.pad(x_nhwc, ((0, 0), (1, 1), (1, 1), (0, 0)))
    taps = [xp[:, di:di + HW, dj:dj + HW, :] for di in range(3) for dj in range(3)]
    patches = jnp.concatenate(taps, axis=-1)                          # (B,16,16,36)
    pr = patches.reshape(BATCH, S1, 2, S1, 2, 9 * C_IN)               # (b, Y, py, X, px, col)
    pr = jnp.transpose(pr, (2, 4, 0, 1, 3, 5))                        # (py, px, b, Y, X, col)
    return pr.reshape(4 * NPIX1, 9 * C_IN)                            # (512, 36)


def ndf_forward(x_nchw, kp):
    """Forward pass: feature CNN + differentiable forest -> (pred, mu_all, reg_loss)."""
    x = jnp.transpose(x_nchw, (0, 2, 3, 1)).astype(jnp.float32)       # NCHW -> NHWC once
    x1 = _conv1_coset_im2col(x)
    pred, mu_all = pl.pallas_call(
        _ndf_fused_kernel,
        out_shape=(jax.ShapeDtypeStruct((BATCH, N_CLASS), jnp.float32),
                   jax.ShapeDtypeStruct((BATCH, NTL), jnp.float32)),
        scratch_shapes=[pltpu.VMEM((NPIX2, C2), jnp.float32)],
    )(x1, kp["w1r"], kp["b1r"], kp["g2"], kp["w2r"], kp["b2r"],
      kp["wfc3"], kp["bfcr"], kp["mask2"], kp["route"], kp["pi_st"])
    reg_loss = jnp.float32(0.0)   # vgg-style feature layer branch => reg_loss = 0
    # TODO(synk): save_flag / mu_cache path (per-tree mu caching for the EM leaf
    # updates in Tree.update_label_distribution*) is not implemented; forward only.
    return pred, mu_all, reg_loss


# ====================== constant (parameter-free) tensors ====================
def build_routing_tensor():
    """[RL; RR] stacked routing operator, block-diagonal over trees: (DEPTH,128,64)."""
    r = np.zeros((DEPTH, 2 * NTL, NTL), np.float32)
    for layer in range(DEPTH):
        for leaf in range(N_LEAF):
            node = (1 << layer) + (leaf >> (DEPTH - layer))          # heap index, slot 0 unused
            go_right = (leaf >> (DEPTH - layer - 1)) & 1
            for t in range(N_TREE):
                if go_right:
                    r[layer, NTL + t * N_LEAF + node, t * N_LEAF + leaf] = 1.0
                else:
                    r[layer, t * N_LEAF + node, t * N_LEAF + leaf] = 1.0
    return r


def build_conv2_gather():
    """Per-tap 0/1 gather matrices folding pad+shift for conv2, with output rows
    ordered (pool2-coset, s, b) so pool2 is a block max: (9, 128, 128)."""
    g = np.zeros((9, 4 * NPIX2, NPIX1), np.float32)
    for di in range(3):
        for dj in range(3):
            t = di * 3 + dj
            for b in range(BATCH):
                for y in range(S1):
                    for x in range(S1):
                        qy, qx = y % 2, x % 2
                        Y, X = y // 2, x // 2
                        row = (qy * 2 + qx) * NPIX2 + (Y * S2 + X) * BATCH + b
                        ys, xs = y + di - 1, x + dj - 1
                        if 0 <= ys < S1 and 0 <= xs < S1:
                            g[t, row, b * S1 * S1 + ys * S1 + xs] = 1.0
    return g


def pack_params(p):
    """One-time repacking of parameters into kernel-ready layouts."""
    maskstack = jnp.transpose(p["masks"], (1, 0, 2)).reshape(FEAT_LEN, NTL)   # cols = t*16+leaf
    mask2 = jnp.concatenate([maskstack, maskstack], axis=1)                    # (64, 128)
    return dict(
        w1r=p["w1"].reshape(9 * C_IN, C1),
        b1r=p["b1"].reshape(1, C1),
        w2r=p["w2"].reshape(9, C1, C2),
        b2r=p["b2"].reshape(1, C2),
        wfc3=p["wfc"].reshape(S2 * S2, C2, FEAT_LEN),
        bfcr=p["bfc"].reshape(1, FEAT_LEN),
        mask2=mask2,
        route=jnp.asarray(build_routing_tensor()),
        g2=jnp.asarray(build_conv2_gather()),
        pi_st=p["pi"].reshape(NTL, N_CLASS),
    )


# =============== pure-JAX reference (PyTorch-loop semantics) ================
def reference_forward(x_nchw, p):
    x = jnp.transpose(x_nchw, (0, 2, 3, 1)).astype(jnp.float32)

    def conv_relu(h, w, b):
        y = jax.lax.conv_general_dilated(h, w, (1, 1), "SAME",
                                         dimension_numbers=("NHWC", "HWIO", "NHWC"))
        return jnp.maximum(y + b, 0.0)

    def pool(h):
        b, hh, ww, c = h.shape
        return h.reshape(b, hh // 2, 2, ww // 2, 2, c).max(axis=(2, 4))

    h = pool(conv_relu(x, p["w1"], p["b1"]))
    h = pool(conv_relu(h, p["w2"], p["b2"]))
    feats = h.reshape(h.shape[0], -1) @ p["wfc"] + p["bfc"]

    bsz = feats.shape[0]
    mus, preds = [], []
    for t in range(N_TREE):
        d = jax.nn.sigmoid(feats @ p["masks"][t])                 # (B, n_leaf)
        dec = jnp.stack([d, 1.0 - d], axis=2)                     # (B, n_leaf, 2)
        mu = jnp.ones((bsz, 1, 1), jnp.float32)
        begin, end = 1, 2
        for layer in range(DEPTH):
            mu = jnp.repeat(mu.reshape(bsz, -1, 1), 2, axis=2)
            mu = mu * dec[:, begin:end, :]
            begin = end
            end = begin + 2 ** (layer + 1)
            mu = mu.reshape(bsz, -1, 1)
        mu = mu.reshape(bsz, -1)
        mus.append(mu)
        preds.append(mu @ jax.nn.softmax(p["pi"][t], axis=-1))
    pred = sum(preds) / N_TREE
    return pred, jnp.concatenate(mus, axis=1), jnp.float32(0.0)


# ============================ parameter setup ================================
def init_params(key):
    ks = jax.random.split(key, 8)
    w1 = 0.1 * jax.random.normal(ks[0], (3, 3, C_IN, C1), jnp.float32)
    b1 = 0.01 * jax.random.normal(ks[1], (C1,), jnp.float32)
    w2 = 0.1 * jax.random.normal(ks[2], (3, 3, C1, C2), jnp.float32)
    b2 = 0.01 * jax.random.normal(ks[3], (C2,), jnp.float32)
    flat = S2 * S2 * C2
    wfc = 0.2 * jax.random.normal(ks[4], (flat, FEAT_LEN), jnp.float32)
    bfc = 0.01 * jax.random.normal(ks[5], (FEAT_LEN,), jnp.float32)

    # per-tree one-hot feature masks (n_leaf features chosen without replacement)
    mask_keys = jax.random.split(ks[6], N_TREE)
    masks = []
    for t in range(N_TREE):
        idx = jax.random.permutation(mask_keys[t], FEAT_LEN)[:N_LEAF]
        m = jnp.zeros((FEAT_LEN, N_LEAF), jnp.float32).at[idx, jnp.arange(N_LEAF)].set(1.0)
        masks.append(m)
    masks = jnp.stack(masks)

    pi = 0.5 * jax.random.normal(ks[7], (N_TREE, N_LEAF, N_CLASS), jnp.float32)
    return dict(w1=w1, b1=b1, w2=w2, b2=b2, wfc=wfc, bfc=bfc, masks=masks, pi=pi)


# ================================== main =====================================
if __name__ == "__main__":
    key = jax.random.PRNGKey(0)
    k_param, k_x = jax.random.split(key)
    params = init_params(k_param)
    kparams = pack_params(params)
    x = jax.random.normal(k_x, (BATCH, C_IN, HW, HW), jnp.float32)   # NCHW like PyTorch

    fwd = jax.jit(ndf_forward)
    pred, mu_all, reg_loss = fwd(x, kparams)
    pred = jax.block_until_ready(pred)
    mu_all = jax.block_until_ready(mu_all)

    pred_ref, mu_ref, _ = reference_forward(x, params)
    pred_ref = jax.block_until_ready(pred_ref)

    assert pred.shape == (BATCH, N_CLASS)
    assert mu_all.shape == (BATCH, N_TREE * N_LEAF)
    assert np.allclose(np.asarray(pred), np.asarray(pred_ref), atol=3e-2, rtol=3e-2)
    assert np.allclose(np.asarray(mu_all), np.asarray(mu_ref), atol=3e-2, rtol=3e-2)
    assert float(reg_loss) == 0.0

    print("KERNEL_OK")
</pallas_src>

<mosaic_0001>
module attributes {stable_mosaic.version = 11 : i64} {
  func.func @_ndf_fused_kernel(%arg0: memref<512x36xf32, #tpu.memory_space<vmem>>, %arg1: memref<36x8xf32, #tpu.memory_space<vmem>>, %arg2: memref<1x8xf32, #tpu.memory_space<vmem>>, %arg3: memref<9x128x128xf32, #tpu.memory_space<vmem>>, %arg4: memref<9x8x16xf32, #tpu.memory_space<vmem>>, %arg5: memref<1x16xf32, #tpu.memory_space<vmem>>, %arg6: memref<16x16x64xf32, #tpu.memory_space<vmem>>, %arg7: memref<1x64xf32, #tpu.memory_space<vmem>>, %arg8: memref<64x128xf32, #tpu.memory_space<vmem>>, %arg9: memref<4x128x64xf32, #tpu.memory_space<vmem>>, %arg10: memref<64x8xf32, #tpu.memory_space<vmem>>, %arg11: memref<2x8xf32, #tpu.memory_space<vmem>>, %arg12: memref<2x64xf32, #tpu.memory_space<vmem>>, %arg13: memref<32x16xf32, #tpu.memory_space<vmem>>) attributes {dimension_semantics = [], scalar_prefetch = 0 : i64, scratch_operands = 1 : i64, tpu.core_type = #tpu.core_type<tc>} {
    %c0 = arith.constant 0 : index
    %c0_0 = arith.constant 0 : index
    %0 = vector.load %arg0[%c0, %c0_0] : memref<512x36xf32, #tpu.memory_space<vmem>>, vector<512x36xf32>
    %c0_1 = arith.constant 0 : index
    %c0_2 = arith.constant 0 : index
    %1 = vector.load %arg1[%c0_1, %c0_2] : memref<36x8xf32, #tpu.memory_space<vmem>>, vector<36x8xf32>
    %cst = arith.constant dense<0.000000e+00> : vector<512x8xf32>
    %2 = tpu.matmul %0, %1, %cst {dimension_numbers = #tpu.dot_dimension_numbers<[1], [0], [0], [1], [0, 0, 1, 1], [], []>} : vector<512x36xf32>, vector<36x8xf32>, vector<512x8xf32> -> vector<512x8xf32>
    %c0_3 = arith.constant 0 : index
    %c0_4 = arith.constant 0 : index
    %3 = vector.load %arg2[%c0_3, %c0_4] : memref<1x8xf32, #tpu.memory_space<vmem>>, vector<1x8xf32>
    %4 = vector.broadcast %3 : vector<1x8xf32> to vector<512x8xf32>
    %5 = arith.addf %2, %4 : vector<512x8xf32>
    %cst_5 = arith.constant 0.000000e+00 : f32
    %6 = vector.broadcast %cst_5 : f32 to vector<512x8xf32>
    %7 = arith.maximumf %5, %6 : vector<512x8xf32>
    %8 = vector.extract_strided_slice %7 {offsets = [0, 0], sizes = [128, 8], strides = [1, 1]} : vector<512x8xf32> to vector<128x8xf32>
    %9 = vector.extract_strided_slice %7 {offsets = [128, 0], sizes = [128, 8], strides = [1, 1]} : vector<512x8xf32> to vector<128x8xf32>
    %10 = arith.maximumf %8, %9 : vector<128x8xf32>
    %11 = vector.extract_strided_slice %7 {offsets = [256, 0], sizes = [128, 8], strides = [1, 1]} : vector<512x8xf32> to vector<128x8xf32>
    %12 = vector.extract_strided_slice %7 {offsets = [384, 0], sizes = [128, 8], strides = [1, 1]} : vector<512x8xf32> to vector<128x8xf32>
    %13 = arith.maximumf %11, %12 : vector<128x8xf32>
    %14 = arith.maximumf %10, %13 : vector<128x8xf32>
    %cst_6 = arith.constant 0.000000e+00 : f32
    %15 = vector.broadcast %cst_6 : f32 to vector<128x16xf32>
    %c0_7 = arith.constant 0 : index
    %c0_8 = arith.constant 0 : index
    %c0_9 = arith.constant 0 : index
    %16 = vector.load %arg3[%c0_7, %c0_8, %c0_9] : memref<9x128x128xf32, #tpu.memory_space<vmem>>, vector<1x128x128xf32>
    %17 = vector.shape_cast %16 : vector<1x128x128xf32> to vector<128x128xf32>
    %cst_10 = arith.constant dense<0.000000e+00> : vector<128x8xf32>
    %18 = tpu.matmul %17, %14, %cst_10 {dimension_numbers = #tpu.dot_dimension_numbers<[1], [0], [0], [1], [0, 0, 1, 1], [], []>} : vector<128x128xf32>, vector<128x8xf32>, vector<128x8xf32> -> vector<128x8xf32>
    %c0_11 = arith.constant 0 : index
    %c0_12 = arith.constant 0 : index
    %c0_13 = arith.constant 0 : index
    %19 = vector.load %arg4[%c0_11, %c0_12, %c0_13] : memref<9x8x16xf32, #tpu.memory_space<vmem>>, vector<1x8x16xf32>
    %20 = vector.shape_cast %19 : vector<1x8x16xf32> to vector<8x16xf32>
    %cst_14 = arith.constant dense<0.000000e+00> : vector<128x16xf32>
    %21 = tpu.matmul %18, %20, %cst_14 {dimension_numbers = #tpu.dot_dimension_numbers<[1], [0], [0], [1], [0, 0, 1, 1], [], []>} : vector<128x8xf32>, vector<8x16xf32>, vector<128x16xf32> -> vector<128x16xf32>
    %22 = arith.addf %15, %21 : vector<128x16xf32>
    %c1 = arith.constant 1 : index
    %c0_15 = arith.constant 0 : index
    %c0_16 = arith.constant 0 : index
    %23 = vector.load %arg3[%c1, %c0_15, %c0_16] : memref<9x128x128xf32, #tpu.memory_space<vmem>>, vector<1x128x128xf32>
    %24 = vector.shape_cast %23 : vector<1x128x128xf32> to vector<128x128xf32>
    %cst_17 = arith.constant dense<0.000000e+00> : vector<128x8xf32>
    %25 = tpu.matmul %24, %14, %cst_17 {dimension_numbers = #tpu.dot_dimension_numbers<[1], [0], [0], [1], [0, 0, 1, 1], [], []>} : vector<128x128xf32>, vector<128x8xf32>, vector<128x8xf32> -> vector<128x8xf32>
    %c1_18 = arith.constant 1 : index
    %c0_19 = arith.constant 0 : index
    %c0_20 = arith.constant 0 : index
    %26 = vector.load %arg4[%c1_18, %c0_19, %c0_20] : memref<9x8x16xf32, #tpu.memory_space<vmem>>, vector<1x8x16xf32>
    %27 = vector.shape_cast %26 : vector<1x8x16xf32> to vector<8x16xf32>
    %cst_21 = arith.constant dense<0.000000e+00> : vector<128x16xf32>
    %28 = tpu.matmul %25, %27, %cst_21 {dimension_numbers = #tpu.dot_dimension_numbers<[1], [0], [0], [1], [0, 0, 1, 1], [], []>} : vector<128x8xf32>, vector<8x16xf32>, vector<128x16xf32> -> vector<128x16xf32>
    %29 = arith.addf %22, %28 : vector<128x16xf32>
    %c2 = arith.constant 2 : index
    %c0_22 = arith.constant 0 : index
    %c0_23 = arith.constant 0 : index
    %30 = vector.load %arg3[%c2, %c0_22, %c0_23] : memref<9x128x128xf32, #tpu.memory_space<vmem>>, vector<1x128x128xf32>
    %31 = vector.shape_cast %30 : vector<1x128x128xf32> to vector<128x128xf32>
    %cst_24 = arith.constant dense<0.000000e+00> : vector<128x8xf32>
    %32 = tpu.matmul %31, %14, %cst_24 {dimension_numbers = #tpu.dot_dimension_numbers<[1], [0], [0], [1], [0, 0, 1, 1], [], []>} : vector<128x128xf32>, vector<128x8xf32>, vector<128x8xf32> -> vector<128x8xf32>
    %c2_25 = arith.constant 2 : index
    %c0_26 = arith.constant 0 : index
    %c0_27 = arith.constant 0 : index
    %33 = vector.load %arg4[%c2_25, %c0_26, %c0_27] : memref<9x8x16xf32, #tpu.memory_space<vmem>>, vector<1x8x16xf32>
    %34 = vector.shape_cast %33 : vector<1x8x16xf32> to vector<8x16xf32>
    %cst_28 = arith.constant dense<0.000000e+00> : vector<128x16xf32>
    %35 = tpu.matmul %32, %34, %cst_28 {dimension_numbers = #tpu.dot_dimension_numbers<[1], [0], [0], [1], [0, 0, 1, 1], [], []>} : vector<128x8xf32>, vector<8x16xf32>, vector<128x16xf32> -> vector<128x16xf32>
    %36 = arith.addf %29, %35 : vector<128x16xf32>
    %c3 = arith.constant 3 : index
    %c0_29 = arith.constant 0 : index
    %c0_30 = arith.constant 0 : index
    %37 = vector.load %arg3[%c3, %c0_29, %c0_30] : memref<9x128x128xf32, #tpu.memory_space<vmem>>, vector<1x128x128xf32>
    %38 = vector.shape_cast %37 : vector<1x128x128xf32> to vector<128x128xf32>
    %cst_31 = arith.constant dense<0.000000e+00> : vector<128x8xf32>
    %39 = tpu.matmul %38, %14, %cst_31 {dimension_numbers = #tpu.dot_dimension_numbers<[1], [0], [0], [1], [0, 0, 1, 1], [], []>} : vector<128x128xf32>, vector<128x8xf32>, vector<128x8xf32> -> vector<128x8xf32>
    %c3_32 = arith.constant 3 : index
    %c0_33 = arith.constant 0 : index
    %c0_34 = arith.constant 0 : index
    %40 = vector.load %arg4[%c3_32, %c0_33, %c0_34] : memref<9x8x16xf32, #tpu.memory_space<vmem>>, vector<1x8x16xf32>
    %41 = vector.shape_cast %40 : vector<1x8x16xf32> to vector<8x16xf32>
    %cst_35 = arith.constant dense<0.000000e+00> : vector<128x16xf32>
    %42 = tpu.matmul %39, %41, %cst_35 {dimension_numbers = #tpu.dot_dimension_numbers<[1], [0], [0], [1], [0, 0, 1, 1], [], []>} : vector<128x8xf32>, vector<8x16xf32>, vector<128x16xf32> -> vector<128x16xf32>
    %43 = arith.addf %36, %42 : vector<128x16xf32>
    %c4 = arith.constant 4 : index
    %c0_36 = arith.constant 0 : index
    %c0_37 = arith.constant 0 : index
    %44 = vector.load %arg3[%c4, %c0_36, %c0_37] : memref<9x128x128xf32, #tpu.memory_space<vmem>>, vector<1x128x128xf32>
    %45 = vector.shape_cast %44 : vector<1x128x128xf32> to vector<128x128xf32>
    %cst_38 = arith.constant dense<0.000000e+00> : vector<128x8xf32>
    %46 = tpu.matmul %45, %14, %cst_38 {dimension_numbers = #tpu.dot_dimension_numbers<[1], [0], [0], [1], [0, 0, 1, 1], [], []>} : vector<128x128xf32>, vector<128x8xf32>, vector<128x8xf32> -> vector<128x8xf32>
    %c4_39 = arith.constant 4 : index
    %c0_40 = arith.constant 0 : index
    %c0_41 = arith.constant 0 : index
    %47 = vector.load %arg4[%c4_39, %c0_40, %c0_41] : memref<9x8x16xf32, #tpu.memory_space<vmem>>, vector<1x8x16xf32>
    %48 = vector.shape_cast %47 : vector<1x8x16xf32> to vector<8x16xf32>
    %cst_42 = arith.constant dense<0.000000e+00> : vector<128x16xf32>
    %49 = tpu.matmul %46, %48, %cst_42 {dimension_numbers = #tpu.dot_dimension_numbers<[1], [0], [0], [1], [0, 0, 1, 1], [], []>} : vector<128x8xf32>, vector<8x16xf32>, vector<128x16xf32> -> vector<128x16xf32>
    %50 = arith.addf %43, %49 : vector<128x16xf32>
    %c5 = arith.constant 5 : index
    %c0_43 = arith.constant 0 : index
    %c0_44 = arith.constant 0 : index
    %51 = vector.load %arg3[%c5, %c0_43, %c0_44] : memref<9x128x128xf32, #tpu.memory_space<vmem>>, vector<1x128x128xf32>
    %52 = vector.shape_cast %51 : vector<1x128x128xf32> to vector<128x128xf32>
    %cst_45 = arith.constant dense<0.000000e+00> : vector<128x8xf32>
    %53 = tpu.matmul %52, %14, %cst_45 {dimension_numbers = #tpu.dot_dimension_numbers<[1], [0], [0], [1], [0, 0, 1, 1], [], []>} : vector<128x128xf32>, vector<128x8xf32>, vector<128x8xf32> -> vector<128x8xf32>
    %c5_46 = arith.constant 5 : index
    %c0_47 = arith.constant 0 : index
    %c0_48 = arith.constant 0 : index
    %54 = vector.load %arg4[%c5_46, %c0_47, %c0_48] : memref<9x8x16xf32, #tpu.memory_space<vmem>>, vector<1x8x16xf32>
    %55 = vector.shape_cast %54 : vector<1x8x16xf32> to vector<8x16xf32>
    %cst_49 = arith.constant dense<0.000000e+00> : vector<128x16xf32>
    %56 = tpu.matmul %53, %55, %cst_49 {dimension_numbers = #tpu.dot_dimension_numbers<[1], [0], [0], [1], [0, 0, 1, 1], [], []>} : vector<128x8xf32>, vector<8x16xf32>, vector<128x16xf32> -> vector<128x16xf32>
    %57 = arith.addf %50, %56 : vector<128x16xf32>
    %c6 = arith.constant 6 : index
    %c0_50 = arith.constant 0 : index
    %c0_51 = arith.constant 0 : index
    %58 = vector.load %arg3[%c6, %c0_50, %c0_51] : memref<9x128x128xf32, #tpu.memory_space<vmem>>, vector<1x128x128xf32>
    %59 = vector.shape_cast %58 : vector<1x128x128xf32> to vector<128x128xf32>
    %cst_52 = arith.constant dense<0.000000e+00> : vector<128x8xf32>
    %60 = tpu.matmul %59, %14, %cst_52 {dimension_numbers = #tpu.dot_dimension_numbers<[1], [0], [0], [1], [0, 0, 1, 1], [], []>} : vector<128x128xf32>, vector<128x8xf32>, vector<128x8xf32> -> vector<128x8xf32>
    %c6_53 = arith.constant 6 : index
    %c0_54 = arith.constant 0 : index
    %c0_55 = arith.constant 0 : index
    %61 = vector.load %arg4[%c6_53, %c0_54, %c0_55] : memref<9x8x16xf32, #tpu.memory_space<vmem>>, vector<1x8x16xf32>
    %62 = vector.shape_cast %61 : vector<1x8x16xf32> to vector<8x16xf32>
    %cst_56 = arith.constant dense<0.000000e+00> : vector<128x16xf32>
    %63 = tpu.matmul %60, %62, %cst_56 {dimension_numbers = #tpu.dot_dimension_numbers<[1], [0], [0], [1], [0, 0, 1, 1], [], []>} : vector<128x8xf32>, vector<8x16xf32>, vector<128x16xf32> -> vector<128x16xf32>
    %64 = arith.addf %57, %63 : vector<128x16xf32>
    %c7 = arith.constant 7 : index
    %c0_57 = arith.constant 0 : index
    %c0_58 = arith.constant 0 : index
    %65 = vector.load %arg3[%c7, %c0_57, %c0_58] : memref<9x128x128xf32, #tpu.memory_space<vmem>>, vector<1x128x128xf32>
    %66 = vector.shape_cast %65 : vector<1x128x128xf32> to vector<128x128xf32>
    %cst_59 = arith.constant dense<0.000000e+00> : vector<128x8xf32>
    %67 = tpu.matmul %66, %14, %cst_59 {dimension_numbers = #tpu.dot_dimension_numbers<[1], [0], [0], [1], [0, 0, 1, 1], [], []>} : vector<128x128xf32>, vector<128x8xf32>, vector<128x8xf32> -> vector<128x8xf32>
    %c7_60 = arith.constant 7 : index
    %c0_61 = arith.constant 0 : index
    %c0_62 = arith.constant 0 : index
    %68 = vector.load %arg4[%c7_60, %c0_61, %c0_62] : memref<9x8x16xf32, #tpu.memory_space<vmem>>, vector<1x8x16xf32>
    %69 = vector.shape_cast %68 : vector<1x8x16xf32> to vector<8x16xf32>
    %cst_63 = arith.constant dense<0.000000e+00> : vector<128x16xf32>
    %70 = tpu.matmul %67, %69, %cst_63 {dimension_numbers = #tpu.dot_dimension_numbers<[1], [0], [0], [1], [0, 0, 1, 1], [], []>} : vector<128x8xf32>, vector<8x16xf32>, vector<128x16xf32> -> vector<128x16xf32>
    %71 = arith.addf %64, %70 : vector<128x16xf32>
    %c8 = arith.constant 8 : index
    %c0_64 = arith.constant 0 : index
    %c0_65 = arith.constant 0 : index
    %72 = vector.load %arg3[%c8, %c0_64, %c0_65] : memref<9x128x128xf32, #tpu.memory_space<vmem>>, vector<1x128x128xf32>
    %73 = vector.shape_cast %72 : vector<1x128x128xf32> to vector<128x128xf32>
    %cst_66 = arith.constant dense<0.000000e+00> : vector<128x8xf32>
    %74 = tpu.matmul %73, %14, %cst_66 {dimension_numbers = #tpu.dot_dimension_numbers<[1], [0], [0], [1], [0, 0, 1, 1], [], []>} : vector<128x128xf32>, vector<128x8xf32>, vector<128x8xf32> -> vector<128x8xf32>
    %c8_67 = arith.constant 8 : index
    %c0_68 = arith.constant 0 : index
    %c0_69 = arith.constant 0 : index
    %75 = vector.load %arg4[%c8_67, %c0_68, %c0_69] : memref<9x8x16xf32, #tpu.memory_space<vmem>>, vector<1x8x16xf32>
    %76 = vector.shape_cast %75 : vector<1x8x16xf32> to vector<8x16xf32>
    %cst_70 = arith.constant dense<0.000000e+00> : vector<128x16xf32>
    %77 = tpu.matmul %74, %76, %cst_70 {dimension_numbers = #tpu.dot_dimension_numbers<[1], [0], [0], [1], [0, 0, 1, 1], [], []>} : vector<128x8xf32>, vector<8x16xf32>, vector<128x16xf32> -> vector<128x16xf32>
    %78 = arith.addf %71, %77 : vector<128x16xf32>
    %c0_71 = arith.constant 0 : index
    %c0_72 = arith.constant 0 : index
    %79 = vector.load %arg5[%c0_71, %c0_72] : memref<1x16xf32, #tpu.memory_space<vmem>>, vector<1x16xf32>
    %80 = vector.broadcast %79 : vector<1x16xf32> to vector<128x16xf32>
    %81 = arith.addf %78, %80 : vector<128x16xf32>
    %cst_73 = arith.constant 0.000000e+00 : f32
    %82 = vector.broadcast %cst_73 : f32 to vector<128x16xf32>
    %83 = arith.maximumf %81, %82 : vector<128x16xf32>
    %84 = vector.extract_strided_slice %83 {offsets = [0, 0], sizes = [32, 16], strides = [1, 1]} : vector<128x16xf32> to vector<32x16xf32>
    %85 = vector.extract_strided_slice %83 {offsets = [32, 0], sizes = [32, 16], strides = [1, 1]} : vector<128x16xf32> to vector<32x16xf32>
    %86 = arith.maximumf %84, %85 : vector<32x16xf32>
    %87 = vector.extract_strided_slice %83 {offsets = [64, 0], sizes = [32, 16], strides = [1, 1]} : vector<128x16xf32> to vector<32x16xf32>
    %88 = vector.extract_strided_slice %83 {offsets = [96, 0], sizes = [32, 16], strides = [1, 1]} : vector<128x16xf32> to vector<32x16xf32>
    %89 = arith.maximumf %87, %88 : vector<32x16xf32>
    %90 = arith.maximumf %86, %89 : vector<32x16xf32>
    %c0_74 = arith.constant 0 : index
    %c0_75 = arith.constant 0 : index
    %91 = vector.load %arg13[%c0_74, %c0_75] : memref<32x16xf32, #tpu.memory_space<vmem>>, vector<32x16xf32>
    tpu.vector_store %arg13[%c0_74, %c0_75], %90 {strides = array<i32>} : memref<32x16xf32, #tpu.memory_space<vmem>>, vector<32x16xf32>,
    %cst_76 = arith.constant 0.000000e+00 : f32
    %92 = vector.broadcast %cst_76 : f32 to vector<2x64xf32>
    %c0_77 = arith.constant 0 : index
    %c0_78 = arith.constant 0 : index
    %93 = vector.load %arg13[%c0_77, %c0_78] : memref<32x16xf32, #tpu.memory_space<vmem>>, vector<2x16xf32>
    %c0_79 = arith.constant 0 : index
    %c0_80 = arith.constant 0 : index
    %c0_81 = arith.constant 0 : index
    %94 = vector.load %arg6[%c0_79, %c0_80, %c0_81] : memref<16x16x64xf32, #tpu.memory_space<vmem>>, vector<1x16x64xf32>
    %95 = vector.shape_cast %94 : vector<1x16x64xf32> to vector<16x64xf32>
    %cst_82 = arith.constant dense<0.000000e+00> : vector<2x64xf32>
    %96 = tpu.matmul %93, %95, %cst_82 {dimension_numbers = #tpu.dot_dimension_numbers<[1], [0], [0], [1], [0, 0, 1, 1], [], []>} : vector<2x16xf32>, vector<16x64xf32>, vector<2x64xf32> -> vector<2x64xf32>
    %97 = arith.addf %92, %96 : vector<2x64xf32>
    %c2_83 = arith.constant 2 : index
    %c0_84 = arith.constant 0 : index
    %98 = vector.load %arg13[%c2_83, %c0_84] : memref<32x16xf32, #tpu.memory_space<vmem>>, vector<2x16xf32>
    %c1_85 = arith.constant 1 : index
    %c0_86 = arith.constant 0 : index
    %c0_87 = arith.constant 0 : index
    %99 = vector.load %arg6[%c1_85, %c0_86, %c0_87] : memref<16x16x64xf32, #tpu.memory_space<vmem>>, vector<1x16x64xf32>
    %100 = vector.shape_cast %99 : vector<1x16x64xf32> to vector<16x64xf32>
    %cst_88 = arith.constant dense<0.000000e+00> : vector<2x64xf32>
    %101 = tpu.matmul %98, %100, %cst_88 {dimension_numbers = #tpu.dot_dimension_numbers<[1], [0], [0], [1], [0, 0, 1, 1], [], []>} : vector<2x16xf32>, vector<16x64xf32>, vector<2x64xf32> -> vector<2x64xf32>
    %102 = arith.addf %97, %101 : vector<2x64xf32>
    %c4_89 = arith.constant 4 : index
    %c0_90 = arith.constant 0 : index
    %103 = vector.load %arg13[%c4_89, %c0_90] : memref<32x16xf32, #tpu.memory_space<vmem>>, vector<2x16xf32>
    %c2_91 = arith.constant 2 : index
    %c0_92 = arith.constant 0 : index
    %c0_93 = arith.constant 0 : index
    %104 = vector.load %arg6[%c2_91, %c0_92, %c0_93] : memref<16x16x64xf32, #tpu.memory_space<vmem>>, vector<1x16x64xf32>
    %105 = vector.shape_cast %104 : vector<1x16x64xf32> to vector<16x64xf32>
    %cst_94 = arith.constant dense<0.000000e+00> : vector<2x64xf32>
    %106 = tpu.matmul %103, %105, %cst_94 {dimension_numbers = #tpu.dot_dimension_numbers<[1], [0], [0], [1], [0, 0, 1, 1], [], []>} : vector<2x16xf32>, vector<16x64xf32>, vector<2x64xf32> -> vector<2x64xf32>
    %107 = arith.addf %102, %106 : vector<2x64xf32>
    %c6_95 = arith.constant 6 : index
    %c0_96 = arith.constant 0 : index
    %108 = vector.load %arg13[%c6_95, %c0_96] : memref<32x16xf32, #tpu.memory_space<vmem>>, vector<2x16xf32>
    %c3_97 = arith.constant 3 : index
    %c0_98 = arith.constant 0 : index
    %c0_99 = arith.constant 0 : index
    %109 = vector.load %arg6[%c3_97, %c0_98, %c0_99] : memref<16x16x64xf32, #tpu.memory_space<vmem>>, vector<1x16x64xf32>
    %110 = vector.shape_cast %109 : vector<1x16x64xf32> to vector<16x64xf32>
    %cst_100 = arith.constant dense<0.000000e+00> : vector<2x64xf32>
    %111 = tpu.matmul %108, %110, %cst_100 {dimension_numbers = #tpu.dot_dimension_numbers<[1], [0], [0], [1], [0, 0, 1, 1], [], []>} : vector<2x16xf32>, vector<16x64xf32>, vector<2x64xf32> -> vector<2x64xf32>
    %112 = arith.addf %107, %111 : vector<2x64xf32>
    %c8_101 = arith.constant 8 : index
    %c0_102 = arith.constant 0 : index
    %113 = vector.load %arg13[%c8_101, %c0_102] : memref<32x16xf32, #tpu.memory_space<vmem>>, vector<2x16xf32>
    %c4_103 = arith.constant 4 : index
    %c0_104 = arith.constant 0 : index
    %c0_105 = arith.constant 0 : index
    %114 = vector.load %arg6[%c4_103, %c0_104, %c0_105] : memref<16x16x64xf32, #tpu.memory_space<vmem>>, vector<1x16x64xf32>
    %115 = vector.shape_cast %114 : vector<1x16x64xf32> to vector<16x64xf32>
    %cst_106 = arith.constant dense<0.000000e+00> : vector<2x64xf32>
    %116 = tpu.matmul %113, %115, %cst_106 {dimension_numbers = #tpu.dot_dimension_numbers<[1], [0], [0], [1], [0, 0, 1, 1], [], []>} : vector<2x16xf32>, vector<16x64xf32>, vector<2x64xf32> -> vector<2x64xf32>
    %117 = arith.addf %112, %116 : vector<2x64xf32>
    %c10 = arith.constant 10 : index
    %c0_107 = arith.constant 0 : index
    %118 = vector.load %arg13[%c10, %c0_107] : memref<32x16xf32, #tpu.memory_space<vmem>>, vector<2x16xf32>
    %c5_108 = arith.constant 5 : index
    %c0_109 = arith.constant 0 : index
    %c0_110 = arith.constant 0 : index
    %119 = vector.load %arg6[%c5_108, %c0_109, %c0_110] : memref<16x16x64xf32, #tpu.memory_space<vmem>>, vector<1x16x64xf32>
    %120 = vector.shape_cast %119 : vector<1x16x64xf32> to vector<16x64xf32>
    %cst_111 = arith.constant dense<0.000000e+00> : vector<2x64xf32>
    %121 = tpu.matmul %118, %120, %cst_111 {dimension_numbers = #tpu.dot_dimension_numbers<[1], [0], [0], [1], [0, 0, 1, 1], [], []>} : vector<2x16xf32>, vector<16x64xf32>, vector<2x64xf32> -> vector<2x64xf32>
    %122 = arith.addf %117, %121 : vector<2x64xf32>
    %c12 = arith.constant 12 : index
    %c0_112 = arith.constant 0 : index
    %123 = vector.load %arg13[%c12, %c0_112] : memref<32x16xf32, #tpu.memory_space<vmem>>, vector<2x16xf32>
    %c6_113 = arith.constant 6 : index
    %c0_114 = arith.constant 0 : index
    %c0_115 = arith.constant 0 : index
    %124 = vector.load %arg6[%c6_113, %c0_114, %c0_115] : memref<16x16x64xf32, #tpu.memory_space<vmem>>, vector<1x16x64xf32>
    %125 = vector.shape_cast %124 : vector<1x16x64xf32> to vector<16x64xf32>
    %cst_116 = arith.constant dense<0.000000e+00> : vector<2x64xf32>
    %126 = tpu.matmul %123, %125, %cst_116 {dimension_numbers = #tpu.dot_dimension_numbers<[1], [0], [0], [1], [0, 0, 1, 1], [], []>} : vector<2x16xf32>, vector<16x64xf32>, vector<2x64xf32> -> vector<2x64xf32>
    %127 = arith.addf %122, %126 : vector<2x64xf32>
    %c14 = arith.constant 14 : index
    %c0_117 = arith.constant 0 : index
    %128 = vector.load %arg13[%c14, %c0_117] : memref<32x16xf32, #tpu.memory_space<vmem>>, vector<2x16xf32>
    %c7_118 = arith.constant 7 : index
    %c0_119 = arith.constant 0 : index
    %c0_120 = arith.constant 0 : index
    %129 = vector.load %arg6[%c7_118, %c0_119, %c0_120] : memref<16x16x64xf32, #tpu.memory_space<vmem>>, vector<1x16x64xf32>
    %130 = vector.shape_cast %129 : vector<1x16x64xf32> to vector<16x64xf32>
    %cst_121 = arith.constant dense<0.000000e+00> : vector<2x64xf32>
    %131 = tpu.matmul %128, %130, %cst_121 {dimension_numbers = #tpu.dot_dimension_numbers<[1], [0], [0], [1], [0, 0, 1, 1], [], []>} : vector<2x16xf32>, vector<16x64xf32>, vector<2x64xf32> -> vector<2x64xf32>
    %132 = arith.addf %127, %131 : vector<2x64xf32>
    %c16 = arith.constant 16 : index
    %c0_122 = arith.constant 0 : index
    %133 = vector.load %arg13[%c16, %c0_122] : memref<32x16xf32, #tpu.memory_space<vmem>>, vector<2x16xf32>
    %c8_123 = arith.constant 8 : index
    %c0_124 = arith.constant 0 : index
    %c0_125 = arith.constant 0 : index
    %134 = vector.load %arg6[%c8_123, %c0_124, %c0_125] : memref<16x16x64xf32, #tpu.memory_space<vmem>>, vector<1x16x64xf32>
    %135 = vector.shape_cast %134 : vector<1x16x64xf32> to vector<16x64xf32>
    %cst_126 = arith.constant dense<0.000000e+00> : vector<2x64xf32>
    %136 = tpu.matmul %133, %135, %cst_126 {dimension_numbers = #tpu.dot_dimension_numbers<[1], [0], [0], [1], [0, 0, 1, 1], [], []>} : vector<2x16xf32>, vector<16x64xf32>, vector<2x64xf32> -> vector<2x64xf32>
    %137 = arith.addf %132, %136 : vector<2x64xf32>
    %c18 = arith.constant 18 : index
    %c0_127 = arith.constant 0 : index
    %138 = vector.load %arg13[%c18, %c0_127] : memref<32x16xf32, #tpu.memory_space<vmem>>, vector<2x16xf32>
    %c9 = arith.constant 9 : index
    %c0_128 = arith.constant 0 : index
    %c0_129 = arith.constant 0 : index
    %139 = vector.load %arg6[%c9, %c0_128, %c0_129] : memref<16x16x64xf32, #tpu.memory_space<vmem>>, vector<1x16x64xf32>
    %140 = vector.shape_cast %139 : vector<1x16x64xf32> to vector<16x64xf32>
    %cst_130 = arith.constant dense<0.000000e+00> : vector<2x64xf32>
    %141 = tpu.matmul %138, %140, %cst_130 {dimension_numbers = #tpu.dot_dimension_numbers<[1], [0], [0], [1], [0, 0, 1, 1], [], []>} : vector<2x16xf32>, vector<16x64xf32>, vector<2x64xf32> -> vector<2x64xf32>
    %142 = arith.addf %137, %141 : vector<2x64xf32>
    %c20 = arith.constant 20 : index
    %c0_131 = arith.constant 0 : index
    %143 = vector.load %arg13[%c20, %c0_131] : memref<32x16xf32, #tpu.memory_space<vmem>>, vector<2x16xf32>
    %c10_132 = arith.constant 10 : index
    %c0_133 = arith.constant 0 : index
    %c0_134 = arith.constant 0 : index
    %144 = vector.load %arg6[%c10_132, %c0_133, %c0_134] : memref<16x16x64xf32, #tpu.memory_space<vmem>>, vector<1x16x64xf32>
    %145 = vector.shape_cast %144 : vector<1x16x64xf32> to vector<16x64xf32>
    %cst_135 = arith.constant dense<0.000000e+00> : vector<2x64xf32>
    %146 = tpu.matmul %143, %145, %cst_135 {dimension_numbers = #tpu.dot_dimension_numbers<[1], [0], [0], [1], [0, 0, 1, 1], [], []>} : vector<2x16xf32>, vector<16x64xf32>, vector<2x64xf32> -> vector<2x64xf32>
    %147 = arith.addf %142, %146 : vector<2x64xf32>
    %c22 = arith.constant 22 : index
    %c0_136 = arith.constant 0 : index
    %148 = vector.load %arg13[%c22, %c0_136] : memref<32x16xf32, #tpu.memory_space<vmem>>, vector<2x16xf32>
    %c11 = arith.constant 11 : index
    %c0_137 = arith.constant 0 : index
    %c0_138 = arith.constant 0 : index
    %149 = vector.load %arg6[%c11, %c0_137, %c0_138] : memref<16x16x64xf32, #tpu.memory_space<vmem>>, vector<1x16x64xf32>
    %150 = vector.shape_cast %149 : vector<1x16x64xf32> to vector<16x64xf32>
    %cst_139 = arith.constant dense<0.000000e+00> : vector<2x64xf32>
    %151 = tpu.matmul %148, %150, %cst_139 {dimension_numbers = #tpu.dot_dimension_numbers<[1], [0], [0], [1], [0, 0, 1, 1], [], []>} : vector<2x16xf32>, vector<16x64xf32>, vector<2x64xf32> -> vector<2x64xf32>
    %152 = arith.addf %147, %151 : vector<2x64xf32>
    %c24 = arith.constant 24 : index
    %c0_140 = arith.constant 0 : index
    %153 = vector.load %arg13[%c24, %c0_140] : memref<32x16xf32, #tpu.memory_space<vmem>>, vector<2x16xf32>
    %c12_141 = arith.constant 12 : index
    %c0_142 = arith.constant 0 : index
    %c0_143 = arith.constant 0 : index
    %154 = vector.load %arg6[%c12_141, %c0_142, %c0_143] : memref<16x16x64xf32, #tpu.memory_space<vmem>>, vector<1x16x64xf32>
    %155 = vector.shape_cast %154 : vector<1x16x64xf32> to vector<16x64xf32>
    %cst_144 = arith.constant dense<0.000000e+00> : vector<2x64xf32>
    %156 = tpu.matmul %153, %155, %cst_144 {dimension_numbers = #tpu.dot_dimension_numbers<[1], [0], [0], [1], [0, 0, 1, 1], [], []>} : vector<2x16xf32>, vector<16x64xf32>, vector<2x64xf32> -> vector<2x64xf32>
    %157 = arith.addf %152, %156 : vector<2x64xf32>
    %c26 = arith.constant 26 : index
    %c0_145 = arith.constant 0 : index
    %158 = vector.load %arg13[%c26, %c0_145] : memref<32x16xf32, #tpu.memory_space<vmem>>, vector<2x16xf32>
    %c13 = arith.constant 13 : index
    %c0_146 = arith.constant 0 : index
    %c0_147 = arith.constant 0 : index
    %159 = vector.load %arg6[%c13, %c0_146, %c0_147] : memref<16x16x64xf32, #tpu.memory_space<vmem>>, vector<1x16x64xf32>
    %160 = vector.shape_cast %159 : vector<1x16x64xf32> to vector<16x64xf32>
    %cst_148 = arith.constant dense<0.000000e+00> : vector<2x64xf32>
    %161 = tpu.matmul %158, %160, %cst_148 {dimension_numbers = #tpu.dot_dimension_numbers<[1], [0], [0], [1], [0, 0, 1, 1], [], []>} : vector<2x16xf32>, vector<16x64xf32>, vector<2x64xf32> -> vector<2x64xf32>
    %162 = arith.addf %157, %161 : vector<2x64xf32>
    %c28 = arith.constant 28 : index
    %c0_149 = arith.constant 0 : index
    %163 = vector.load %arg13[%c28, %c0_149] : memref<32x16xf32, #tpu.memory_space<vmem>>, vector<2x16xf32>
    %c14_150 = arith.constant 14 : index
    %c0_151 = arith.constant 0 : index
    %c0_152 = arith.constant 0 : index
    %164 = vector.load %arg6[%c14_150, %c0_151, %c0_152] : memref<16x16x64xf32, #tpu.memory_space<vmem>>, vector<1x16x64xf32>
    %165 = vector.shape_cast %164 : vector<1x16x64xf32> to vector<16x64xf32>
    %cst_153 = arith.constant dense<0.000000e+00> : vector<2x64xf32>
    %166 = tpu.matmul %163, %165, %cst_153 {dimension_numbers = #tpu.dot_dimension_numbers<[1], [0], [0], [1], [0, 0, 1, 1], [], []>} : vector<2x16xf32>, vector<16x64xf32>, vector<2x64xf32> -> vector<2x64xf32>
    %167 = arith.addf %162, %166 : vector<2x64xf32>
    %c30 = arith.constant 30 : index
    %c0_154 = arith.constant 0 : index
    %168 = vector.load %arg13[%c30, %c0_154] : memref<32x16xf32, #tpu.memory_space<vmem>>, vector<2x16xf32>
    %c15 = arith.constant 15 : index
    %c0_155 = arith.constant 0 : index
    %c0_156 = arith.constant 0 : index
    %169 = vector.load %arg6[%c15, %c0_155, %c0_156] : memref<16x16x64xf32, #tpu.memory_space<vmem>>, vector<1x16x64xf32>
    %170 = vector.shape_cast %169 : vector<1x16x64xf32> to vector<16x64xf32>
    %cst_157 = arith.constant dense<0.000000e+00> : vector<2x64xf32>
    %171 = tpu.matmul %168, %170, %cst_157 {dimension_numbers = #tpu.dot_dimension_numbers<[1], [0], [0], [1], [0, 0, 1, 1], [], []>} : vector<2x16xf32>, vector<16x64xf32>, vector<2x64xf32> -> vector<2x64xf32>
    %172 = arith.addf %167, %171 : vector<2x64xf32>
    %c0_158 = arith.constant 0 : index
    %c0_159 = arith.constant 0 : index
    %173 = vector.load %arg7[%c0_158, %c0_159] : memref<1x64xf32, #tpu.memory_space<vmem>>, vector<1x64xf32>
    %174 = vector.broadcast %173 : vector<1x64xf32> to vector<2x64xf32>
    %175 = arith.addf %172, %174 : vector<2x64xf32>
    %c0_160 = arith.constant 0 : index
    %c0_161 = arith.constant 0 : index
    %176 = vector.load %arg8[%c0_160, %c0_161] : memref<64x128xf32, #tpu.memory_space<vmem>>, vector<64x128xf32>
    %cst_162 = arith.constant dense<0.000000e+00> : vector<2x128xf32>
    %177 = tpu.matmul %175, %176, %cst_162 {dimension_numbers = #tpu.dot_dimension_numbers<[1], [0], [0], [1], [0, 0, 1, 1], [], []>} : vector<2x64xf32>, vector<64x128xf32>, vector<2x128xf32> -> vector<2x128xf32>
    %cst_163 = arith.constant 0.000000e+00 : f32
    %178 = vector.broadcast %cst_163 : f32 to vector<2x128xf32>
    %179 = arith.subf %178, %177 : vector<2x128xf32>
    %180 = math.exp %179 : vector<2x128xf32>
    %cst_164 = arith.constant 1.000000e+00 : f32
    %181 = vector.broadcast %cst_164 : f32 to vector<2x128xf32>
    %182 = arith.addf %181, %180 : vector<2x128xf32>
    %183 = tpu.reciprocal %182 {approx = true} : vector<2x128xf32> -> vector<2x128xf32>
    %184 = tpu.iota {dimensions = array<i32: 1>} : vector<2x128xi32>
    %c64_i32 = arith.constant 64 : i32
    %185 = vector.broadcast %c64_i32 : i32 to vector<2x128xi32>
    %186 = arith.cmpi slt, %184, %185 : vector<2x128xi32>
    %cst_165 = arith.constant 1.000000e+00 : f32
    %187 = vector.broadcast %cst_165 : f32 to vector<2x128xf32>
    %188 = arith.subf %187, %183 : vector<2x128xf32>
    %189 = arith.select %186, %183, %188 : vector<2x128xi1>, vector<2x128xf32>
    %cst_166 = arith.constant 1.000000e+00 : f32
    %190 = vector.broadcast %cst_166 : f32 to vector<2x64xf32>
    %c0_167 = arith.constant 0 : index
    %c0_168 = arith.constant 0 : index
    %c0_169 = arith.constant 0 : index
    %191 = vector.load %arg9[%c0_167, %c0_168, %c0_169] : memref<4x128x64xf32, #tpu.memory_space<vmem>>, vector<1x128x64xf32>
    %192 = vector.shape_cast %191 : vector<1x128x64xf32> to vector<128x64xf32>
    %cst_170 = arith.constant dense<0.000000e+00> : vector<2x64xf32>
    %193 = tpu.matmul %189, %192, %cst_170 {dimension_numbers = #tpu.dot_dimension_numbers<[1], [0], [0], [1], [0, 0, 1, 1], [], []>} : vector<2x128xf32>, vector<128x64xf32>, vector<2x64xf32> -> vector<2x64xf32>
    %194 = arith.mulf %190, %193 : vector<2x64xf32>
    %c1_171 = arith.constant 1 : index
    %c0_172 = arith.constant 0 : index
    %c0_173 = arith.constant 0 : index
    %195 = vector.load %arg9[%c1_171, %c0_172, %c0_173] : memref<4x128x64xf32, #tpu.memory_space<vmem>>, vector<1x128x64xf32>
    %196 = vector.shape_cast %195 : vector<1x128x64xf32> to vector<128x64xf32>
    %cst_174 = arith.constant dense<0.000000e+00> : vector<2x64xf32>
    %197 = tpu.matmul %189, %196, %cst_174 {dimension_numbers = #tpu.dot_dimension_numbers<[1], [0], [0], [1], [0, 0, 1, 1], [], []>} : vector<2x128xf32>, vector<128x64xf32>, vector<2x64xf32> -> vector<2x64xf32>
    %198 = arith.mulf %194, %197 : vector<2x64xf32>
    %c2_175 = arith.constant 2 : index
    %c0_176 = arith.constant 0 : index
    %c0_177 = arith.constant 0 : index
    %199 = vector.load %arg9[%c2_175, %c0_176, %c0_177] : memref<4x128x64xf32, #tpu.memory_space<vmem>>, vector<1x128x64xf32>
    %200 = vector.shape_cast %199 : vector<1x128x64xf32> to vector<128x64xf32>
    %cst_178 = arith.constant dense<0.000000e+00> : vector<2x64xf32>
    %201 = tpu.matmul %189, %200, %cst_178 {dimension_numbers = #tpu.dot_dimension_numbers<[1], [0], [0], [1], [0, 0, 1, 1], [], []>} : vector<2x128xf32>, vector<128x64xf32>, vector<2x64xf32> -> vector<2x64xf32>
    %202 = arith.mulf %198, %201 : vector<2x64xf32>
    %c3_179 = arith.constant 3 : index
    %c0_180 = arith.constant 0 : index
    %c0_181 = arith.constant 0 : index
    %203 = vector.load %arg9[%c3_179, %c0_180, %c0_181] : memref<4x128x64xf32, #tpu.memory_space<vmem>>, vector<1x128x64xf32>
    %204 = vector.shape_cast %203 : vector<1x128x64xf32> to vector<128x64xf32>
    %cst_182 = arith.constant dense<0.000000e+00> : vector<2x64xf32>
    %205 = tpu.matmul %189, %204, %cst_182 {dimension_numbers = #tpu.dot_dimension_numbers<[1], [0], [0], [1], [0, 0, 1, 1], [], []>} : vector<2x128xf32>, vector<128x64xf32>, vector<2x64xf32> -> vector<2x64xf32>
    %206 = arith.mulf %202, %205 : vector<2x64xf32>
    %c0_183 = arith.constant 0 : index
    %c0_184 = arith.constant 0 : index
    %207 = vector.load %arg12[%c0_183, %c0_184] : memref<2x64xf32, #tpu.memory_space<vmem>>, vector<2x64xf32>
    tpu.vector_store %arg12[%c0_183, %c0_184], %206 {strides = array<i32>} : memref<2x64xf32, #tpu.memory_space<vmem>>, vector<2x64xf32>,
    %c0_185 = arith.constant 0 : index
    %c0_186 = arith.constant 0 : index
    %208 = vector.load %arg10[%c0_185, %c0_186] : memref<64x8xf32, #tpu.memory_space<vmem>>, vector<64x8xf32>
    %cst_187 = arith.constant dense<0xFF800000> : vector<64xf32>
    %209 = vector.multi_reduction <maximumf>, %208, %cst_187 [1] : vector<64x8xf32> to vector<64xf32>
    %210 = vector.shape_cast %209 : vector<64xf32> to vector<64x1xf32>
    %211 = vector.broadcast %210 : vector<64x1xf32> to vector<64x8xf32>
    %212 = arith.subf %208, %211 : vector<64x8xf32>
    %213 = math.exp %212 : vector<64x8xf32>
    %cst_188 = arith.constant dense<0.000000e+00> : vector<64xf32>
    %214 = vector.multi_reduction <add>, %213, %cst_188 [1] : vector<64x8xf32> to vector<64xf32>
    %215 = vector.shape_cast %214 : vector<64xf32> to vector<64x1xf32>
    %216 = tpu.reciprocal %215 {approx = true} : vector<64x1xf32> -> vector<64x1xf32>
    %217 = vector.broadcast %216 : vector<64x1xf32> to vector<64x8xf32>
    %218 = arith.mulf %213, %217 : vector<64x8xf32>
    %cst_189 = arith.constant dense<0.000000e+00> : vector<2x8xf32>
    %219 = tpu.matmul %206, %218, %cst_189 {dimension_numbers = #tpu.dot_dimension_numbers<[1], [0], [0], [1], [0, 0, 1, 1], [], []>} : vector<2x64xf32>, vector<64x8xf32>, vector<2x8xf32> -> vector<2x8xf32>
    %cst_190 = arith.constant 2.500000e-01 : f32
    %220 = vector.broadcast %cst_190 : f32 to vector<2x8xf32>
    %221 = arith.mulf %219, %220 : vector<2x8xf32>
    %c0_191 = arith.constant 0 : index
    %c0_192 = arith.constant 0 : index
    %222 = vector.load %arg11[%c0_191, %c0_192] : memref<2x8xf32, #tpu.memory_space<vmem>>, vector<2x8xf32>
    tpu.vector_store %arg11[%c0_191, %c0_192], %221 {strides = array<i32>} : memref<2x8xf32, #tpu.memory_space<vmem>>, vector<2x8xf32>,
    return
  }
}

</mosaic_0001>

<bundles_post_ra>
// kernel: ndf_forward.1
= control target key start
LH: loop header
LB: loop body
LE: loop exit
PB: predicated region body
PF: predicated region fallthrough
CT: control target
= control target key end

     0   :  { %18 = vsyncpa [#allocation4], 0  ;;  %vm308_vm0 = vcmask 1043456   ;;  %s6095_s0 = inlined_call_operand.vmem [shape: f32[512,36], index: 0, kind: input, shape index: {}]   ;;  %s6096_s1 = inlined_call_operand.vmem [shape: f32[36,8], index: 1, kind: input, shape index: {}]   ;;  %s6097_s2 = inlined_call_operand.vmem [shape: f32[1,8], index: 2, kind: input, shape index: {}]   ;;  %s6098_s3 = inlined_call_operand.vmem [shape: f32[9,128,128], index: 3, kind: input, shape index: {}]   ;;  %s6099_s4 = inlined_call_operand.vmem [shape: f32[9,8,16], index: 4, kind: input, shape index: {}]   ;;  %s6100_s5 = inlined_call_operand.vmem [shape: f32[1,16], index: 5, kind: input, shape index: {}]   ;;  %s6101_s6 = inlined_call_operand.vmem [shape: f32[16,16,64], index: 6, kind: input, shape index: {}]   ;;  %s6102_s7 = inlined_call_operand.vmem [shape: f32[1,64], index: 7, kind: input, shape index: {}]   ;;  %s6103_s8 = inlined_call_operand.vmem [shape: f32[64,128], index: 8, kind: input, shape index: {}]   ;;  %s6104_s9 = inlined_call_operand.vmem [shape: f32[4,128,64], index: 9, kind: input, shape index: {}]   ;;  %s6105_s10 = inlined_call_operand.vmem [shape: f32[64,8], index: 10, kind: input, shape index: {}]   ;;  %s6106_s11 = inlined_call_operand.hbm [shape: f32[2,8], index: 11, kind: output, shape index: {0}]   ;;  %s6107_s12 = inlined_call_operand.hbm [shape: f32[2,64], index: 12, kind: output, shape index: {1}]  }
   0x1   :  { %v110_v0 = vld [vmem:[%s6096_s1 + $0x20] sm:$0xf]  ;;  %v109_v1 = vld [vmem:[%s6096_s1 + $0x18] sm:$0xff]  ;;  %v108_v2 = vld [vmem:[%s6096_s1 + $0x10] sm:$0xff] }
   0x2   :  { %3368 = vmatpush.msk.msra.mxu0 %vm308_vm0, %v110_v0  ;;  %v107_v3 = vld [vmem:[%s6096_s1 + $0x8] sm:$0xff] }
   0x4   :  { %324 = vmatpush.msra.mxu0 %v109_v1 }
   0x5   :  { %19 = vsyncpa [#allocation6], 0  ;;  %v106_v4 = vld [vmem:[%s6096_s1] sm:$0xff]  ;;  %vm115_vm1 = vcmask 293888   ;;  %v43_v6 = vld [vmem:[%s6095_s0 + $0x8] sm:$0xff]  ;;  %vm799_vm2 = vcmask 64512  }
   0x6   :  { %325 = vmatpush.msra.mxu0 %v108_v2  ;;  %v42_v5 = vld [vmem:[%s6095_s0] sm:$0xff]  ;;  %v44_v7 = vld [vmem:[%s6095_s0 + $0x10] sm:$0xff]  ;;  %v45_v8 = vld [vmem:[%s6095_s0 + $0x18] sm:$0xff]  ;;  %vm2565_vm3 = vcmask 130048   ;;  %vm3028_vm4 = vcmask 523264   ;;  %vm3212_vm6 = vcmask 517120  }
   0x7   :  { %v46_v9 = vld [vmem:[%s6095_s0 + $0x20] sm:$0xff]  ;;  %v47_v10 = vld [vmem:[%s6095_s0 + $0x28] sm:$0xff]  ;;  %v48_v11 = vld [vmem:[%s6095_s0 + $0x30] sm:$0xff]  ;;  %s3354_s13 = sshll.u32 %s6107_s12, 4  ;;  %vm3334_vm7 = vcmask 58368   ;;  %s3355_s13 = int_to_ptr.hbm [resolvable:$true] %s3354_s13 }
   0x8   :  { %326 = vmatpush.msra.mxu0 %v107_v3  ;;  %v49_v12 = vld [vmem:[%s6095_s0 + $0x38] sm:$0xff]  ;;  %v50_v13 = vld [vmem:[%s6095_s0 + $0x40] sm:$0xff]  ;;  %v51_v14 = vld [vmem:[%s6095_s0 + $0x48] sm:$0xff] }
   0x9   :  { %v52_v15 = vld [vmem:[%s6095_s0 + $0x50] sm:$0xff]  ;;  %v53_v16 = vld [vmem:[%s6095_s0 + $0x58] sm:$0xff]  ;;  %v54_v17 = vld [vmem:[%s6095_s0 + $0x60] sm:$0xff] }
   0xa   :  { %327 = vmatpush.msra.mxu0 %v106_v4  ;;  %v55_v18 = vld [vmem:[%s6095_s0 + $0x68] sm:$0xff]  ;;  %v56_v19 = vld [vmem:[%s6095_s0 + $0x70] sm:$0xff]  ;;  %v57_v20 = vld [vmem:[%s6095_s0 + $0x78] sm:$0xff] }
   0xb   :  { %3369 = vmatmul.msk.f32.vlgmr.msra.gmra.mxu0 %vm115_vm1, %v42_v5  ;;  %v58_v22 = vld [vmem:[%s6095_s0 + $0x80] sm:$0xff]  ;;  %v59_v24 = vld [vmem:[%s6095_s0 + $0x88] sm:$0xff]  ;;  %v60_v26 = vld [vmem:[%s6095_s0 + $0x90] sm:$0xff] }
   0xc   :  { %v61_v28 = vld [vmem:[%s6095_s0 + $0x98] sm:$0xff]  ;;  %v62_v30 = vld [vmem:[%s6095_s0 + $0xa0] sm:$0xff]  ;;  %v63_v32 = vld [vmem:[%s6095_s0 + $0xa8] sm:$0xff] }
   0xd   :  { %v64_v34 = vld [vmem:[%s6095_s0 + $0xb0] sm:$0xff]  ;;  %v65_v36 = vld [vmem:[%s6095_s0 + $0xb8] sm:$0xff]  ;;  %v66_v38 = vld [vmem:[%s6095_s0 + $0xc0] sm:$0xff] }
   0xe   :  { %v67_v40 = vld [vmem:[%s6095_s0 + $0xc8] sm:$0xff]  ;;  %v68_v42 = vld [vmem:[%s6095_s0 + $0xd0] sm:$0xff]  ;;  %v69_v44 = vld [vmem:[%s6095_s0 + $0xd8] sm:$0xff] }
   0xf   :  { %v70_v46 = vld [vmem:[%s6095_s0 + $0xe0] sm:$0xff]  ;;  %v71_v48 = vld [vmem:[%s6095_s0 + $0xe8] sm:$0xff]  ;;  %v72_v50 = vld [vmem:[%s6095_s0 + $0xf0] sm:$0xff] }
  0x10   :  { %v73_v52 = vld [vmem:[%s6095_s0 + $0xf8] sm:$0xff]  ;;  %v74_v54 = vld [vmem:[%s6095_s0 + $0x100] sm:$0xff]  ;;  %v75_v56 = vld [vmem:[%s6095_s0 + $0x108] sm:$0xff] }
  0x11   :  { %v76_v58 = vld [vmem:[%s6095_s0 + $0x110] sm:$0xff]  ;;  %v77_v60 = vld [vmem:[%s6095_s0 + $0x118] sm:$0xff]  ;;  %v78_v62 = vld [vmem:[%s6095_s0 + $0x120] sm:$0xff] }
  0x12   :  { %v79_v0 = vld [vmem:[%s6095_s0 + $0x128] sm:$0xff]  ;;  %v80_v2 = vld [vmem:[%s6095_s0 + $0x130] sm:$0xff]  ;;  %v81_v4 = vld [vmem:[%s6095_s0 + $0x138] sm:$0xff] }
  0x13   :  { %3370 = vmatmul.msk.f32.gmra.mxu0 %vm115_vm1, %v43_v6  ;;  %v82_v6 = vld [vmem:[%s6095_s0 + $0x140] sm:$0xff] }
  0x1b   :  { %3371 = vmatmul.msk.f32.gmra.mxu0 %vm115_vm1, %v44_v7 }
  0x23   :  { %3372 = vmatmul.msk.f32.gmra.mxu0 %vm115_vm1, %v45_v8  ;;  %v83_v8 = vld [vmem:[%s6095_s0 + $0x148] sm:$0xff] }
  0x2b   :  { %3373 = vmatmul.msk.f32.gmra.mxu0 %vm115_vm1, %v46_v9 }
  0x33   :  { %3374 = vmatmul.msk.f32.gmra.mxu0 %vm115_vm1, %v47_v10  ;;  %v84_v10 = vld [vmem:[%s6095_s0 + $0x150] sm:$0xff] }
  0x3b   :  { %3375 = vmatmul.msk.f32.gmra.mxu0 %vm115_vm1, %v48_v11 }
  0x43   :  { %3376 = vmatmul.msk.f32.gmra.mxu0 %vm115_vm1, %v49_v12  ;;  %v85_v12 = vld [vmem:[%s6095_s0 + $0x158] sm:$0xff] }
  0x4b   :  { %3377 = vmatmul.msk.f32.gmra.mxu0 %vm115_vm1, %v50_v13 }
  0x53   :  { %3378 = vmatmul.msk.f32.gmra.mxu0 %vm115_vm1, %v51_v14  ;;  %v86_v14 = vld [vmem:[%s6095_s0 + $0x160] sm:$0xff] }
  0x5b   :  { %3379 = vmatmul.msk.f32.gmra.mxu0 %vm115_vm1, %v52_v15 }
  0x63   :  { %3380 = vmatmul.msk.f32.gmra.mxu0 %vm115_vm1, %v53_v16  ;;  %v87_v16 = vld [vmem:[%s6095_s0 + $0x168] sm:$0xff] }
  0x6b   :  { %3381 = vmatmul.msk.f32.gmra.mxu0 %vm115_vm1, %v54_v17 }
  0x73   :  { %3382 = vmatmul.msk.f32.gmra.mxu0 %vm115_vm1, %v55_v18  ;;  %v88_v18 = vld [vmem:[%s6095_s0 + $0x170] sm:$0xff] }
  0x7b   :  { %3383 = vmatmul.msk.f32.gmra.mxu0 %vm115_vm1, %v56_v19 }
  0x83   :  { %3384 = vmatmul.msk.f32.gmra.mxu0 %vm115_vm1, %v57_v20  ;;  %v89_v20 = vld [vmem:[%s6095_s0 + $0x178] sm:$0xff] }
  0x88   :  { %v4048_v21 = vpop.f32.mrf.mxu0 }
  0x89   :  { %6111 = vst [vmem:[#allocation9_spill] sm:$0xff] %v4048_v21 }
  0x8b   :  { %3385 = vmatmul.msk.f32.gmra.mxu0 %vm115_vm1, %v58_v22 }
  0x90   :  { %v4054_v23 = vpop.f32.mrf.mxu0 }
  0x93   :  { %3386 = vmatmul.msk.f32.gmra.mxu0 %vm115_vm1, %v59_v24  ;;  %v90_v24 = vld [vmem:[%s6095_s0 + $0x180] sm:$0xff] }
  0x98   :  { %v4060_v25 = vpop.f32.mrf.mxu0 }
  0x9b   :  { %3387 = vmatmul.msk.f32.gmra.mxu0 %vm115_vm1, %v60_v26 }
  0xa0   :  { %v4066_v27 = vpop.f32.mrf.mxu0 }
  0xa3   :  { %3388 = vmatmul.msk.f32.gmra.mxu0 %vm115_vm1, %v61_v28  ;;  %v91_v28 = vld [vmem:[%s6095_s0 + $0x188] sm:$0xff] }
  0xa8   :  { %v4072_v29 = vpop.f32.mrf.mxu0 }
  0xab   :  { %3389 = vmatmul.msk.f32.gmra.mxu0 %vm115_vm1, %v62_v30 }
  0xb0   :  { %v4078_v31 = vpop.f32.mrf.mxu0 }
  0xb3   :  { %3390 = vmatmul.msk.f32.gmra.mxu0 %vm115_vm1, %v63_v32  ;;  %v92_v32 = vld [vmem:[%s6095_s0 + $0x190] sm:$0xff] }
  0xb8   :  { %v4084_v33 = vpop.f32.mrf.mxu0 }
  0xbb   :  { %3391 = vmatmul.msk.f32.gmra.mxu0 %vm115_vm1, %v64_v34 }
  0xc0   :  { %v4090_v35 = vpop.f32.mrf.mxu0 }
  0xc3   :  { %3392 = vmatmul.msk.f32.gmra.mxu0 %vm115_vm1, %v65_v36  ;;  %v93_v36 = vld [vmem:[%s6095_s0 + $0x198] sm:$0xff] }
  0xc8   :  { %v4096_v37 = vpop.f32.mrf.mxu0 }
  0xcb   :  { %3393 = vmatmul.msk.f32.gmra.mxu0 %vm115_vm1, %v66_v38 }
  0xd0   :  { %v4102_v39 = vpop.f32.mrf.mxu0 }
  0xd3   :  { %3394 = vmatmul.msk.f32.gmra.mxu0 %vm115_vm1, %v67_v40  ;;  %v94_v40 = vld [vmem:[%s6095_s0 + $0x1a0] sm:$0xff] }
  0xd8   :  { %v4108_v41 = vpop.f32.mrf.mxu0 }
  0xdb   :  { %3395 = vmatmul.msk.f32.gmra.mxu0 %vm115_vm1, %v68_v42 }
  0xe0   :  { %v4114_v43 = vpop.f32.mrf.mxu0 }
  0xe3   :  { %3396 = vmatmul.msk.f32.gmra.mxu0 %vm115_vm1, %v69_v44  ;;  %v95_v44 = vld [vmem:[%s6095_s0 + $0x1a8] sm:$0xff] }
  0xe8   :  { %v4120_v45 = vpop.f32.mrf.mxu0 }
  0xeb   :  { %3397 = vmatmul.msk.f32.gmra.mxu0 %vm115_vm1, %v70_v46 }
  0xf0   :  { %v4126_v47 = vpop.f32.mrf.mxu0 }
  0xf3   :  { %3398 = vmatmul.msk.f32.gmra.mxu0 %vm115_vm1, %v71_v48  ;;  %v96_v48 = vld [vmem:[%s6095_s0 + $0x1b0] sm:$0xff] }
  0xf8   :  { %v4132_v49 = vpop.f32.mrf.mxu0 }
  0xfb   :  { %3399 = vmatmul.msk.f32.gmra.mxu0 %vm115_vm1, %v72_v50 }
 0x100   :  { %v4138_v51 = vpop.f32.mrf.mxu0 }
 0x103   :  { %3400 = vmatmul.msk.f32.gmra.mxu0 %vm115_vm1, %v73_v52  ;;  %v97_v52 = vld [vmem:[%s6095_s0 + $0x1b8] sm:$0xff] }
 0x108   :  { %v4144_v53 = vpop.f32.mrf.mxu0 }
 0x109   :  { %6112 = vst [vmem:[#allocation10_spill] sm:$0xff] %v4144_v53 }
 0x10b   :  { %3401 = vmatmul.msk.f32.gmra.mxu0 %vm115_vm1, %v74_v54 }
 0x110   :  { %v4150_v55 = vpop.f32.mrf.mxu0 }
 0x113   :  { %3402 = vmatmul.msk.f32.gmra.mxu0 %vm115_vm1, %v75_v56  ;;  %v98_v56 = vld [vmem:[%s6095_s0 + $0x1c0] sm:$0xff] }
 0x118   :  { %v4156_v57 = vpop.f32.mrf.mxu0 }
 0x11b   :  { %3403 = vmatmul.msk.f32.gmra.mxu0 %vm115_vm1, %v76_v58 }
 0x120   :  { %v4162_v59 = vpop.f32.mrf.mxu0 }
 0x123   :  { %3404 = vmatmul.msk.f32.gmra.mxu0 %vm115_vm1, %v77_v60  ;;  %v99_v60 = vld [vmem:[%s6095_s0 + $0x1c8] sm:$0xff] }
 0x128   :  { %v4168_v61 = vpop.f32.mrf.mxu0 }
 0x12b   :  { %3405 = vmatmul.msk.f32.gmra.mxu0 %vm115_vm1, %v78_v62 }
 0x130   :  { %v4174_v63 = vpop.f32.mrf.mxu0 }
 0x133   :  { %3406 = vmatmul.msk.f32.gmra.mxu0 %vm115_vm1, %v79_v0  ;;  %v100_v0 = vld [vmem:[%s6095_s0 + $0x1d0] sm:$0xff] }
 0x138   :  { %v4180_v1 = vpop.f32.mrf.mxu0 }
 0x13b   :  { %3407 = vmatmul.msk.f32.gmra.mxu0 %vm115_vm1, %v80_v2 }
 0x140   :  { %v4186_v3 = vpop.f32.mrf.mxu0 }
 0x143   :  { %3408 = vmatmul.msk.f32.gmra.mxu0 %vm115_vm1, %v81_v4  ;;  %v101_v4 = vld [vmem:[%s6095_s0 + $0x1d8] sm:$0xff] }
 0x148   :  { %v4192_v5 = vpop.f32.mrf.mxu0 }
 0x14b   :  { %3409 = vmatmul.msk.f32.gmra.mxu0 %vm115_vm1, %v82_v6 }
 0x150   :  { %v4198_v7 = vpop.f32.mrf.mxu0 }
 0x153   :  { %3410 = vmatmul.msk.f32.gmra.mxu0 %vm115_vm1, %v83_v8  ;;  %v102_v8 = vld [vmem:[%s6095_s0 + $0x1e0] sm:$0xff] }
 0x158   :  { %v4204_v9 = vpop.f32.mrf.mxu0 }
 0x15b   :  { %3411 = vmatmul.msk.f32.gmra.mxu0 %vm115_vm1, %v84_v10 }
 0x160   :  { %v4210_v11 = vpop.f32.mrf.mxu0 }
 0x163   :  { %3412 = vmatmul.msk.f32.gmra.mxu0 %vm115_vm1, %v85_v12  ;;  %v103_v12 = vld [vmem:[%s6095_s0 + $0x1e8] sm:$0xff] }
 0x168   :  { %v4216_v13 = vpop.f32.mrf.mxu0 }
 0x16b   :  { %3413 = vmatmul.msk.f32.gmra.mxu0 %vm115_vm1, %v86_v14 }
 0x170   :  { %v4222_v15 = vpop.f32.mrf.mxu0 }
 0x173   :  { %3414 = vmatmul.msk.f32.gmra.mxu0 %vm115_vm1, %v87_v16  ;;  %v104_v16 = vld [vmem:[%s6095_s0 + $0x1f0] sm:$0xff] }
 0x178   :  { %v4228_v17 = vpop.f32.mrf.mxu0 }
 0x17b   :  { %3415 = vmatmul.msk.f32.gmra.mxu0 %vm115_vm1, %v88_v18 }
 0x180   :  { %v4234_v19 = vpop.f32.mrf.mxu0 }
 0x183   :  { %3416 = vmatmul.msk.f32.gmra.mxu0 %vm115_vm1, %v89_v20  ;;  %v105_v20 = vld [vmem:[%s6095_s0 + $0x1f8] sm:$0xff] }
 0x188   :  { %v4240_v22 = vpop.f32.mrf.mxu0 }
 0x189   :  { %6113 = vst [vmem:[#allocation11_spill] sm:$0xff] %v4240_v22 }
 0x18b   :  { %3417 = vmatmul.msk.f32.gmra.mxu0 %vm115_vm1, %v90_v24 }
 0x190   :  { %v4246_v26 = vpop.f32.mrf.mxu0 }
 0x191   :  { %6114 = vst [vmem:[#allocation12_spill] sm:$0xff] %v4246_v26 }
 0x193   :  { %3418 = vmatmul.msk.f32.gmra.mxu0 %vm115_vm1, %v91_v28 }
 0x198   :  { %v4252_v30 = vpop.f32.mrf.mxu0 }
 0x199   :  { %6115 = vst [vmem:[#allocation13_spill] sm:$0xff] %v4252_v30 }
 0x19b   :  { %3419 = vmatmul.msk.f32.gmra.mxu0 %vm115_vm1, %v92_v32 }
 0x1a0   :  { %v4258_v34 = vpop.f32.mrf.mxu0 }
 0x1a3   :  { %3420 = vmatmul.msk.f32.gmra.mxu0 %vm115_vm1, %v93_v36 }
 0x1a8   :  { %v4264_v38 = vpop.f32.mrf.mxu0 }
 0x1ab   :  { %3421 = vmatmul.msk.f32.gmra.mxu0 %vm115_vm1, %v94_v40 }
 0x1b0   :  { %v4270_v42 = vpop.f32.mrf.mxu0 }
 0x1b3   :  { %3422 = vmatmul.msk.f32.gmra.mxu0 %vm115_vm1, %v95_v44 }
 0x1b8   :  { %v4276_v46 = vpop.f32.mrf.mxu0 }
 0x1bb   :  { %3423 = vmatmul.msk.f32.gmra.mxu0 %vm115_vm1, %v96_v48 }
 0x1c0   :  { %v4282_v50 = vpop.f32.mrf.mxu0 }
 0x1c3   :  { %3424 = vmatmul.msk.f32.gmra.mxu0 %vm115_vm1, %v97_v52 }
 0x1c8   :  { %v4288_v54 = vpop.f32.mrf.mxu0 }
 0x1cb   :  { %3425 = vmatmul.msk.f32.gmra.mxu0 %vm115_vm1, %v98_v56 }
 0x1d0   :  { %v4294_v58 = vpop.f32.mrf.mxu0 }
 0x1d3   :  { %3426 = vmatmul.msk.f32.gmra.mxu0 %vm115_vm1, %v99_v60 }
 0x1d8   :  { %v4300_v62 = vpop.f32.mrf.mxu0 }
 0x1db   :  { %3427 = vmatmul.msk.f32.gmra.mxu0 %vm115_vm1, %v100_v0 }
 0x1e0   :  { %v4306_v2 = vpop.f32.mrf.mxu0 }
 0x1e3   :  { %3428 = vmatmul.msk.f32.gmra.mxu0 %vm115_vm1, %v101_v4 }
 0x1e8   :  { %v4312_v6 = vpop.f32.mrf.mxu0 }
 0x1eb   :  { %3429 = vmatmul.msk.f32.gmra.mxu0 %vm115_vm1, %v102_v8 }
 0x1f0   :  { %v4318_v10 = vpop.f32.mrf.mxu0 }
 0x1f3   :  { %3430 = vmatmul.msk.f32.gmra.mxu0 %vm115_vm1, %v103_v12 }
 0x1f8   :  { %v467_v14 = vpop.f32.mrf.mxu0 }
 0x1fb   :  { %3431 = vmatmul.msk.f32.gmra.mxu0 %vm115_vm1, %v104_v16  ;;  %v4357_v16 = vld [vmem:[%s6097_s2] ss:$0 sm:$0xff] }
 0x1fc   :  { %v4365_v21 = vadd.f32 %v4357_v16, %v4072_v29  ;;  %v4369_v22 = vadd.f32 %v4357_v16, %v4078_v31  ;;  %v4373_v53 = vadd.f32 %v4357_v16, %v4084_v33  ;;  %v4385_v29 = vadd.f32 %v4357_v16, %v4102_v39 }
 0x1fd   :  { %v4389_v31 = vadd.f32 %v4357_v16, %v4108_v41  ;;  %v4393_v33 = vadd.f32 %v4357_v16, %v4114_v43  ;;  %v372_v39 = vadd.f32 %v4357_v16, %v4132_v49  ;;  %v4407_v26 = vadd.f32 %v4357_v16, %v4054_v23 }
 0x1fe   :  { %6120 = vst [vmem:[#allocation18_spill] sm:$0xff] %v4365_v21  ;;  %v4411_v41 = vadd.f32 %v4357_v16, %v4060_v25  ;;  %v375_v43 = vadd.f32 %v4357_v16, %v4138_v51  ;;  %v4428_v30 = vadd.f32 %v4357_v16, %v4150_v55  ;;  %v4432_v49 = vadd.f32 %v4357_v16, %v4156_v57 }
 0x1ff   :  { %6121 = vst [vmem:[#allocation19_spill] sm:$0xff] %v4369_v22  ;;  %v4438_v23 = vadd.f32 %v4357_v16, %v4162_v59  ;;  %v4451_v57 = vadd.f32 %v4357_v16, %v4180_v1  ;;  %v420_v59 = vadd.f32 %v4357_v16, %v4228_v17  ;;  %v417_v17 = vadd.f32 %v4357_v16, %v4222_v15 }
 0x200   :  { %v470_v18 = vpop.f32.mrf.mxu0  ;;  %6122 = vst [vmem:[#allocation20_spill] sm:$0xff] %v4407_v26  ;;  %v462_v15 = vadd.f32 %v4357_v16, %v4312_v6 }
 0x201   :  { %6123 = vst [vmem:[#allocation21_spill] sm:$0xff] %v4411_v41  ;;  %v471_v1 = vadd.f32 %v4357_v16, %v470_v18  ;;  %v551_v41 = vmax.f32 %v420_v59, 0.0 }
 0x202   :  { %6124 = vst [vmem:[#allocation22_spill] sm:$0xff] %v4428_v30 }
 0x203   :  { %3432 = vmatmul.msk.f32.gmra.mxu0 %vm115_vm1, %v105_v20  ;;  %v4361_v20 = vadd.f32 %v4357_v16, %v4066_v27  ;;  %v4381_v27 = vadd.f32 %v4357_v16, %v4096_v37  ;;  %v4401_v37 = vadd.f32 %v4357_v16, %v4126_v47  ;;  %v536_v47 = vmax.f32 %v375_v43, 0.0  ;;  %6125 = vst [vmem:[#allocation23_spill] sm:$0xff] %v4432_v49 }
 0x204   :  { %6126 = vst [vmem:[#allocation24_spill] sm:$0xff] %v4438_v23  ;;  %v4462_v43 = vadd.f32 %v4357_v16, %v4192_v5  ;;  %v465_v5 = vadd.f32 %v4357_v16, %v4318_v10  ;;  %v568_v51 = vmax.f32 %v471_v1, 0.0  ;;  %v550_v49 = vmax.f32 %v417_v17, 0.0 }
 0x205   :  { %6119 = vst [vmem:[#allocation17_spill] sm:$0xff] %v4361_v20  ;;  %v535_v20 = vmax.f32 %v372_v39, 0.0  ;;  %v4446_v39 = vadd.f32 %v4357_v16, %v4174_v63  ;;  %v4466_v63 = vadd.f32 %v4357_v16, %v4198_v7  ;;  %v411_v7 = vadd.f32 %v4357_v16, %v4210_v11 }
 0x207   :  { %v599_v6 = vmax.f32 %v535_v20, %v551_v41 }
 0x208   :  { %v4332_v24 = vpop.f32.mrf.mxu0 }
 0x209   :  { %6116 = vst [vmem:[#allocation14_spill] sm:$0xff] %v4332_v24  ;;  %v4377_v24 = vadd.f32 %v4357_v16, %v4090_v35  ;;  %v4397_v35 = vadd.f32 %v4357_v16, %v4120_v45 }
 0x210   :  { %v4334_v28 = vpop.f32.mrf.mxu0 }
 0x211   :  { %6117 = vst [vmem:[#allocation15_spill] sm:$0xff] %v4334_v28  ;;  %v534_v28 = vmax.f32 %v4401_v37, 0.0  ;;  %v4442_v37 = vadd.f32 %v4357_v16, %v4168_v61  ;;  %v468_v61 = vadd.f32 %v4357_v16, %v467_v14 }
 0x218   :  { %v4336_v32 = vpop.f32.mrf.mxu0 }
 0x219   :  { %6118 = vst [vmem:[#allocation16_spill] sm:$0xff] %v4336_v32  ;;  %v423_v32 = vadd.f32 %v4357_v16, %v4234_v19  ;;  %v4455_v19 = vadd.f32 %v4357_v16, %v4186_v3  ;;  %v4472_v3 = vadd.f32 %v4357_v16, %v4204_v9  ;;  %v414_v9 = vadd.f32 %v4357_v16, %v4216_v13 }
 0x21b   :  { %v552_v14 = vmax.f32 %v423_v32, 0.0  ;;  %v567_v32 = vmax.f32 %v468_v61, 0.0  ;;  %v549_v23 = vmax.f32 %v414_v9, 0.0  ;;  %v456_v61 = vadd.f32 %v4357_v16, %v4300_v62 }
 0x21d   :  { %v600_v11 = vmax.f32 %v536_v47, %v552_v14  ;;  %v598_v14 = vmax.f32 %v534_v28, %v550_v49 }
 0x220   :  { %v4338_v36 = vpop.f32.mrf.mxu0 }
 0x228   :  { %v4340_v40 = vpop.f32.mrf.mxu0 }
 0x230   :  { %v4342_v44 = vpop.f32.mrf.mxu0 }
 0x238   :  { %v4344_v48 = vpop.f32.mrf.mxu0 }
 0x240   :  { %v4346_v52 = vpop.f32.mrf.mxu0 }
 0x248   :  { %v4348_v56 = vpop.f32.mrf.mxu0 }
 0x250   :  { %v4350_v60 = vpop.f32.mrf.mxu0 }
 0x251   :  { %v501_v1 = vadd.f32 %v4357_v16, %v4350_v60  ;;  %v563_v60 = vmax.f32 %v456_v61, 0.0 }
 0x253   :  { %v578_v49 = vmax.f32 %v501_v1, 0.0 }
 0x258   :  { %v4352_v0 = vpop.f32.mrf.mxu0 }
 0x260   :  { %v506_v4 = vpop.f32.mrf.mxu0 }
 0x261   :  { %v507_v10 = vadd.f32 %v4357_v16, %v506_v4  ;;  %v565_v4 = vmax.f32 %v462_v15, 0.0 }
 0x263   :  { %v580_v47 = vmax.f32 %v507_v10, 0.0 }
 0x268   :  { %v509_v8 = vpop.f32.mrf.mxu0 }
 0x269   :  { %v510_v25 = vadd.f32 %v4357_v16, %v509_v8  ;;  %v459_v8 = vadd.f32 %v4357_v16, %v4306_v2  ;;  %v548_v2 = vmax.f32 %v411_v7, 0.0 }
 0x26b   :  { %v581_v13 = vmax.f32 %v510_v25, 0.0  ;;  %v564_v25 = vmax.f32 %v459_v8, 0.0 }
 0x26d   :  { %v613_v41 = vmax.f32 %v565_v4, %v581_v13 }
 0x270   :  { %v512_v12 = vpop.f32.mrf.mxu0 }
 0x278   :  { %v515_v45 = vpop.f32.mrf.mxu0 }
 0x279   :  { %v516_v55 = vadd.f32 %v4357_v16, %v515_v45  ;;  %v513_v45 = vadd.f32 %v4357_v16, %v512_v12 }
 0x27b   :  { %v583_v18 = vmax.f32 %v516_v55, 0.0  ;;  %v582_v30 = vmax.f32 %v513_v45, 0.0  ;;  %v566_v55 = vmax.f32 %v465_v5, 0.0 }
 0x27d   :  { %v615_v59 = vmax.f32 %v567_v32, %v583_v18  ;;  %v614_v45 = vmax.f32 %v566_v55, %v582_v30  ;;  %v6127_v30 = vmax.f32 %v4397_v35, 0.0  ;;  %v6128_v35 = vmax.f32 %v4393_v33, 0.0 }
 0x27e   :  { %v6129_v33 = vmax.f32 %v4389_v31, 0.0  ;;  %v6130_v31 = vmax.f32 %v4385_v29, 0.0  ;;  %v6131_v29 = vmax.f32 %v4381_v27, 0.0  ;;  %v6132_v27 = vmax.f32 %v4377_v24, 0.0 }
 0x27f   :  { %v4501_v62 = vmax.f32 %v599_v6, %v615_v59  ;;  %v597_v28 = vmax.f32 %v6127_v30, %v549_v23  ;;  %v4512_v5 = vmax.f32 %v598_v14, %v614_v45  ;;  %v596_v23 = vmax.f32 %v6128_v35, %v548_v2 }
 0x280   :  { %v518_v26 = vpop.f32.mrf.mxu0  ;;  %v6134_v24 = vmax.f32 %v4373_v53, 0.0 }
 0x281   :  { %v519_v12 = vadd.f32 %v4357_v16, %v518_v26  ;;  %v504_v26 = vadd.f32 %v4357_v16, %v4352_v0  ;;  %v453_v0 = vadd.f32 %v4357_v16, %v4294_v58  ;;  %v450_v58 = vadd.f32 %v4357_v16, %v4288_v54 }
 0x282   :  { %v447_v54 = vadd.f32 %v4357_v16, %v4282_v50  ;;  %v4523_v9 = vmax.f32 %v597_v28, %v613_v41  ;;  %v444_v50 = vadd.f32 %v4357_v16, %v4276_v46  ;;  %v441_v46 = vadd.f32 %v4357_v16, %v4270_v42  ;;  %v6136_v28 = vld [vmem:[#allocation15_spill] sm:$0xff] }
 0x283   :  { %v584_v21 = vmax.f32 %v519_v12, 0.0  ;;  %v579_v20 = vmax.f32 %v504_v26, 0.0  ;;  %v562_v7 = vmax.f32 %v453_v0, 0.0  ;;  %v561_v32 = vmax.f32 %v450_v58, 0.0  ;;  %v6133_v0 = vld [vmem:[#allocation16_spill] sm:$0xff] }
 0x284   :  { %v560_v26 = vmax.f32 %v447_v54, 0.0  ;;  %v438_v42 = vadd.f32 %v4357_v16, %v4264_v38  ;;  %v559_v4 = vmax.f32 %v444_v50, 0.0  ;;  %v435_v38 = vadd.f32 %v4357_v16, %v4258_v34 }
 0x285   :  { %v616_v22 = vmax.f32 %v568_v51, %v584_v21  ;;  %v498_v21 = vadd.f32 %v4357_v16, %v4348_v56  ;;  %v495_v56 = vadd.f32 %v4357_v16, %v4346_v52  ;;  %v612_v51 = vmax.f32 %v564_v25, %v580_v47 }
 0x286   :  { %v492_v52 = vadd.f32 %v4357_v16, %v4344_v48  ;;  %v611_v12 = vmax.f32 %v563_v60, %v579_v20  ;;  %v489_v48 = vadd.f32 %v4357_v16, %v4342_v44  ;;  %v486_v44 = vadd.f32 %v4357_v16, %v4340_v40 }
 0x287   :  { %v4495_v17 = vmax.f32 %v600_v11, %v616_v22  ;;  %v547_v22 = vmax.f32 %v4472_v3, 0.0  ;;  %v546_v3 = vmax.f32 %v4466_v63, 0.0  ;;  %v577_v18 = vmax.f32 %v498_v21, 0.0 }
 0x288   :  { %v545_v63 = vmax.f32 %v4462_v43, 0.0  ;;  %v576_v10 = vmax.f32 %v495_v56, 0.0  ;;  %v610_v11 = vmax.f32 %v562_v7, %v578_v49  ;;  %v4534_v8 = vmax.f32 %v596_v23, %v612_v51  ;;  %v6137_v51 = vld [vmem:[#allocation24_spill] sm:$0xff] }
 0x289   :  { %649 = vmatpush.msra.mxu1 %v4495_v17  ;;  %732 = vmatpush.msra.mxu2 %v4495_v17  ;;  %v595_v15 = vmax.f32 %v6129_v33, %v547_v22  ;;  %v544_v43 = vmax.f32 %v4455_v19, 0.0  ;;  %v594_v55 = vmax.f32 %v6130_v31, %v546_v3  ;;  %v575_v13 = vmax.f32 %v492_v52, 0.0  ;;  %v6135_v22 = vld [vmem:[#allocation13_spill] sm:$0xff]  ;;  %v6138_v3 = vld [vmem:[#allocation19_spill] sm:$0xff]  ;;  %v6140_v23 = vld [vmem:[#allocation12_spill] sm:$0xff] }
 0x28a   :  { %v609_v59 = vmax.f32 %v561_v32, %v577_v18  ;;  %v543_v19 = vmax.f32 %v4451_v57, 0.0  ;;  %v593_v61 = vmax.f32 %v6131_v29, %v545_v63  ;;  %v483_v40 = vadd.f32 %v4357_v16, %v4338_v36  ;;  %v6141_v52 = vld [vmem:[#allocation14_spill] sm:$0xff]  ;;  %v6143_v32 = vld [vmem:[#allocation23_spill] sm:$0xff]  ;;  %v6148_v29 = vld [vmem:[#allocation21_spill] sm:$0xff] }
 0x28b   :  { %650 = vmatpush.msra.mxu1 %v4501_v62  ;;  %733 = vmatpush.msra.mxu2 %v4501_v62  ;;  %v4545_v6 = vmax.f32 %v595_v15, %v611_v12  ;;  %v574_v1 = vmax.f32 %v489_v48, 0.0  ;;  %v608_v47 = vmax.f32 %v560_v26, %v576_v10  ;;  %v4556_v45 = vmax.f32 %v594_v55, %v610_v11  ;;  %v6142_v15 = vld [vmem:[#allocation10_spill] sm:$0xff]  ;;  %v6146_v31 = vld [vmem:[#allocation11_spill] sm:$0xff] }
 0x28c   :  { %v542_v57 = vmax.f32 %v4446_v39, 0.0  ;;  %v592_v2 = vmax.f32 %v6132_v27, %v544_v43  ;;  %v558_v14 = vmax.f32 %v441_v46, 0.0  ;;  %v480_v36 = vadd.f32 %v4357_v16, %v6133_v0  ;;  %v6144_v10 = vld [vmem:[#allocation18_spill] sm:$0xff] }
 0x28d   :  { %651 = vmatpush.msra.mxu1 %v4512_v5  ;;  %734 = vmatpush.msra.mxu2 %v4512_v5  ;;  %v573_v25 = vmax.f32 %v486_v44, 0.0  ;;  %v607_v21 = vmax.f32 %v559_v4, %v575_v13  ;;  %v4567_v20 = vmax.f32 %v593_v61, %v609_v59  ;;  %v541_v39 = vmax.f32 %v4442_v37, 0.0  ;;  %v6147_v59 = vld [vmem:[#allocation9_spill] sm:$0xff] }
 0x28e   :  { %v591_v41 = vmax.f32 %v6134_v24, %v543_v19  ;;  %v432_v34 = vadd.f32 %v4357_v16, %v6135_v22  ;;  %v557_v30 = vmax.f32 %v438_v42, 0.0  ;;  %v477_v58 = vadd.f32 %v4357_v16, %v6136_v28  ;;  %v6149_v42 = vld [vmem:[#allocation22_spill] sm:$0xff] }
 0x28f   :  { %652 = vmatpush.msra.mxu1 %v4523_v9  ;;  %735 = vmatpush.msra.mxu2 %v4523_v9  ;;  %v572_v60 = vmax.f32 %v483_v40, 0.0  ;;  %v606_v56 = vmax.f32 %v558_v14, %v574_v1  ;;  %v4578_v49 = vmax.f32 %v592_v2, %v608_v47  ;;  %v540_v37 = vmax.f32 %v6137_v51, 0.0  ;;  %v6150_v40 = vld [vmem:[#allocation17_spill] sm:$0xff]  ;;  %v6152_v14 = vld [vmem:[#allocation20_spill] sm:$0xff]  ;;  %v3498_v51 = vld [vmem:[%s6099_s4 + $0x10] sm:$0xff] }
 0x290   :  { %v6139_v53 = vmax.f32 %v6138_v3, 0.0  ;;  %v429_v54 = vadd.f32 %v4357_v16, %v6140_v23  ;;  %v556_v7 = vmax.f32 %v435_v38, 0.0  ;;  %v474_v18 = vadd.f32 %v4357_v16, %v6141_v52  ;;  %v3434_v3 = vld [vmem:[%s6098_s3 + $0x88] sm:$0xff]  ;;  %v636_v23 = vld [vmem:[%s6098_s3 + $0x18] sm:$0xff]  ;;  %v3437_v52 = vld [vmem:[%s6098_s3 + $0xa0] sm:$0xff] }
 0x291   :  { %653 = vmatpush.msra.mxu1 %v4534_v8  ;;  %736 = vmatpush.msra.mxu2 %v4534_v8  ;;  %v571_v12 = vmax.f32 %v480_v36, 0.0  ;;  %v605_v63 = vmax.f32 %v557_v30, %v573_v25  ;;  %v4589_v33 = vmax.f32 %v591_v41, %v607_v21  ;;  %v378_v50 = vadd.f32 %v4357_v16, %v6142_v15  ;;  %v3439_v15 = vld [vmem:[%s6098_s3 + $0xb0] sm:$0xff] }
 0x292   :  { %v590_v35 = vmax.f32 %v6139_v53, %v542_v57  ;;  %v539_v48 = vmax.f32 %v6143_v32, 0.0  ;;  %v6145_v11 = vmax.f32 %v6144_v10, 0.0  ;;  %v426_v55 = vadd.f32 %v4357_v16, %v6146_v31  ;;  %v635_v53 = vld [vmem:[%s6098_s3 + $0x10] sm:$0xff]  ;;  %v3440_v32 = vld [vmem:[%s6098_s3 + $0xb8] sm:$0xff]  ;;  %v3441_v10 = vld [vmem:[%s6098_s3 + $0xc0] sm:$0xff] }
 0x293   :  { %654 = vmatpush.msra.mxu1 %v4545_v6  ;;  %737 = vmatpush.msra.mxu2 %v4545_v6  ;;  %v555_v46 = vmax.f32 %v432_v34, 0.0  ;;  %v570_v26 = vmax.f32 %v477_v58, 0.0  ;;  %v604_v44 = vmax.f32 %v556_v7, %v572_v60  ;;  %v330_v19 = vadd.f32 %v4357_v16, %v6147_v59  ;;  %v633_v60 = vld [vmem:[%s6098_s3] sm:$0xff]  ;;  %v643_v31 = vld [vmem:[%s6098_s3 + $0x50] sm:$0xff]  ;;  %v3531_v59 = vld [vmem:[%s6099_s4 + $0x18] sm:$0xff] }
 0x294   :  { %v589_v43 = vmax.f32 %v6145_v11, %v541_v39  ;;  %v4600_v13 = vmax.f32 %v590_v35, %v606_v56  ;;  %v523_v61 = vmax.f32 %v6148_v29, 0.0  ;;  %v538_v4 = vmax.f32 %v6149_v42, 0.0  ;;  %v3433_v56 = vld [vmem:[%s6098_s3 + $0x80] sm:$0xff]  ;;  %v3435_v35 = vld [vmem:[%s6098_s3 + $0x90] sm:$0xff]  ;;  %v642_v11 = vld [vmem:[%s6098_s3 + $0x48] sm:$0xff] }
 0x295   :  { %655 = vmatpush.msra.mxu1 %v4556_v45  ;;  %738 = vmatpush.msra.mxu2 %v4556_v45  ;;  %v6151_v1 = vmax.f32 %v6150_v40, 0.0  ;;  %v554_v57 = vmax.f32 %v429_v54, 0.0  ;;  %v569_v27 = vmax.f32 %v474_v18, 0.0  ;;  %v603_v2 = vmax.f32 %v555_v46, %v571_v12  ;;  %v3436_v54 = vld [vmem:[%s6098_s3 + $0x98] sm:$0xff]  ;;  %v637_v7 = vld [vmem:[%s6098_s3 + $0x20] sm:$0xff]  ;;  %v638_v18 = vld [vmem:[%s6098_s3 + $0x28] sm:$0xff] }
 0x296   :  { %v4610_v38 = vmax.f32 %v589_v43, %v605_v63  ;;  %v522_v0 = vmax.f32 %v6152_v14, 0.0  ;;  %v537_v36 = vmax.f32 %v378_v50, 0.0  ;;  %v587_v16 = vmax.f32 %v523_v61, %v539_v48  ;;  %v3438_v12 = vld [vmem:[%s6098_s3 + $0xa8] sm:$0xff]  ;;  %v639_v63 = vld [vmem:[%s6098_s3 + $0x30] sm:$0xff]  ;;  %v640_v50 = vld [vmem:[%s6098_s3 + $0x38] sm:$0xff] }
 0x297   :  { %656 = vmatpush.msra.mxu1 %v4567_v20  ;;  %739 = vmatpush.msra.mxu2 %v4567_v20  ;;  %v588_v47 = vmax.f32 %v6151_v1, %v540_v37  ;;  %v553_v25 = vmax.f32 %v426_v55, 0.0  ;;  %v602_v21 = vmax.f32 %v554_v57, %v570_v26  ;;  %v521_v24 = vmax.f32 %v330_v19, 0.0  ;;  %v634_v37 = vld [vmem:[%s6098_s3 + $0x8] sm:$0xff]  ;;  %v641_v48 = vld [vmem:[%s6098_s3 + $0x40] sm:$0xff]  ;;  %v3443_v55 = vld [vmem:[%s6098_s3 + $0xd0] sm:$0xff] }
 0x298   :  { %v586_v41 = vmax.f32 %v522_v0, %v538_v4  ;;  %v4619_v34 = vmax.f32 %v587_v16, %v603_v2  ;;  %v3442_v43 = vld [vmem:[%s6098_s3 + $0xc8] sm:$0xff]  ;;  %v644_v46 = vld [vmem:[%s6098_s3 + $0x58] sm:$0xff]  ;;  %v3445_v19 = vld [vmem:[%s6098_s3 + $0xe0] sm:$0xff] }
 0x299   :  { %657 = vmatpush.msra.mxu1 %v4578_v49  ;;  %740 = vmatpush.msra.mxu2 %v4578_v49  ;;  %v4615_v39 = vmax.f32 %v588_v47, %v604_v44  ;;  %v601_v22 = vmax.f32 %v553_v25, %v569_v27  ;;  %v585_v30 = vmax.f32 %v521_v24, %v537_v36  ;;  %v3444_v26 = vld [vmem:[%s6098_s3 + $0xd8] sm:$0xff]  ;;  %v645_v44 = vld [vmem:[%s6098_s3 + $0x60] sm:$0xff]  ;;  %v3449_v29 = vld [vmem:[%s6099_s4 + $0x8] sm:$0xff] }
 0x29a   :  { %v4623_v28 = vmax.f32 %v586_v41, %v602_v21  ;;  %863 = vmatpush.msra.mxu3 %v3449_v29  ;;  %v714_v61 = vld [vmem:[%s6099_s4] sm:$0xff]  ;;  %v646_v42 = vld [vmem:[%s6098_s3 + $0x68] sm:$0xff]  ;;  %v647_v40 = vld [vmem:[%s6098_s3 + $0x70] sm:$0xff] }
 0x29b   :  { %658 = vmatpush.msra.mxu1 %v4589_v33  ;;  %741 = vmatpush.msra.mxu2 %v4589_v33  ;;  %v4627_v58 = vmax.f32 %v585_v30, %v601_v22  ;;  %v3446_v4 = vld [vmem:[%s6098_s3 + $0xe8] sm:$0xff]  ;;  %v3447_v1 = vld [vmem:[%s6098_s3 + $0xf0] sm:$0xff]  ;;  %v648_v47 = vld [vmem:[%s6098_s3 + $0x78] sm:$0xff] }
 0x29c   :  { %976 = vmatpush.msrb.mxu3 %v714_v61  ;;  %v3448_v57 = vld [vmem:[%s6098_s3 + $0xf8] sm:$0xff]  ;;  %v3482_v2 = vld [vmem:[%s6098_s3 + $0x100] sm:$0xff]  ;;  %v3483_v36 = vld [vmem:[%s6098_s3 + $0x108] sm:$0xff] }
 0x29d   :  { %659 = vmatpush.msra.mxu1 %v4600_v13  ;;  %742 = vmatpush.msra.mxu2 %v4600_v13  ;;  %v3484_v21 = vld [vmem:[%s6098_s3 + $0x110] sm:$0xff]  ;;  %v3485_v22 = vld [vmem:[%s6098_s3 + $0x118] sm:$0xff]  ;;  %v3495_v29 = vld [vmem:[%s6098_s3 + $0x168] sm:$0xff] }
 0x29f   :  { %660 = vmatpush.msra.mxu1 %v4610_v38  ;;  %743 = vmatpush.msra.mxu2 %v4610_v38 }
 0x2a1   :  { %661 = vmatpush.msra.mxu1 %v4615_v39  ;;  %744 = vmatpush.msra.mxu2 %v4615_v39 }
 0x2a3   :  { %662 = vmatpush.msra.mxu1 %v4619_v34  ;;  %745 = vmatpush.msra.mxu2 %v4619_v34 }
 0x2a5   :  { %663 = vmatpush.msra.mxu1 %v4623_v28  ;;  %746 = vmatpush.msra.mxu2 %v4623_v28 }
 0x2a7   :  { %664 = vmatpush.msra.mxu1 %v4627_v58  ;;  %747 = vmatpush.msra.mxu2 %v4627_v58 }
 0x2a8   :  { %665 = vmatmul.f32.vlgmr.msra.gmra.mxu1 %v633_v60  ;;  %748 = vmatmul.f32.vlgmr.msra.gmra.mxu2 %v3433_v56  ;;  %v3486_v56 = vld [vmem:[%s6098_s3 + $0x120] sm:$0xff] }
 0x2a9   :  { %1043 = vmatpush.msrb.mxu1 %v4495_v17  ;;  %1173 = vmatpush.msrb.mxu2 %v3498_v51 }
 0x2ab   :  { %1469 = vmatpush.msra.mxu2 %v4495_v17  ;;  %1044 = vmatpush.msrb.mxu1 %v4501_v62 }
 0x2ad   :  { %1470 = vmatpush.msra.mxu2 %v4501_v62  ;;  %1045 = vmatpush.msrb.mxu1 %v4512_v5 }
 0x2af   :  { %1471 = vmatpush.msra.mxu2 %v4512_v5  ;;  %1046 = vmatpush.msrb.mxu1 %v4523_v9 }
 0x2b0   :  { %668 = vmatmul.f32.gmra.mxu1 %v634_v37  ;;  %751 = vmatmul.f32.gmra.mxu2 %v3434_v3  ;;  %v3487_v3 = vld [vmem:[%s6098_s3 + $0x128] sm:$0xff] }
 0x2b1   :  { %1472 = vmatpush.msra.mxu2 %v4523_v9  ;;  %1047 = vmatpush.msrb.mxu1 %v4534_v8 }
 0x2b3   :  { %1473 = vmatpush.msra.mxu2 %v4534_v8  ;;  %1048 = vmatpush.msrb.mxu1 %v4545_v6 }
 0x2b5   :  { %1474 = vmatpush.msra.mxu2 %v4545_v6  ;;  %1049 = vmatpush.msrb.mxu1 %v4556_v45 }
 0x2b7   :  { %1475 = vmatpush.msra.mxu2 %v4556_v45  ;;  %1050 = vmatpush.msrb.mxu1 %v4567_v20 }
 0x2b8   :  { %671 = vmatmul.f32.gmra.mxu1 %v635_v53  ;;  %754 = vmatmul.f32.gmra.mxu2 %v3435_v35 }
 0x2b9   :  { %1476 = vmatpush.msra.mxu2 %v4567_v20  ;;  %1051 = vmatpush.msrb.mxu1 %v4578_v49 }
 0x2bb   :  { %1477 = vmatpush.msra.mxu2 %v4578_v49  ;;  %1052 = vmatpush.msrb.mxu1 %v4589_v33 }
 0x2bd   :  { %1478 = vmatpush.msra.mxu2 %v4589_v33  ;;  %1053 = vmatpush.msrb.mxu1 %v4600_v13 }
 0x2bf   :  { %1479 = vmatpush.msra.mxu2 %v4600_v13  ;;  %1054 = vmatpush.msrb.mxu1 %v4610_v38 }
 0x2c0   :  { %674 = vmatmul.f32.gmra.mxu1 %v636_v23  ;;  %757 = vmatmul.f32.gmra.mxu2 %v3436_v54  ;;  %v3488_v23 = vld [vmem:[%s6098_s3 + $0x130] sm:$0xff] }
 0x2c1   :  { %1480 = vmatpush.msra.mxu2 %v4610_v38  ;;  %1055 = vmatpush.msrb.mxu1 %v4615_v39 }
 0x2c3   :  { %1481 = vmatpush.msra.mxu2 %v4615_v39  ;;  %1056 = vmatpush.msrb.mxu1 %v4619_v34 }
 0x2c5   :  { %1482 = vmatpush.msra.mxu2 %v4619_v34  ;;  %1057 = vmatpush.msrb.mxu1 %v4623_v28 }
 0x2c7   :  { %1483 = vmatpush.msra.mxu2 %v4623_v28  ;;  %1058 = vmatpush.msrb.mxu1 %v4627_v58 }
 0x2c8   :  { %677 = vmatmul.f32.gmra.mxu1 %v637_v7  ;;  %760 = vmatmul.f32.gmra.mxu2 %v3437_v52  ;;  %v3489_v52 = vld [vmem:[%s6098_s3 + $0x138] sm:$0xff] }
 0x2c9   :  { %1484 = vmatpush.msra.mxu2 %v4627_v58  ;;  %1386 = vmatpush.msra.mxu1 %v3531_v59 }
 0x2d0   :  { %680 = vmatmul.f32.gmra.mxu1 %v638_v18  ;;  %763 = vmatmul.f32.gmra.mxu2 %v3438_v12 }
 0x2d8   :  { %683 = vmatmul.f32.gmra.mxu1 %v639_v63  ;;  %766 = vmatmul.f32.gmra.mxu2 %v3439_v15  ;;  %v3490_v63 = vld [vmem:[%s6098_s3 + $0x140] sm:$0xff] }
 0x2e0   :  { %686 = vmatmul.f32.gmra.mxu1 %v640_v50  ;;  %769 = vmatmul.f32.gmra.mxu2 %v3440_v32  ;;  %v3491_v32 = vld [vmem:[%s6098_s3 + $0x148] sm:$0xff] }
 0x2e8   :  { %689 = vmatmul.f32.gmra.mxu1 %v641_v48  ;;  %772 = vmatmul.f32.gmra.mxu2 %v3441_v10 }
 0x2f0   :  { %692 = vmatmul.f32.gmra.mxu1 %v642_v11  ;;  %775 = vmatmul.f32.gmra.mxu2 %v3442_v43  ;;  %v3492_v11 = vld [vmem:[%s6098_s3 + $0x150] sm:$0xff] }
 0x2f8   :  { %695 = vmatmul.f32.gmra.mxu1 %v643_v31  ;;  %778 = vmatmul.f32.gmra.mxu2 %v3443_v55  ;;  %v3493_v55 = vld [vmem:[%s6098_s3 + $0x158] sm:$0xff] }
 0x300   :  { %698 = vmatmul.f32.gmra.mxu1 %v644_v46  ;;  %781 = vmatmul.f32.gmra.mxu2 %v3444_v26 }
 0x308   :  { %701 = vmatmul.f32.gmra.mxu1 %v645_v44  ;;  %784 = vmatmul.f32.gmra.mxu2 %v3445_v19  ;;  %v3494_v44 = vld [vmem:[%s6098_s3 + $0x160] sm:$0xff] }
 0x310   :  { %704 = vmatmul.f32.gmra.mxu1 %v646_v42  ;;  %787 = vmatmul.f32.gmra.mxu2 %v3446_v4  ;;  %v3496_v4 = vld [vmem:[%s6098_s3 + $0x170] sm:$0xff] }
 0x318   :  { %707 = vmatmul.f32.gmra.mxu1 %v647_v40  ;;  %790 = vmatmul.f32.gmra.mxu2 %v3447_v1  ;;  %v3630_v40 = vld [vmem:[%s6099_s4 + $0x30] sm:$0xff] }
 0x319   :  { %2025 = vmatpush.msrb.mxu0 %v3630_v40 }
 0x320   :  { %710 = vmatmul.f32.gmra.mxu1 %v648_v47  ;;  %793 = vmatmul.f32.gmra.mxu2 %v3448_v57  ;;  %v3497_v57 = vld [vmem:[%s6098_s3 + $0x178] sm:$0xff] }
 0x325   :  { %v4773_v27 = vpop.f32.mrf.mxu1 }
 0x328   :  { %1059 = vmatmul.f32.vlgmr.msrb.gmra.mxu1 %v3482_v2 }
 0x329   :  { %1682 = vmatpush.msrb.mxu1 %v4495_v17 }
 0x32b   :  { %1683 = vmatpush.msrb.mxu1 %v4501_v62  ;;  %v749_v14 = vpop.f32.mrf.mxu2 }
 0x32c   :  { %3450 = vmatmul.msk.f32.vlgmr.msra.gmra.mxu3 %vm799_vm2, %v749_v14 }
 0x32d   :  { %1256 = vmatpush.msra.mxu3 %v4495_v17  ;;  %1684 = vmatpush.msrb.mxu1 %v4512_v5  ;;  %v4783_v0 = vpop.f32.mrf.mxu1 }
 0x32f   :  { %1257 = vmatpush.msra.mxu3 %v4501_v62  ;;  %1685 = vmatpush.msrb.mxu1 %v4523_v9 }
 0x330   :  { %1062 = vmatmul.f32.gmra.mxu1 %v3483_v36 }
 0x331   :  { %1258 = vmatpush.msra.mxu3 %v4512_v5  ;;  %1686 = vmatpush.msrb.mxu1 %v4534_v8 }
 0x333   :  { %1259 = vmatpush.msra.mxu3 %v4523_v9  ;;  %1687 = vmatpush.msrb.mxu1 %v4545_v6  ;;  %v752_v16 = vpop.f32.mrf.mxu2 }
 0x334   :  { %3451 = vmatmul.msk.f32.gmra.mxu3 %vm799_vm2, %v752_v16 }
 0x335   :  { %1688 = vmatpush.msrb.mxu1 %v4556_v45  ;;  %v4796_v25 = vpop.f32.mrf.mxu1  ;;  %1260 = vmatpush.msra.mxu3 %v4534_v8 }
 0x337   :  { %1689 = vmatpush.msrb.mxu1 %v4567_v20  ;;  %1261 = vmatpush.msra.mxu3 %v4545_v6 }
 0x338   :  { %1065 = vmatmul.f32.gmra.mxu1 %v3484_v21 }
 0x339   :  { %1690 = vmatpush.msrb.mxu1 %v4578_v49  ;;  %1262 = vmatpush.msra.mxu3 %v4556_v45 }
 0x33b   :  { %1691 = vmatpush.msrb.mxu1 %v4589_v33  ;;  %1263 = vmatpush.msra.mxu3 %v4567_v20  ;;  %v755_v24 = vpop.f32.mrf.mxu2 }
 0x33c   :  { %3452 = vmatmul.msk.f32.gmra.mxu3 %vm799_vm2, %v755_v24 }
 0x33d   :  { %1692 = vmatpush.msrb.mxu1 %v4600_v13  ;;  %v4810_v41 = vpop.f32.mrf.mxu1  ;;  %1264 = vmatpush.msra.mxu3 %v4578_v49 }
 0x33f   :  { %1693 = vmatpush.msrb.mxu1 %v4610_v38  ;;  %1265 = vmatpush.msra.mxu3 %v4589_v33 }
 0x340   :  { %1068 = vmatmul.f32.gmra.mxu1 %v3485_v22 }
 0x341   :  { %1694 = vmatpush.msrb.mxu1 %v4615_v39  ;;  %1266 = vmatpush.msra.mxu3 %v4600_v13 }
 0x343   :  { %1695 = vmatpush.msrb.mxu1 %v4619_v34  ;;  %1267 = vmatpush.msra.mxu3 %v4610_v38  ;;  %v758_v30 = vpop.f32.mrf.mxu2 }
 0x344   :  { %3453 = vmatmul.msk.f32.gmra.mxu3 %vm799_vm2, %v758_v30 }
 0x345   :  { %1696 = vmatpush.msrb.mxu1 %v4623_v28  ;;  %v4824_v60 = vpop.f32.mrf.mxu1  ;;  %1268 = vmatpush.msra.mxu3 %v4615_v39 }
 0x347   :  { %1697 = vmatpush.msrb.mxu1 %v4627_v58  ;;  %1269 = vmatpush.msra.mxu3 %v4619_v34 }
 0x348   :  { %1071 = vmatmul.f32.gmra.mxu1 %v3486_v56 }
 0x349   :  { %1270 = vmatpush.msra.mxu3 %v4623_v28 }
 0x34b   :  { %1271 = vmatpush.msra.mxu3 %v4627_v58  ;;  %v761_v51 = vpop.f32.mrf.mxu2 }
 0x34c   :  { %3454 = vmatmul.msk.f32.gmra.mxu3 %vm799_vm2, %v761_v51 }
 0x34d   :  { %v4835_v37 = vpop.f32.mrf.mxu1 }
 0x350   :  { %1074 = vmatmul.f32.gmra.mxu1 %v3487_v3 }
 0x353   :  { %v764_v53 = vpop.f32.mrf.mxu2 }
 0x354   :  { %3455 = vmatmul.msk.f32.gmra.mxu3 %vm799_vm2, %v764_v53 }
 0x355   :  { %v4841_v35 = vpop.f32.mrf.mxu1 }
 0x358   :  { %1077 = vmatmul.f32.gmra.mxu1 %v3488_v23 }
 0x35b   :  { %v767_v54 = vpop.f32.mrf.mxu2 }
 0x35c   :  { %3456 = vmatmul.msk.f32.gmra.mxu3 %vm799_vm2, %v767_v54 }
 0x35d   :  { %v4847_v7 = vpop.f32.mrf.mxu1 }
 0x360   :  { %1080 = vmatmul.f32.gmra.mxu1 %v3489_v52 }
 0x363   :  { %v770_v18 = vpop.f32.mrf.mxu2 }
 0x364   :  { %3457 = vmatmul.msk.f32.gmra.mxu3 %vm799_vm2, %v770_v18 }
 0x365   :  { %v4853_v12 = vpop.f32.mrf.mxu1 }
 0x368   :  { %1083 = vmatmul.f32.gmra.mxu1 %v3490_v63 }
 0x36b   :  { %v773_v15 = vpop.f32.mrf.mxu2 }
 0x36c   :  { %3458 = vmatmul.msk.f32.gmra.mxu3 %vm799_vm2, %v773_v15  ;;  %v3564_v15 = vld [vmem:[%s6099_s4 + $0x20] sm:$0xff] }
 0x36d   :  { %v4859_v50 = vpop.f32.mrf.mxu1 }
 0x370   :  { %1086 = vmatmul.f32.gmra.mxu1 %v3491_v32 }
 0x373   :  { %v776_v48 = vpop.f32.mrf.mxu2 }
 0x374   :  { %3459 = vmatmul.msk.f32.gmra.mxu3 %vm799_vm2, %v776_v48 }
 0x375   :  { %v4865_v10 = vpop.f32.mrf.mxu1 }
 0x378   :  { %1089 = vmatmul.f32.gmra.mxu1 %v3492_v11 }
 0x37b   :  { %v779_v43 = vpop.f32.mrf.mxu2 }
 0x37c   :  { %3460 = vmatmul.msk.f32.gmra.mxu3 %vm799_vm2, %v779_v43 }
 0x37d   :  { %v4871_v31 = vpop.f32.mrf.mxu1 }
 0x380   :  { %1092 = vmatmul.f32.gmra.mxu1 %v3493_v55 }
 0x383   :  { %v782_v46 = vpop.f32.mrf.mxu2 }
 0x384   :  { %3461 = vmatmul.msk.f32.gmra.mxu3 %vm799_vm2, %v782_v46 }
 0x385   :  { %v4877_v26 = vpop.f32.mrf.mxu1 }
 0x388   :  { %1095 = vmatmul.f32.gmra.mxu1 %v3494_v44  ;;  %v3549_v44 = vld [vmem:[%s6098_s3 + $0x208] sm:$0xff] }
 0x38b   :  { %v785_v59 = vpop.f32.mrf.mxu2 }
 0x38c   :  { %3462 = vmatmul.msk.f32.gmra.mxu3 %vm799_vm2, %v785_v59 }
 0x38d   :  { %v4883_v19 = vpop.f32.mrf.mxu1 }
 0x390   :  { %1098 = vmatmul.f32.gmra.mxu1 %v3495_v29 }
 0x393   :  { %v788_v61 = vpop.f32.mrf.mxu2 }
 0x394   :  { %3463 = vmatmul.msk.f32.gmra.mxu3 %vm799_vm2, %v788_v61  ;;  %v3516_v61 = vld [vmem:[%s6098_s3 + $0x188] sm:$0xff] }
 0x395   :  { %v4889_v42 = vpop.f32.mrf.mxu1 }
 0x398   :  { %1101 = vmatmul.f32.gmra.mxu1 %v3496_v4 }
 0x39b   :  { %v791_v1 = vpop.f32.mrf.mxu2 }
 0x39c   :  { %3464 = vmatmul.msk.f32.gmra.mxu3 %vm799_vm2, %v791_v1 }
 0x39d   :  { %v4898_v47 = vpop.f32.mrf.mxu1 }
 0x3a0   :  { %1104 = vmatmul.f32.gmra.mxu1 %v3497_v57  ;;  %v3517_v57 = vld [vmem:[%s6098_s3 + $0x190] sm:$0xff] }
 0x3a3   :  { %v794_v2 = vpop.f32.mrf.mxu2 }
 0x3a4   :  { %3465 = vmatmul.msk.f32.gmra.mxu3 %vm799_vm2, %v794_v2  ;;  %v3551_v2 = vld [vmem:[%s6098_s3 + $0x218] sm:$0xff] }
 0x3a5   :  { %v1060_v14 = vpop.f32.mrf.mxu1 }
 0x3a6   :  { %3499 = vmatmul.msk.f32.vlgmr.msrb.gmra.mxu2 %vm799_vm2, %v1060_v14 }
 0x3ac   :  { %3466 = vmatmul.msk.f32.vlgmr.msrb.gmra.mxu3 %vm799_vm2, %v4773_v27 }
 0x3ad   :  { %v1063_v36 = vpop.f32.mrf.mxu1  ;;  %1599 = vmatpush.msrb.mxu3 %v3564_v15  ;;  %v3554_v15 = vld [vmem:[%s6098_s3 + $0x230] sm:$0xff] }
 0x3ae   :  { %3500 = vmatmul.msk.f32.gmra.mxu2 %vm799_vm2, %v1063_v36 }
 0x3af   :  { %v4908_v16 = vpop.f32.mrf.mxu3 }
 0x3b4   :  { %3467 = vmatmul.msk.f32.gmra.mxu3 %vm799_vm2, %v4783_v0 }
 0x3b5   :  { %v1066_v21 = vpop.f32.mrf.mxu1 }
 0x3b6   :  { %3501 = vmatmul.msk.f32.gmra.mxu2 %vm799_vm2, %v1066_v21 }
 0x3b7   :  { %v4913_v24 = vpop.f32.mrf.mxu3 }
 0x3bc   :  { %3468 = vmatmul.msk.f32.gmra.mxu3 %vm799_vm2, %v4796_v25 }
 0x3bd   :  { %v1069_v22 = vpop.f32.mrf.mxu1 }
 0x3be   :  { %3502 = vmatmul.msk.f32.gmra.mxu2 %vm799_vm2, %v1069_v22  ;;  %v3552_v22 = vld [vmem:[%s6098_s3 + $0x220] sm:$0xff] }
 0x3bf   :  { %v4918_v27 = vpop.f32.mrf.mxu3 }
 0x3c4   :  { %3469 = vmatmul.msk.f32.gmra.mxu3 %vm799_vm2, %v4810_v41 }
 0x3c5   :  { %v1072_v30 = vpop.f32.mrf.mxu1 }
 0x3c6   :  { %3503 = vmatmul.msk.f32.gmra.mxu2 %vm799_vm2, %v1072_v30 }
 0x3c7   :  { %v4923_v0 = vpop.f32.mrf.mxu3 }
 0x3cc   :  { %3470 = vmatmul.msk.f32.gmra.mxu3 %vm799_vm2, %v4824_v60 }
 0x3cd   :  { %v1075_v56 = vpop.f32.mrf.mxu1 }
 0x3ce   :  { %3504 = vmatmul.msk.f32.gmra.mxu2 %vm799_vm2, %v1075_v56 }
 0x3cf   :  { %v4928_v25 = vpop.f32.mrf.mxu3 }
 0x3d4   :  { %3471 = vmatmul.msk.f32.gmra.mxu3 %vm799_vm2, %v4835_v37 }
 0x3d5   :  { %v1078_v51 = vpop.f32.mrf.mxu1 }
 0x3d6   :  { %3505 = vmatmul.msk.f32.gmra.mxu2 %vm799_vm2, %v1078_v51 }
 0x3d7   :  { %v4933_v41 = vpop.f32.mrf.mxu3 }
 0x3dc   :  { %3472 = vmatmul.msk.f32.gmra.mxu3 %vm799_vm2, %v4841_v35 }
 0x3dd   :  { %v1081_v3 = vpop.f32.mrf.mxu1 }
 0x3de   :  { %3506 = vmatmul.msk.f32.gmra.mxu2 %vm799_vm2, %v1081_v3  ;;  %v3519_v3 = vld [vmem:[%s6098_s3 + $0x1a0] sm:$0xff] }
 0x3df   :  { %v4938_v60 = vpop.f32.mrf.mxu3 }
 0x3e4   :  { %3473 = vmatmul.msk.f32.gmra.mxu3 %vm799_vm2, %v4847_v7 }
 0x3e5   :  { %v1084_v53 = vpop.f32.mrf.mxu1 }
 0x3e6   :  { %3507 = vmatmul.msk.f32.gmra.mxu2 %vm799_vm2, %v1084_v53  ;;  %v3553_v53 = vld [vmem:[%s6098_s3 + $0x228] sm:$0xff] }
 0x3e7   :  { %v4943_v37 = vpop.f32.mrf.mxu3 }
 0x3ec   :  { %3474 = vmatmul.msk.f32.gmra.mxu3 %vm799_vm2, %v4853_v12 }
 0x3ed   :  { %v1087_v23 = vpop.f32.mrf.mxu1 }
 0x3ee   :  { %3508 = vmatmul.msk.f32.gmra.mxu2 %vm799_vm2, %v1087_v23 }
 0x3ef   :  { %v4948_v35 = vpop.f32.mrf.mxu3 }
 0x3f4   :  { %3475 = vmatmul.msk.f32.gmra.mxu3 %vm799_vm2, %v4859_v50 }
 0x3f5   :  { %v1090_v54 = vpop.f32.mrf.mxu1 }
 0x3f6   :  { %3509 = vmatmul.msk.f32.gmra.mxu2 %vm799_vm2, %v1090_v54 }
 0x3f7   :  { %v4953_v7 = vpop.f32.mrf.mxu3 }
 0x3fc   :  { %3476 = vmatmul.msk.f32.gmra.mxu3 %vm799_vm2, %v4865_v10 }
 0x3fd   :  { %v1093_v52 = vpop.f32.mrf.mxu1 }
 0x3fe   :  { %3510 = vmatmul.msk.f32.gmra.mxu2 %vm799_vm2, %v1093_v52 }
 0x3ff   :  { %v4958_v18 = vpop.f32.mrf.mxu3 }
 0x404   :  { %3477 = vmatmul.msk.f32.gmra.mxu3 %vm799_vm2, %v4871_v31  ;;  %v3548_v31 = vld [vmem:[%s6098_s3 + $0x200] sm:$0xff] }
 0x405   :  { %v1096_v12 = vpop.f32.mrf.mxu1 }
 0x406   :  { %3511 = vmatmul.msk.f32.gmra.mxu2 %vm799_vm2, %v1096_v12  ;;  %v3520_v12 = vld [vmem:[%s6098_s3 + $0x1a8] sm:$0xff] }
 0x407   :  { %v4963_v63 = vpop.f32.mrf.mxu3 }
 0x40c   :  { %3478 = vmatmul.msk.f32.gmra.mxu3 %vm799_vm2, %v4877_v26  ;;  %v3515_v26 = vld [vmem:[%s6098_s3 + $0x180] sm:$0xff] }
 0x40d   :  { %v1099_v50 = vpop.f32.mrf.mxu1 }
 0x40e   :  { %3512 = vmatmul.msk.f32.gmra.mxu2 %vm799_vm2, %v1099_v50 }
 0x40f   :  { %v4971_v32 = vpop.f32.mrf.mxu3 }
 0x414   :  { %3479 = vmatmul.msk.f32.gmra.mxu3 %vm799_vm2, %v4883_v19 }
 0x415   :  { %v1102_v48 = vpop.f32.mrf.mxu1 }
 0x416   :  { %3513 = vmatmul.msk.f32.gmra.mxu2 %vm799_vm2, %v1102_v48 }
 0x417   :  { %v4976_v10 = vpop.f32.mrf.mxu3 }
 0x41c   :  { %3480 = vmatmul.msk.f32.gmra.mxu3 %vm799_vm2, %v4889_v42  ;;  %v3550_v42 = vld [vmem:[%s6098_s3 + $0x210] sm:$0xff] }
 0x41d   :  { %v1105_v11 = vpop.f32.mrf.mxu1 }
 0x41e   :  { %3514 = vmatmul.msk.f32.gmra.mxu2 %vm799_vm2, %v1105_v11 }
 0x41f   :  { %v4981_v43 = vpop.f32.mrf.mxu3 }
 0x424   :  { %3481 = vmatmul.msk.f32.gmra.mxu3 %vm799_vm2, %v4898_v47 }
 0x426   :  { %1485 = vmatmul.f32.vlgmr.msra.gmra.mxu2 %v3548_v31 }
 0x427   :  { %v4988_v55 = vpop.f32.mrf.mxu3 }
 0x429   :  { %v1175_v46 = vpop.f32.mrf.mxu2 }
 0x42c   :  { %1272 = vmatmul.f32.vlgmr.msra.gmra.mxu3 %v3515_v26 }
 0x42d   :  { %1895 = vmatpush.msra.mxu3 %v4495_v17 }
 0x42e   :  { %1488 = vmatmul.f32.gmra.mxu2 %v3549_v44 }
 0x42f   :  { %1896 = vmatpush.msra.mxu3 %v4501_v62  ;;  %v978_v59 = vpop.f32.mrf.mxu3 }
 0x430   :  { %v979_v19 = vadd.f32 %v978_v59, %v4908_v16 }
 0x431   :  { %v1178_v29 = vpop.f32.mrf.mxu2  ;;  %1897 = vmatpush.msra.mxu3 %v4512_v5 }
 0x432   :  { %v5006_v4 = vadd.f32 %v1175_v46, %v979_v19  ;;  %v3555_v46 = vld [vmem:[%s6098_s3 + $0x238] sm:$0xff] }
 0x433   :  { %1898 = vmatpush.msra.mxu3 %v4523_v9 }
 0x434   :  { %1275 = vmatmul.f32.gmra.mxu3 %v3516_v61 }
 0x435   :  { %1899 = vmatpush.msra.mxu3 %v4534_v8 }
 0x436   :  { %1491 = vmatmul.f32.gmra.mxu2 %v3550_v42 }
 0x437   :  { %1900 = vmatpush.msra.mxu3 %v4545_v6  ;;  %v981_v40 = vpop.f32.mrf.mxu3 }
 0x438   :  { %v982_v1 = vadd.f32 %v981_v40, %v4913_v24  ;;  %v3518_v24 = vld [vmem:[%s6098_s3 + $0x198] sm:$0xff] }
 0x439   :  { %v1181_v47 = vpop.f32.mrf.mxu2  ;;  %1901 = vmatpush.msra.mxu3 %v4556_v45 }
 0x43a   :  { %v5019_v14 = vadd.f32 %v1178_v29, %v982_v1  ;;  %v3556_v29 = vld [vmem:[%s6098_s3 + $0x240] sm:$0xff] }
 0x43b   :  { %1902 = vmatpush.msra.mxu3 %v4567_v20 }
 0x43c   :  { %1278 = vmatmul.f32.gmra.mxu3 %v3517_v57 }
 0x43d   :  { %1903 = vmatpush.msra.mxu3 %v4578_v49 }
 0x43e   :  { %1494 = vmatmul.f32.gmra.mxu2 %v3551_v2 }
 0x43f   :  { %1904 = vmatpush.msra.mxu3 %v4589_v33  ;;  %v984_v36 = vpop.f32.mrf.mxu3 }
 0x440   :  { %v985_v16 = vadd.f32 %v984_v36, %v4918_v27 }
 0x441   :  { %v1184_v21 = vpop.f32.mrf.mxu2  ;;  %1905 = vmatpush.msra.mxu3 %v4600_v13 }
 0x442   :  { %v5032_v30 = vadd.f32 %v1181_v47, %v985_v16  ;;  %v3557_v47 = vld [vmem:[%s6098_s3 + $0x248] sm:$0xff]  ;;  %v3558_v16 = vld [vmem:[%s6098_s3 + $0x250] sm:$0xff] }
 0x443   :  { %1906 = vmatpush.msra.mxu3 %v4610_v38 }
 0x444   :  { %1281 = vmatmul.f32.gmra.mxu3 %v3518_v24 }
 0x445   :  { %1907 = vmatpush.msra.mxu3 %v4615_v39 }
 0x446   :  { %1497 = vmatmul.f32.gmra.mxu2 %v3552_v22  ;;  %v3525_v22 = vld [vmem:[%s6098_s3 + $0x1d0] sm:$0xff] }
 0x447   :  { %1908 = vmatpush.msra.mxu3 %v4619_v34  ;;  %v987_v27 = vpop.f32.mrf.mxu3 }
 0x448   :  { %v988_v56 = vadd.f32 %v987_v27, %v4923_v0  ;;  %v3559_v27 = vld [vmem:[%s6098_s3 + $0x258] sm:$0xff] }
 0x449   :  { %v1187_v51 = vpop.f32.mrf.mxu2  ;;  %1909 = vmatpush.msra.mxu3 %v4623_v28 }
 0x44a   :  { %v5045_v23 = vadd.f32 %v1184_v21, %v988_v56 }
 0x44b   :  { %1910 = vmatpush.msra.mxu3 %v4627_v58 }
 0x44c   :  { %1284 = vmatmul.f32.gmra.mxu3 %v3519_v3  ;;  %v3526_v3 = vld [vmem:[%s6098_s3 + $0x1d8] sm:$0xff] }
 0x44e   :  { %1500 = vmatmul.f32.gmra.mxu2 %v3553_v53  ;;  %v3560_v53 = vld [vmem:[%s6098_s3 + $0x260] sm:$0xff] }
 0x44f   :  { %v990_v54 = vpop.f32.mrf.mxu3 }
 0x450   :  { %v991_v0 = vadd.f32 %v990_v54, %v4928_v25  ;;  %v3521_v25 = vld [vmem:[%s6098_s3 + $0x1b0] sm:$0xff] }
 0x451   :  { %v1190_v52 = vpop.f32.mrf.mxu2 }
 0x452   :  { %v5055_v50 = vadd.f32 %v1187_v51, %v991_v0 }
 0x454   :  { %1287 = vmatmul.f32.gmra.mxu3 %v3520_v12  ;;  %v3561_v12 = vld [vmem:[%s6098_s3 + $0x268] sm:$0xff] }
 0x456   :  { %1503 = vmatmul.f32.gmra.mxu2 %v3554_v15 }
 0x457   :  { %v993_v48 = vpop.f32.mrf.mxu3 }
 0x458   :  { %v994_v11 = vadd.f32 %v993_v48, %v4933_v41  ;;  %v3522_v41 = vld [vmem:[%s6098_s3 + $0x1b8] sm:$0xff] }
 0x459   :  { %v1193_v31 = vpop.f32.mrf.mxu2 }
 0x45a   :  { %v5064_v26 = vadd.f32 %v1190_v52, %v994_v11  ;;  %v3527_v52 = vld [vmem:[%s6098_s3 + $0x1e0] sm:$0xff]  ;;  %v3528_v11 = vld [vmem:[%s6098_s3 + $0x1e8] sm:$0xff] }
 0x45c   :  { %1290 = vmatmul.f32.gmra.mxu3 %v3521_v25 }
 0x45e   :  { %1506 = vmatmul.f32.gmra.mxu2 %v3555_v46 }
 0x45f   :  { %v996_v44 = vpop.f32.mrf.mxu3 }
 0x460   :  { %v997_v59 = vadd.f32 %v996_v44, %v4938_v60  ;;  %v3523_v60 = vld [vmem:[%s6098_s3 + $0x1c0] sm:$0xff]  ;;  %v3529_v44 = vld [vmem:[%s6098_s3 + $0x1f0] sm:$0xff] }
 0x461   :  { %v1196_v19 = vpop.f32.mrf.mxu2 }
 0x462   :  { %v5073_v61 = vadd.f32 %v1193_v31, %v997_v59  ;;  %v3562_v31 = vld [vmem:[%s6098_s3 + $0x270] sm:$0xff]  ;;  %v3563_v59 = vld [vmem:[%s6098_s3 + $0x278] sm:$0xff] }
 0x464   :  { %1293 = vmatmul.f32.gmra.mxu3 %v3522_v41 }
 0x466   :  { %1509 = vmatmul.f32.gmra.mxu2 %v3556_v29  ;;  %v3530_v29 = vld [vmem:[%s6098_s3 + $0x1f8] sm:$0xff] }
 0x467   :  { %v999_v42 = vpop.f32.mrf.mxu3 }
 0x468   :  { %v1000_v40 = vadd.f32 %v999_v42, %v4943_v37  ;;  %v3524_v37 = vld [vmem:[%s6098_s3 + $0x1c8] sm:$0xff] }
 0x469   :  { %v5076_v1 = vpop.f32.mrf.mxu2 }
 0x46a   :  { %v5084_v57 = vadd.f32 %v1196_v19, %v1000_v40 }
 0x46c   :  { %1296 = vmatmul.f32.gmra.mxu3 %v3523_v60 }
 0x46e   :  { %1512 = vmatmul.f32.gmra.mxu2 %v3557_v47 }
 0x46f   :  { %v5086_v2 = vpop.f32.mrf.mxu3 }
 0x471   :  { %v5088_v36 = vpop.f32.mrf.mxu2 }
 0x474   :  { %1299 = vmatmul.f32.gmra.mxu3 %v3524_v37 }
 0x476   :  { %1515 = vmatmul.f32.gmra.mxu2 %v3558_v16 }
 0x477   :  { %v5096_v21 = vpop.f32.mrf.mxu3 }
 0x479   :  { %v5098_v24 = vpop.f32.mrf.mxu2 }
 0x47c   :  { %1302 = vmatmul.f32.gmra.mxu3 %v3525_v22 }
 0x47e   :  { %1518 = vmatmul.f32.gmra.mxu2 %v3559_v27 }
 0x47f   :  { %v5106_v56 = vpop.f32.mrf.mxu3 }
 0x481   :  { %v5108_v51 = vpop.f32.mrf.mxu2 }
 0x484   :  { %1305 = vmatmul.f32.gmra.mxu3 %v3526_v3 }
 0x486   :  { %1521 = vmatmul.f32.gmra.mxu2 %v3560_v53 }
 0x487   :  { %v5116_v54 = vpop.f32.mrf.mxu3 }
 0x489   :  { %v5118_v0 = vpop.f32.mrf.mxu2 }
 0x48c   :  { %1308 = vmatmul.f32.gmra.mxu3 %v3527_v52  ;;  %v3597_v52 = vld [vmem:[%s6099_s4 + $0x28] sm:$0xff] }
 0x48d   :  { %1812 = vmatpush.msrb.mxu2 %v3597_v52 }
 0x48e   :  { %1524 = vmatmul.f32.gmra.mxu2 %v3561_v12 }
 0x48f   :  { %v5126_v15 = vpop.f32.mrf.mxu3 }
 0x491   :  { %v5128_v48 = vpop.f32.mrf.mxu2 }
 0x494   :  { %1311 = vmatmul.f32.gmra.mxu3 %v3528_v11 }
 0x496   :  { %1527 = vmatmul.f32.gmra.mxu2 %v3562_v31 }
 0x497   :  { %v5136_v25 = vpop.f32.mrf.mxu3 }
 0x499   :  { %v5138_v46 = vpop.f32.mrf.mxu2 }
 0x49c   :  { %1314 = vmatmul.f32.gmra.mxu3 %v3529_v44 }
 0x49e   :  { %1530 = vmatmul.f32.gmra.mxu2 %v3563_v59 }
 0x49f   :  { %v5146_v19 = vpop.f32.mrf.mxu3 }
 0x4a1   :  { %v5148_v41 = vpop.f32.mrf.mxu2 }
 0x4a4   :  { %1317 = vmatmul.f32.gmra.mxu3 %v3530_v29 }
 0x4a7   :  { %v5153_v42 = vpop.f32.mrf.mxu3 }
 0x4a9   :  { %v1486_v40 = vpop.f32.mrf.mxu2 }
 0x4ac   :  { %3565 = vmatmul.msk.f32.vlgmr.msrb.gmra.mxu3 %vm799_vm2, %v1486_v40 }
 0x4ad   :  { %2321 = vmatpush.msrb.mxu3 %v4495_v17 }
 0x4af   :  { %2322 = vmatpush.msrb.mxu3 %v4501_v62  ;;  %v1273_v60 = vpop.f32.mrf.mxu3 }
 0x4b0   :  { %3532 = vmatmul.msk.f32.vlgmr.msra.gmra.mxu1 %vm799_vm2, %v1273_v60  ;;  %v3614_v60 = vld [vmem:[%s6098_s3 + $0x300] sm:$0xff] }
 0x4b1   :  { %v1489_v47 = vpop.f32.mrf.mxu2  ;;  %2108 = vmatpush.msra.mxu1 %v4495_v17  ;;  %2323 = vmatpush.msrb.mxu3 %v4512_v5 }
 0x4b3   :  { %2109 = vmatpush.msra.mxu1 %v4501_v62  ;;  %2324 = vmatpush.msrb.mxu3 %v4523_v9 }
 0x4b4   :  { %3566 = vmatmul.msk.f32.gmra.mxu3 %vm799_vm2, %v1489_v47 }
 0x4b5   :  { %2110 = vmatpush.msra.mxu1 %v4512_v5  ;;  %2325 = vmatpush.msrb.mxu3 %v4534_v8 }
 0x4b7   :  { %2111 = vmatpush.msra.mxu1 %v4523_v9  ;;  %2326 = vmatpush.msrb.mxu3 %v4545_v6  ;;  %v1276_v37 = vpop.f32.mrf.mxu3 }
 0x4b8   :  { %3533 = vmatmul.msk.f32.gmra.mxu1 %vm799_vm2, %v1276_v37  ;;  %v3581_v37 = vld [vmem:[%s6098_s3 + $0x280] sm:$0xff] }
 0x4b9   :  { %v1492_v17 = vpop.f32.mrf.mxu2  ;;  %2112 = vmatpush.msra.mxu1 %v4534_v8  ;;  %2327 = vmatpush.msrb.mxu3 %v4556_v45 }
 0x4bb   :  { %2113 = vmatpush.msra.mxu1 %v4545_v6  ;;  %2328 = vmatpush.msrb.mxu3 %v4567_v20 }
 0x4bc   :  { %3567 = vmatmul.msk.f32.gmra.mxu3 %vm799_vm2, %v1492_v17 }
 0x4bd   :  { %2114 = vmatpush.msra.mxu1 %v4556_v45  ;;  %2329 = vmatpush.msrb.mxu3 %v4578_v49 }
 0x4bf   :  { %2115 = vmatpush.msra.mxu1 %v4567_v20  ;;  %2330 = vmatpush.msrb.mxu3 %v4589_v33  ;;  %v1279_v62 = vpop.f32.mrf.mxu3 }
 0x4c0   :  { %3534 = vmatmul.msk.f32.gmra.mxu1 %vm799_vm2, %v1279_v62 }
 0x4c1   :  { %v1495_v5 = vpop.f32.mrf.mxu2  ;;  %2116 = vmatpush.msra.mxu1 %v4578_v49  ;;  %2331 = vmatpush.msrb.mxu3 %v4600_v13 }
 0x4c3   :  { %2117 = vmatpush.msra.mxu1 %v4589_v33  ;;  %2332 = vmatpush.msrb.mxu3 %v4610_v38 }
 0x4c4   :  { %3568 = vmatmul.msk.f32.gmra.mxu3 %vm799_vm2, %v1495_v5 }
 0x4c5   :  { %2118 = vmatpush.msra.mxu1 %v4600_v13  ;;  %2333 = vmatpush.msrb.mxu3 %v4615_v39 }
 0x4c7   :  { %2119 = vmatpush.msra.mxu1 %v4610_v38  ;;  %2334 = vmatpush.msrb.mxu3 %v4619_v34  ;;  %v1282_v9 = vpop.f32.mrf.mxu3 }
 0x4c8   :  { %3535 = vmatmul.msk.f32.gmra.mxu1 %vm799_vm2, %v1282_v9  ;;  %v3615_v9 = vld [vmem:[%s6098_s3 + $0x308] sm:$0xff] }
 0x4c9   :  { %v1498_v8 = vpop.f32.mrf.mxu2  ;;  %2120 = vmatpush.msra.mxu1 %v4615_v39  ;;  %2335 = vmatpush.msrb.mxu3 %v4623_v28 }
 0x4cb   :  { %2121 = vmatpush.msra.mxu1 %v4619_v34  ;;  %2336 = vmatpush.msrb.mxu3 %v4627_v58 }
 0x4cc   :  { %3569 = vmatmul.msk.f32.gmra.mxu3 %vm799_vm2, %v1498_v8 }
 0x4cd   :  { %2122 = vmatpush.msra.mxu1 %v4623_v28 }
 0x4cf   :  { %2123 = vmatpush.msra.mxu1 %v4627_v58  ;;  %v1285_v6 = vpop.f32.mrf.mxu3 }
 0x4d0   :  { %3536 = vmatmul.msk.f32.gmra.mxu1 %vm799_vm2, %v1285_v6  ;;  %v3582_v6 = vld [vmem:[%s6098_s3 + $0x288] sm:$0xff] }
 0x4d1   :  { %v1501_v45 = vpop.f32.mrf.mxu2 }
 0x4d4   :  { %3570 = vmatmul.msk.f32.gmra.mxu3 %vm799_vm2, %v1501_v45 }
 0x4d7   :  { %v1288_v20 = vpop.f32.mrf.mxu3 }
 0x4d8   :  { %3537 = vmatmul.msk.f32.gmra.mxu1 %vm799_vm2, %v1288_v20 }
 0x4d9   :  { %v1504_v49 = vpop.f32.mrf.mxu2 }
 0x4dc   :  { %3571 = vmatmul.msk.f32.gmra.mxu3 %vm799_vm2, %v1504_v49 }
 0x4df   :  { %v1291_v33 = vpop.f32.mrf.mxu3 }
 0x4e0   :  { %3538 = vmatmul.msk.f32.gmra.mxu1 %vm799_vm2, %v1291_v33 }
 0x4e1   :  { %v1507_v13 = vpop.f32.mrf.mxu2 }
 0x4e4   :  { %3572 = vmatmul.msk.f32.gmra.mxu3 %vm799_vm2, %v1507_v13  ;;  %v3583_v13 = vld [vmem:[%s6098_s3 + $0x290] sm:$0xff] }
 0x4e7   :  { %v1294_v38 = vpop.f32.mrf.mxu3 }
 0x4e8   :  { %3539 = vmatmul.msk.f32.gmra.mxu1 %vm799_vm2, %v1294_v38 }
 0x4e9   :  { %v1510_v39 = vpop.f32.mrf.mxu2 }
 0x4ec   :  { %3573 = vmatmul.msk.f32.gmra.mxu3 %vm799_vm2, %v1510_v39 }
 0x4ef   :  { %v1297_v34 = vpop.f32.mrf.mxu3 }
 0x4f0   :  { %3540 = vmatmul.msk.f32.gmra.mxu1 %vm799_vm2, %v1297_v34 }
 0x4f1   :  { %v1513_v28 = vpop.f32.mrf.mxu2 }
 0x4f4   :  { %3574 = vmatmul.msk.f32.gmra.mxu3 %vm799_vm2, %v1513_v28 }
 0x4f7   :  { %v1300_v58 = vpop.f32.mrf.mxu3 }
 0x4f8   :  { %3541 = vmatmul.msk.f32.gmra.mxu1 %vm799_vm2, %v1300_v58  ;;  %v3584_v58 = vld [vmem:[%s6098_s3 + $0x298] sm:$0xff] }
 0x4f9   :  { %v1516_v16 = vpop.f32.mrf.mxu2 }
 0x4fc   :  { %3575 = vmatmul.msk.f32.gmra.mxu3 %vm799_vm2, %v1516_v16 }
 0x4ff   :  { %v1303_v22 = vpop.f32.mrf.mxu3 }
 0x500   :  { %3542 = vmatmul.msk.f32.gmra.mxu1 %vm799_vm2, %v1303_v22 }
 0x501   :  { %v1519_v27 = vpop.f32.mrf.mxu2 }
 0x504   :  { %3576 = vmatmul.msk.f32.gmra.mxu3 %vm799_vm2, %v1519_v27 }
 0x507   :  { %v1306_v3 = vpop.f32.mrf.mxu3 }
 0x508   :  { %3543 = vmatmul.msk.f32.gmra.mxu1 %vm799_vm2, %v1306_v3 }
 0x509   :  { %v1522_v53 = vpop.f32.mrf.mxu2 }
 0x50c   :  { %3577 = vmatmul.msk.f32.gmra.mxu3 %vm799_vm2, %v1522_v53  ;;  %v3585_v53 = vld [vmem:[%s6098_s3 + $0x2a0] sm:$0xff] }
 0x50f   :  { %v1309_v12 = vpop.f32.mrf.mxu3 }
 0x510   :  { %3544 = vmatmul.msk.f32.gmra.mxu1 %vm799_vm2, %v1309_v12 }
 0x511   :  { %v1525_v11 = vpop.f32.mrf.mxu2 }
 0x514   :  { %3578 = vmatmul.msk.f32.gmra.mxu3 %vm799_vm2, %v1525_v11 }
 0x517   :  { %v1312_v31 = vpop.f32.mrf.mxu3 }
 0x518   :  { %3545 = vmatmul.msk.f32.gmra.mxu1 %vm799_vm2, %v1312_v31 }
 0x519   :  { %v1528_v44 = vpop.f32.mrf.mxu2 }
 0x51c   :  { %3579 = vmatmul.msk.f32.gmra.mxu3 %vm799_vm2, %v1528_v44  ;;  %v3586_v44 = vld [vmem:[%s6098_s3 + $0x2a8] sm:$0xff] }
 0x51f   :  { %v1315_v59 = vpop.f32.mrf.mxu3 }
 0x520   :  { %3546 = vmatmul.msk.f32.gmra.mxu1 %vm799_vm2, %v1315_v59 }
 0x521   :  { %v1531_v29 = vpop.f32.mrf.mxu2 }
 0x524   :  { %3580 = vmatmul.msk.f32.gmra.mxu3 %vm799_vm2, %v1531_v29 }
 0x527   :  { %v1318_v40 = vpop.f32.mrf.mxu3 }
 0x528   :  { %3547 = vmatmul.msk.f32.gmra.mxu1 %vm799_vm2, %v1318_v40 }
 0x52c   :  { %1911 = vmatmul.f32.vlgmr.msra.gmra.mxu3 %v3614_v60 }
 0x52d   :  { %v1388_v47 = vpop.f32.mrf.mxu1 }
 0x52e   :  { %v1436_v17 = vadd.f32 %v1388_v47, %v5006_v4  ;;  %v3616_v4 = vld [vmem:[%s6098_s3 + $0x310] sm:$0xff] }
 0x52f   :  { %v1601_v62 = vpop.f32.mrf.mxu3  ;;  %v3587_v47 = vld [vmem:[%s6098_s3 + $0x2b0] sm:$0xff] }
 0x530   :  { %v5229_v5 = vadd.f32 %v1601_v62, %v1436_v17  ;;  %1698 = vmatmul.f32.vlgmr.msrb.gmra.mxu1 %v3581_v37 }
 0x534   :  { %1914 = vmatmul.f32.gmra.mxu3 %v3615_v9 }
 0x535   :  { %v1391_v8 = vpop.f32.mrf.mxu1 }
 0x536   :  { %v1437_v45 = vadd.f32 %v1391_v8, %v5019_v14  ;;  %v3617_v14 = vld [vmem:[%s6098_s3 + $0x318] sm:$0xff] }
 0x537   :  { %v1604_v20 = vpop.f32.mrf.mxu3  ;;  %v3588_v8 = vld [vmem:[%s6098_s3 + $0x2b8] sm:$0xff] }
 0x538   :  { %v5238_v49 = vadd.f32 %v1604_v20, %v1437_v45  ;;  %1701 = vmatmul.f32.gmra.mxu1 %v3582_v6 }
 0x53c   :  { %1917 = vmatmul.f32.gmra.mxu3 %v3616_v4  ;;  %v3622_v4 = vld [vmem:[%s6098_s3 + $0x340] sm:$0xff] }
 0x53d   :  { %v1394_v33 = vpop.f32.mrf.mxu1 }
 0x53e   :  { %v1438_v38 = vadd.f32 %v1394_v33, %v5032_v30  ;;  %v3618_v30 = vld [vmem:[%s6098_s3 + $0x320] sm:$0xff] }
 0x53f   :  { %v1607_v39 = vpop.f32.mrf.mxu3 }
 0x540   :  { %v5247_v34 = vadd.f32 %v1607_v39, %v1438_v38  ;;  %1704 = vmatmul.f32.gmra.mxu1 %v3583_v13  ;;  %v3589_v38 = vld [vmem:[%s6098_s3 + $0x2c0] sm:$0xff] }
 0x544   :  { %1920 = vmatmul.f32.gmra.mxu3 %v3617_v14  ;;  %v3623_v14 = vld [vmem:[%s6098_s3 + $0x348] sm:$0xff] }
 0x545   :  { %v1397_v28 = vpop.f32.mrf.mxu1 }
 0x546   :  { %v1439_v16 = vadd.f32 %v1397_v28, %v5045_v23  ;;  %v3619_v23 = vld [vmem:[%s6098_s3 + $0x328] sm:$0xff] }
 0x547   :  { %v1610_v22 = vpop.f32.mrf.mxu3 }
 0x548   :  { %v5256_v27 = vadd.f32 %v1610_v22, %v1439_v16  ;;  %1707 = vmatmul.f32.gmra.mxu1 %v3584_v58  ;;  %v3590_v58 = vld [vmem:[%s6098_s3 + $0x2c8] sm:$0xff] }
 0x54c   :  { %1923 = vmatmul.f32.gmra.mxu3 %v3618_v30  ;;  %v3624_v30 = vld [vmem:[%s6098_s3 + $0x350] sm:$0xff] }
 0x54d   :  { %v1400_v3 = vpop.f32.mrf.mxu1 }
 0x54e   :  { %v1440_v52 = vadd.f32 %v1400_v3, %v5055_v50  ;;  %v3620_v50 = vld [vmem:[%s6098_s3 + $0x330] sm:$0xff] }
 0x54f   :  { %v1613_v12 = vpop.f32.mrf.mxu3 }
 0x550   :  { %v5265_v11 = vadd.f32 %v1613_v12, %v1440_v52  ;;  %1710 = vmatmul.f32.gmra.mxu1 %v3585_v53  ;;  %v3591_v53 = vld [vmem:[%s6098_s3 + $0x2d0] sm:$0xff] }
 0x554   :  { %1926 = vmatmul.f32.gmra.mxu3 %v3619_v23  ;;  %v3625_v23 = vld [vmem:[%s6098_s3 + $0x358] sm:$0xff] }
 0x555   :  { %v1403_v31 = vpop.f32.mrf.mxu1 }
 0x556   :  { %v1441_v59 = vadd.f32 %v1403_v31, %v5064_v26  ;;  %v3621_v26 = vld [vmem:[%s6098_s3 + $0x338] sm:$0xff] }
 0x557   :  { %v1616_v29 = vpop.f32.mrf.mxu3 }
 0x558   :  { %v5274_v40 = vadd.f32 %v1616_v29, %v1441_v59  ;;  %1713 = vmatmul.f32.gmra.mxu1 %v3586_v44  ;;  %v3592_v44 = vld [vmem:[%s6098_s3 + $0x2d8] sm:$0xff] }
 0x55c   :  { %1929 = vmatmul.f32.gmra.mxu3 %v3620_v50  ;;  %v3626_v50 = vld [vmem:[%s6098_s3 + $0x360] sm:$0xff] }
 0x55d   :  { %v1406_v60 = vpop.f32.mrf.mxu1 }
 0x55e   :  { %v1442_v37 = vadd.f32 %v1406_v60, %v5073_v61  ;;  %v1003_v61 = vadd.f32 %v5086_v2, %v4948_v35  ;;  %v1006_v35 = vadd.f32 %v5096_v21, %v4953_v7  ;;  %v1009_v7 = vadd.f32 %v5106_v56, %v4958_v18 }
 0x55f   :  { %v1619_v17 = vpop.f32.mrf.mxu3  ;;  %v1012_v18 = vadd.f32 %v5116_v54, %v4963_v63  ;;  %v1015_v63 = vadd.f32 %v5126_v15, %v4971_v32  ;;  %v3663_v32 = vld [vmem:[%s6099_s4 + $0x38] sm:$0xff] }
 0x560   :  { %v5283_v62 = vadd.f32 %v1619_v17, %v1442_v37  ;;  %1716 = vmatmul.f32.gmra.mxu1 %v3587_v47  ;;  %v1231_v33 = vadd.f32 %v5076_v1, %v1003_v61  ;;  %v1232_v1 = vadd.f32 %v5088_v36, %v1006_v35  ;;  %v1233_v36 = vadd.f32 %v5098_v24, %v1009_v7  ;;  %v3593_v47 = vld [vmem:[%s6098_s3 + $0x2e0] sm:$0xff]  ;;  %v3629_v35 = vld [vmem:[%s6098_s3 + $0x378] sm:$0xff]  ;;  %v3681_v7 = vld [vmem:[%s6098_s3 + $0x408] sm:$0xff] }
 0x561   :  { %v1234_v24 = vadd.f32 %v5108_v51, %v1012_v18  ;;  %v1235_v51 = vadd.f32 %v5118_v0, %v1015_v63  ;;  %2238 = vmatpush.msra.mxu2 %v3663_v32  ;;  %v1018_v17 = vadd.f32 %v5136_v25, %v4976_v10  ;;  %v3627_v0 = vld [vmem:[%s6098_s3 + $0x368] sm:$0xff]  ;;  %v3696_v10 = vld [vmem:[%s6099_s4 + $0x40] sm:$0xff]  ;;  %v1021_v61 = vadd.f32 %v5146_v19, %v4981_v43  ;;  %v3686_v32 = vld [vmem:[%s6098_s3 + $0x430] sm:$0xff] }
 0x562   :  { %2451 = vmatpush.msra.mxu0 %v3696_v10  ;;  %v1024_v43 = vadd.f32 %v5153_v42, %v4988_v55  ;;  %v3680_v55 = vld [vmem:[%s6098_s3 + $0x400] sm:$0xff] }
 0x563   :  { %v3651_v63 = vld [vmem:[%s6098_s3 + $0x3a0] sm:$0xff] }
 0x564   :  { %1932 = vmatmul.f32.gmra.mxu3 %v3621_v26  ;;  %v3688_v10 = vld [vmem:[%s6098_s3 + $0x440] sm:$0xff] }
 0x565   :  { %v1409_v9 = vpop.f32.mrf.mxu1 }
 0x566   :  { %v1443_v6 = vadd.f32 %v1409_v9, %v5084_v57  ;;  %v1236_v9 = vadd.f32 %v5128_v48, %v1018_v17  ;;  %v3628_v48 = vld [vmem:[%s6098_s3 + $0x370] sm:$0xff] }
 0x567   :  { %v1622_v45 = vpop.f32.mrf.mxu3  ;;  %v3653_v17 = vld [vmem:[%s6098_s3 + $0x3b0] sm:$0xff] }
 0x568   :  { %v5294_v20 = vadd.f32 %v1622_v45, %v1443_v6  ;;  %1719 = vmatmul.f32.gmra.mxu1 %v3588_v8  ;;  %v3594_v6 = vld [vmem:[%s6098_s3 + $0x2e8] sm:$0xff] }
 0x56c   :  { %1935 = vmatmul.f32.gmra.mxu3 %v3622_v4 }
 0x56d   :  { %v1412_v13 = vpop.f32.mrf.mxu1 }
 0x56e   :  { %v1444_v57 = vadd.f32 %v1412_v13, %v1231_v33  ;;  %v1237_v33 = vadd.f32 %v5138_v46, %v1021_v61  ;;  %v1238_v46 = vadd.f32 %v5148_v41, %v1024_v43  ;;  %v3647_v41 = vld [vmem:[%s6098_s3 + $0x380] sm:$0xff] }
 0x56f   :  { %v1625_v39 = vpop.f32.mrf.mxu3  ;;  %v3655_v61 = vld [vmem:[%s6098_s3 + $0x3c0] sm:$0xff] }
 0x570   :  { %v5305_v2 = vadd.f32 %v1625_v39, %v1444_v57  ;;  %1722 = vmatmul.f32.gmra.mxu1 %v3589_v38  ;;  %v3595_v38 = vld [vmem:[%s6098_s3 + $0x2f0] sm:$0xff] }
 0x574   :  { %1938 = vmatmul.f32.gmra.mxu3 %v3623_v14 }
 0x575   :  { %v1415_v28 = vpop.f32.mrf.mxu1 }
 0x576   :  { %v1445_v16 = vadd.f32 %v1415_v28, %v1232_v1  ;;  %v3596_v1 = vld [vmem:[%s6098_s3 + $0x2f8] sm:$0xff] }
 0x577   :  { %v1628_v22 = vpop.f32.mrf.mxu3 }
 0x578   :  { %v5316_v21 = vadd.f32 %v1628_v22, %v1445_v16  ;;  %1725 = vmatmul.f32.gmra.mxu1 %v3590_v58 }
 0x57c   :  { %1941 = vmatmul.f32.gmra.mxu3 %v3624_v30 }
 0x57d   :  { %v1418_v3 = vpop.f32.mrf.mxu1 }
 0x57e   :  { %v1446_v52 = vadd.f32 %v1418_v3, %v1233_v36  ;;  %v3648_v36 = vld [vmem:[%s6098_s3 + $0x388] sm:$0xff] }
 0x57f   :  { %v1631_v12 = vpop.f32.mrf.mxu3 }
 0x580   :  { %v5327_v56 = vadd.f32 %v1631_v12, %v1446_v52  ;;  %1728 = vmatmul.f32.gmra.mxu1 %v3591_v53  ;;  %v3682_v53 = vld [vmem:[%s6098_s3 + $0x410] sm:$0xff] }
 0x581   :  { %v3649_v12 = vld [vmem:[%s6098_s3 + $0x390] sm:$0xff] }
 0x584   :  { %1944 = vmatmul.f32.gmra.mxu3 %v3625_v23  ;;  %v3683_v23 = vld [vmem:[%s6098_s3 + $0x418] sm:$0xff] }
 0x585   :  { %v1421_v31 = vpop.f32.mrf.mxu1 }
 0x586   :  { %v1447_v59 = vadd.f32 %v1421_v31, %v1234_v24  ;;  %v3650_v31 = vld [vmem:[%s6098_s3 + $0x398] sm:$0xff] }
 0x587   :  { %v1634_v29 = vpop.f32.mrf.mxu3 }
 0x588   :  { %v5338_v54 = vadd.f32 %v1634_v29, %v1447_v59  ;;  %1731 = vmatmul.f32.gmra.mxu1 %v3592_v44  ;;  %v3684_v59 = vld [vmem:[%s6098_s3 + $0x420] sm:$0xff] }
 0x58c   :  { %1947 = vmatmul.f32.gmra.mxu3 %v3626_v50 }
 0x58d   :  { %v1424_v60 = vpop.f32.mrf.mxu1 }
 0x58e   :  { %v1448_v37 = vadd.f32 %v1424_v60, %v1235_v51  ;;  %v3685_v51 = vld [vmem:[%s6098_s3 + $0x428] sm:$0xff] }
 0x58f   :  { %v1637_v15 = vpop.f32.mrf.mxu3 }
 0x590   :  { %v5352_v26 = vadd.f32 %v1637_v15, %v1448_v37  ;;  %1734 = vmatmul.f32.gmra.mxu1 %v3593_v47  ;;  %v3652_v47 = vld [vmem:[%s6098_s3 + $0x3a8] sm:$0xff] }
 0x594   :  { %1950 = vmatmul.f32.gmra.mxu3 %v3627_v0 }
 0x595   :  { %v1427_v8 = vpop.f32.mrf.mxu1 }
 0x596   :  { %v1449_v45 = vadd.f32 %v1427_v8, %v1236_v9  ;;  %v3687_v9 = vld [vmem:[%s6098_s3 + $0x438] sm:$0xff] }
 0x597   :  { %v1640_v25 = vpop.f32.mrf.mxu3 }
 0x598   :  { %v5366_v4 = vadd.f32 %v1640_v25, %v1449_v45  ;;  %1737 = vmatmul.f32.gmra.mxu1 %v3594_v6  ;;  %v3654_v6 = vld [vmem:[%s6098_s3 + $0x3b8] sm:$0xff] }
 0x59c   :  { %1953 = vmatmul.f32.gmra.mxu3 %v3628_v48 }
 0x59d   :  { %v1430_v13 = vpop.f32.mrf.mxu1 }
 0x59e   :  { %v1450_v57 = vadd.f32 %v1430_v13, %v1237_v33  ;;  %v3689_v33 = vld [vmem:[%s6098_s3 + $0x448] sm:$0xff] }
 0x59f   :  { %v1643_v39 = vpop.f32.mrf.mxu3 }
 0x5a0   :  { %v5377_v19 = vadd.f32 %v1643_v39, %v1450_v57  ;;  %1740 = vmatmul.f32.gmra.mxu1 %v3595_v38  ;;  %v3656_v38 = vld [vmem:[%s6098_s3 + $0x3c8] sm:$0xff]  ;;  %v3690_v39 = vld [vmem:[%s6098_s3 + $0x450] sm:$0xff] }
 0x5a4   :  { %1956 = vmatmul.f32.gmra.mxu3 %v3629_v35  ;;  %v3657_v35 = vld [vmem:[%s6098_s3 + $0x3d0] sm:$0xff] }
 0x5a5   :  { %v1433_v14 = vpop.f32.mrf.mxu1 }
 0x5a6   :  { %v1451_v28 = vadd.f32 %v1433_v14, %v1238_v46  ;;  %v3691_v14 = vld [vmem:[%s6098_s3 + $0x458] sm:$0xff] }
 0x5a7   :  { %v1646_v58 = vpop.f32.mrf.mxu3 }
 0x5a8   :  { %v5386_v16 = vadd.f32 %v1646_v58, %v1451_v28  ;;  %1743 = vmatmul.f32.gmra.mxu1 %v3596_v1  ;;  %v3658_v28 = vld [vmem:[%s6098_s3 + $0x3d8] sm:$0xff] }
 0x5ac   :  { %2337 = vmatmul.f32.vlgmr.msrb.gmra.mxu3 %v3680_v55  ;;  %v3692_v55 = vld [vmem:[%s6098_s3 + $0x460] sm:$0xff] }
 0x5ad   :  { %v1699_v42 = vpop.f32.mrf.mxu1 }
 0x5ae   :  { %3598 = vmatmul.msk.f32.vlgmr.msrb.gmra.mxu2 %vm799_vm2, %v1699_v42 }
 0x5af   :  { %v1912_v22 = vpop.f32.mrf.mxu3 }
 0x5b0   :  { %2124 = vmatmul.f32.vlgmr.msra.gmra.mxu1 %v3647_v41  ;;  %3631 = vmatmul.msk.f32.vlgmr.msrb.gmra.mxu0 %vm799_vm2, %v1912_v22  ;;  %v3659_v41 = vld [vmem:[%s6098_s3 + $0x3e0] sm:$0xff] }
 0x5b4   :  { %2340 = vmatmul.f32.gmra.mxu3 %v3681_v7  ;;  %v3693_v7 = vld [vmem:[%s6098_s3 + $0x468] sm:$0xff] }
 0x5b5   :  { %v1702_v30 = vpop.f32.mrf.mxu1 }
 0x5b6   :  { %3599 = vmatmul.msk.f32.gmra.mxu2 %vm799_vm2, %v1702_v30 }
 0x5b7   :  { %v1915_v3 = vpop.f32.mrf.mxu3 }
 0x5b8   :  { %2127 = vmatmul.f32.gmra.mxu1 %v3648_v36  ;;  %3632 = vmatmul.msk.f32.gmra.mxu0 %vm799_vm2, %v1915_v3  ;;  %v3660_v36 = vld [vmem:[%s6098_s3 + $0x3e8] sm:$0xff] }
 0x5bc   :  { %2343 = vmatmul.f32.gmra.mxu3 %v3682_v53  ;;  %v3694_v53 = vld [vmem:[%s6098_s3 + $0x470] sm:$0xff] }
 0x5bd   :  { %v1705_v52 = vpop.f32.mrf.mxu1 }
 0x5be   :  { %3600 = vmatmul.msk.f32.gmra.mxu2 %vm799_vm2, %v1705_v52 }
 0x5bf   :  { %v1918_v18 = vpop.f32.mrf.mxu3 }
 0x5c0   :  { %2130 = vmatmul.f32.gmra.mxu1 %v3649_v12  ;;  %3633 = vmatmul.msk.f32.gmra.mxu0 %vm799_vm2, %v1918_v18  ;;  %v3661_v12 = vld [vmem:[%s6098_s3 + $0x3f0] sm:$0xff] }
 0x5c4   :  { %2346 = vmatmul.f32.gmra.mxu3 %v3683_v23  ;;  %v3695_v23 = vld [vmem:[%s6098_s3 + $0x478] sm:$0xff] }
 0x5c5   :  { %v1708_v24 = vpop.f32.mrf.mxu1 }
 0x5c6   :  { %3601 = vmatmul.msk.f32.gmra.mxu2 %vm799_vm2, %v1708_v24 }
 0x5c7   :  { %v1921_v44 = vpop.f32.mrf.mxu3 }
 0x5c8   :  { %2133 = vmatmul.f32.gmra.mxu1 %v3650_v31  ;;  %3634 = vmatmul.msk.f32.gmra.mxu0 %vm799_vm2, %v1921_v44  ;;  %v3662_v31 = vld [vmem:[%s6098_s3 + $0x3f8] sm:$0xff]  ;;  %s3343_s3 = sshll.u32 %s6106_s11, 4  ;;  %s3344_s3 = int_to_ptr.hbm [resolvable:$true] %s3343_s3 }
 0x5cc   :  { %2349 = vmatmul.f32.gmra.mxu3 %v3684_v59 }
 0x5cd   :  { %v1711_v29 = vpop.f32.mrf.mxu1 }
 0x5ce   :  { %3602 = vmatmul.msk.f32.gmra.mxu2 %vm799_vm2, %v1711_v29 }
 0x5cf   :  { %v1924_v50 = vpop.f32.mrf.mxu3 }
 0x5d0   :  { %2136 = vmatmul.f32.gmra.mxu1 %v3651_v63  ;;  %3635 = vmatmul.msk.f32.gmra.mxu0 %vm799_vm2, %v1924_v50 }
 0x5d4   :  { %2352 = vmatmul.f32.gmra.mxu3 %v3685_v51 }
 0x5d5   :  { %v1714_v60 = vpop.f32.mrf.mxu1 }
 0x5d6   :  { %3603 = vmatmul.msk.f32.gmra.mxu2 %vm799_vm2, %v1714_v60 }
 0x5d7   :  { %v1927_v37 = vpop.f32.mrf.mxu3 }
 0x5d8   :  { %2139 = vmatmul.f32.gmra.mxu1 %v3652_v47  ;;  %3636 = vmatmul.msk.f32.gmra.mxu0 %vm799_vm2, %v1927_v37 }
 0x5dc   :  { %2355 = vmatmul.f32.gmra.mxu3 %v3686_v32 }
 0x5dd   :  { %v1717_v15 = vpop.f32.mrf.mxu1 }
 0x5de   :  { %3604 = vmatmul.msk.f32.gmra.mxu2 %vm799_vm2, %v1717_v15 }
 0x5df   :  { %v1930_v0 = vpop.f32.mrf.mxu3 }
 0x5e0   :  { %2142 = vmatmul.f32.gmra.mxu1 %v3653_v17  ;;  %3637 = vmatmul.msk.f32.gmra.mxu0 %vm799_vm2, %v1930_v0 }
 0x5e4   :  { %2358 = vmatmul.f32.gmra.mxu3 %v3687_v9 }
 0x5e5   :  { %v1720_v8 = vpop.f32.mrf.mxu1 }
 0x5e6   :  { %3605 = vmatmul.msk.f32.gmra.mxu2 %vm799_vm2, %v1720_v8 }
 0x5e7   :  { %v1933_v45 = vpop.f32.mrf.mxu3 }
 0x5e8   :  { %2145 = vmatmul.f32.gmra.mxu1 %v3654_v6  ;;  %3638 = vmatmul.msk.f32.gmra.mxu0 %vm799_vm2, %v1933_v45 }
 0x5ec   :  { %2361 = vmatmul.f32.gmra.mxu3 %v3688_v10 }
 0x5ed   :  { %v1723_v25 = vpop.f32.mrf.mxu1 }
 0x5ee   :  { %3606 = vmatmul.msk.f32.gmra.mxu2 %vm799_vm2, %v1723_v25 }
 0x5ef   :  { %v1936_v48 = vpop.f32.mrf.mxu3 }
 0x5f0   :  { %2148 = vmatmul.f32.gmra.mxu1 %v3655_v61  ;;  %3639 = vmatmul.msk.f32.gmra.mxu0 %vm799_vm2, %v1936_v48 }
 0x5f4   :  { %2364 = vmatmul.f32.gmra.mxu3 %v3689_v33 }
 0x5f5   :  { %v1726_v13 = vpop.f32.mrf.mxu1 }
 0x5f6   :  { %3607 = vmatmul.msk.f32.gmra.mxu2 %vm799_vm2, %v1726_v13 }
 0x5f7   :  { %v1939_v57 = vpop.f32.mrf.mxu3 }
 0x5f8   :  { %2151 = vmatmul.f32.gmra.mxu1 %v3656_v38  ;;  %3640 = vmatmul.msk.f32.gmra.mxu0 %vm799_vm2, %v1939_v57 }
 0x5fc   :  { %2367 = vmatmul.f32.gmra.mxu3 %v3690_v39 }
 0x5fd   :  { %v1729_v43 = vpop.f32.mrf.mxu1 }
 0x5fe   :  { %3608 = vmatmul.msk.f32.gmra.mxu2 %vm799_vm2, %v1729_v43 }
 0x5ff   :  { %v1942_v46 = vpop.f32.mrf.mxu3 }
 0x600   :  { %2154 = vmatmul.f32.gmra.mxu1 %v3657_v35  ;;  %3641 = vmatmul.msk.f32.gmra.mxu0 %vm799_vm2, %v1942_v46 }
 0x604   :  { %2370 = vmatmul.f32.gmra.mxu3 %v3691_v14 }
 0x605   :  { %v1732_v1 = vpop.f32.mrf.mxu1 }
 0x606   :  { %3609 = vmatmul.msk.f32.gmra.mxu2 %vm799_vm2, %v1732_v1 }
 0x607   :  { %v1945_v58 = vpop.f32.mrf.mxu3 }
 0x608   :  { %2157 = vmatmul.f32.gmra.mxu1 %v3658_v28  ;;  %3642 = vmatmul.msk.f32.gmra.mxu0 %vm799_vm2, %v1945_v58 }
 0x60c   :  { %2373 = vmatmul.f32.gmra.mxu3 %v3692_v55 }
 0x60d   :  { %v1735_v42 = vpop.f32.mrf.mxu1 }
 0x60e   :  { %3610 = vmatmul.msk.f32.gmra.mxu2 %vm799_vm2, %v1735_v42 }
 0x60f   :  { %v1948_v22 = vpop.f32.mrf.mxu3 }
 0x610   :  { %2160 = vmatmul.f32.gmra.mxu1 %v3659_v41  ;;  %3643 = vmatmul.msk.f32.gmra.mxu0 %vm799_vm2, %v1948_v22 }
 0x614   :  { %2376 = vmatmul.f32.gmra.mxu3 %v3693_v7 }
 0x615   :  { %v1738_v30 = vpop.f32.mrf.mxu1 }
 0x616   :  { %3611 = vmatmul.msk.f32.gmra.mxu2 %vm799_vm2, %v1738_v30 }
 0x617   :  { %v1951_v3 = vpop.f32.mrf.mxu3 }
 0x618   :  { %2163 = vmatmul.f32.gmra.mxu1 %v3660_v36  ;;  %3644 = vmatmul.msk.f32.gmra.mxu0 %vm799_vm2, %v1951_v3 }
 0x61c   :  { %2379 = vmatmul.f32.gmra.mxu3 %v3694_v53 }
 0x61d   :  { %v1741_v52 = vpop.f32.mrf.mxu1 }
 0x61e   :  { %3612 = vmatmul.msk.f32.gmra.mxu2 %vm799_vm2, %v1741_v52 }
 0x61f   :  { %v1954_v18 = vpop.f32.mrf.mxu3 }
 0x620   :  { %2166 = vmatmul.f32.gmra.mxu1 %v3661_v12  ;;  %3645 = vmatmul.msk.f32.gmra.mxu0 %vm799_vm2, %v1954_v18 }
 0x624   :  { %2382 = vmatmul.f32.gmra.mxu3 %v3695_v23 }
 0x625   :  { %v1744_v24 = vpop.f32.mrf.mxu1 }
 0x626   :  { %3613 = vmatmul.msk.f32.gmra.mxu2 %vm799_vm2, %v1744_v24 }
 0x627   :  { %v1957_v44 = vpop.f32.mrf.mxu3 }
 0x628   :  { %2169 = vmatmul.f32.gmra.mxu1 %v3662_v31  ;;  %3646 = vmatmul.msk.f32.gmra.mxu0 %vm799_vm2, %v1957_v44 }
 0x62d   :  { %v2125_v59 = vpop.f32.mrf.mxu1  ;;  %v2027_v29 = vpop.f32.mrf.mxu0 }
 0x62e   :  { %3664 = vmatmul.msk.f32.vlgmr.msra.gmra.mxu2 %vm799_vm2, %v2125_v59 }
 0x62f   :  { %v2338_v63 = vpop.f32.mrf.mxu3 }
 0x630   :  { %3697 = vmatmul.msk.f32.vlgmr.msra.gmra.mxu0 %vm799_vm2, %v2338_v63 }
 0x631   :  { %v1814_v50 = vpop.f32.mrf.mxu2 }
 0x632   :  { %v1862_v51 = vadd.f32 %v1814_v50, %v5229_v5 }
 0x634   :  { %v5519_v60 = vadd.f32 %v2027_v29, %v1862_v51 }
 0x635   :  { %v2128_v47 = vpop.f32.mrf.mxu1  ;;  %v2030_v37 = vpop.f32.mrf.mxu0 }
 0x636   :  { %3665 = vmatmul.msk.f32.gmra.mxu2 %vm799_vm2, %v2128_v47 }
 0x637   :  { %v2341_v32 = vpop.f32.mrf.mxu3 }
 0x638   :  { %3698 = vmatmul.msk.f32.gmra.mxu0 %vm799_vm2, %v2341_v32 }
 0x639   :  { %v1817_v15 = vpop.f32.mrf.mxu2 }
 0x63a   :  { %v1863_v17 = vadd.f32 %v1817_v15, %v5238_v49 }
 0x63c   :  { %v5524_v0 = vadd.f32 %v2030_v37, %v1863_v17 }
 0x63d   :  { %v2131_v9 = vpop.f32.mrf.mxu1  ;;  %v2033_v8 = vpop.f32.mrf.mxu0 }
 0x63e   :  { %3666 = vmatmul.msk.f32.gmra.mxu2 %vm799_vm2, %v2131_v9 }
 0x63f   :  { %v2344_v6 = vpop.f32.mrf.mxu3 }
 0x640   :  { %3699 = vmatmul.msk.f32.gmra.mxu0 %vm799_vm2, %v2344_v6 }
 0x641   :  { %v1820_v5 = vpop.f32.mrf.mxu2 }
 0x642   :  { %v1864_v45 = vadd.f32 %v1820_v5, %v5247_v34 }
 0x644   :  { %v5529_v10 = vadd.f32 %v2033_v8, %v1864_v45 }
 0x645   :  { %v2134_v25 = vpop.f32.mrf.mxu1  ;;  %v2036_v61 = vpop.f32.mrf.mxu0 }
 0x646   :  { %3667 = vmatmul.msk.f32.gmra.mxu2 %vm799_vm2, %v2134_v25 }
 0x647   :  { %v2347_v48 = vpop.f32.mrf.mxu3 }
 0x648   :  { %3700 = vmatmul.msk.f32.gmra.mxu0 %vm799_vm2, %v2347_v48 }
 0x649   :  { %v1823_v49 = vpop.f32.mrf.mxu2 }
 0x64a   :  { %v1865_v33 = vadd.f32 %v1823_v49, %v5256_v27 }
 0x64c   :  { %v5534_v13 = vadd.f32 %v2036_v61, %v1865_v33 }
 0x64d   :  { %v2137_v38 = vpop.f32.mrf.mxu1  ;;  %v2039_v57 = vpop.f32.mrf.mxu0 }
 0x64e   :  { %3668 = vmatmul.msk.f32.gmra.mxu2 %vm799_vm2, %v2137_v38 }
 0x64f   :  { %v2350_v39 = vpop.f32.mrf.mxu3 }
 0x650   :  { %3701 = vmatmul.msk.f32.gmra.mxu0 %vm799_vm2, %v2350_v39 }
 0x651   :  { %v1826_v34 = vpop.f32.mrf.mxu2 }
 0x652   :  { %v1866_v43 = vadd.f32 %v1826_v34, %v5265_v11 }
 0x654   :  { %v5539_v35 = vadd.f32 %v2039_v57, %v1866_v43 }
 0x655   :  { %v2140_v46 = vpop.f32.mrf.mxu1  ;;  %v2042_v14 = vpop.f32.mrf.mxu0 }
 0x656   :  { %3669 = vmatmul.msk.f32.gmra.mxu2 %vm799_vm2, %v2140_v46 }
 0x657   :  { %v2353_v1 = vpop.f32.mrf.mxu3 }
 0x658   :  { %3702 = vmatmul.msk.f32.gmra.mxu0 %vm799_vm2, %v2353_v1 }
 0x659   :  { %v1829_v27 = vpop.f32.mrf.mxu2 }
 0x65a   :  { %v1867_v28 = vadd.f32 %v1829_v27, %v5274_v40 }
 0x65c   :  { %v5544_v58 = vadd.f32 %v2042_v14, %v1867_v28 }
 0x65d   :  { %v2143_v55 = vpop.f32.mrf.mxu1  ;;  %v2045_v42 = vpop.f32.mrf.mxu0 }
 0x65e   :  { %3670 = vmatmul.msk.f32.gmra.mxu2 %vm799_vm2, %v2143_v55 }
 0x65f   :  { %v2356_v41 = vpop.f32.mrf.mxu3 }
 0x660   :  { %3703 = vmatmul.msk.f32.gmra.mxu0 %vm799_vm2, %v2356_v41 }
 0x661   :  { %v1832_v11 = vpop.f32.mrf.mxu2 }
 0x662   :  { %v1868_v22 = vadd.f32 %v1832_v11, %v5283_v62 }
 0x664   :  { %v5549_v7 = vadd.f32 %v2045_v42, %v1868_v22 }
 0x665   :  { %v2146_v30 = vpop.f32.mrf.mxu1  ;;  %v2048_v36 = vpop.f32.mrf.mxu0 }
 0x666   :  { %3671 = vmatmul.msk.f32.gmra.mxu2 %vm799_vm2, %v2146_v30 }
 0x667   :  { %v2359_v3 = vpop.f32.mrf.mxu3 }
 0x668   :  { %3704 = vmatmul.msk.f32.gmra.mxu0 %vm799_vm2, %v2359_v3 }
 0x669   :  { %v1835_v40 = vpop.f32.mrf.mxu2 }
 0x66a   :  { %v1869_v53 = vadd.f32 %v1835_v40, %v5294_v20 }
 0x66c   :  { %v5554_v52 = vadd.f32 %v2048_v36, %v1869_v53 }
 0x66d   :  { %v2149_v12 = vpop.f32.mrf.mxu1  ;;  %v5556_v18 = vpop.f32.mrf.mxu0 }
 0x66e   :  { %3672 = vmatmul.msk.f32.gmra.mxu2 %vm799_vm2, %v2149_v12 }
 0x66f   :  { %v2362_v62 = vpop.f32.mrf.mxu3 }
 0x670   :  { %3705 = vmatmul.msk.f32.gmra.mxu0 %vm799_vm2, %v2362_v62 }
 0x671   :  { %v5560_v23 = vpop.f32.mrf.mxu2 }
 0x675   :  { %v2152_v24 = vpop.f32.mrf.mxu1  ;;  %v2054_v31 = vpop.f32.mrf.mxu0 }
 0x676   :  { %3673 = vmatmul.msk.f32.gmra.mxu2 %vm799_vm2, %v2152_v24 }
 0x677   :  { %v2365_v44 = vpop.f32.mrf.mxu3 }
 0x678   :  { %3706 = vmatmul.msk.f32.gmra.mxu0 %vm799_vm2, %v2365_v44 }
 0x679   :  { %v1841_v20 = vpop.f32.mrf.mxu2 }
 0x67a   :  { %v1871_v59 = vadd.f32 %v1841_v20, %v5316_v21  ;;  %v2572_v21 = vld [vmem:[%s6101_s6 + $0x8] sm:$0xff] }
 0x67b   :  { %2617 = vmatpush.msrb.mxu2 %v2572_v21 }
 0x67c   :  { %v5565_v29 = vadd.f32 %v2054_v31, %v1871_v59 }
 0x67d   :  { %v2155_v63 = vpop.f32.mrf.mxu1  ;;  %v2057_v50 = vpop.f32.mrf.mxu0 }
 0x67e   :  { %3674 = vmatmul.msk.f32.gmra.mxu2 %vm799_vm2, %v2155_v63 }
 0x67f   :  { %v2368_v51 = vpop.f32.mrf.mxu3 }
 0x680   :  { %3707 = vmatmul.msk.f32.gmra.mxu0 %vm799_vm2, %v2368_v51 }
 0x681   :  { %v1844_v47 = vpop.f32.mrf.mxu2 }
 0x682   :  { %v1872_v37 = vadd.f32 %v1844_v47, %v5327_v56  ;;  %v3714_v56 = vld [vmem:[%s6101_s6 + $0x18] sm:$0xff] }
 0x683   :  { %2594 = vmatpush.msrb.mxu1 %v3714_v56 }
 0x684   :  { %v5570_v32 = vadd.f32 %v2057_v50, %v1872_v37  ;;  %v2571_v50 = vld [vmem:[%s6101_s6] sm:$0xff] }
 0x685   :  { %v2158_v15 = vpop.f32.mrf.mxu1  ;;  %v2060_v17 = vpop.f32.mrf.mxu0  ;;  %2618 = vmatpush.msrb.mxu2 %v2571_v50  ;;  %v3720_v50 = vld [vmem:[%s6101_s6 + $0x30] sm:$0xff] }
 0x686   :  { %3675 = vmatmul.msk.f32.gmra.mxu2 %vm799_vm2, %v2158_v15 }
 0x687   :  { %v2371_v9 = vpop.f32.mrf.mxu3 }
 0x688   :  { %3708 = vmatmul.msk.f32.gmra.mxu0 %vm799_vm2, %v2371_v9 }
 0x689   :  { %v1847_v8 = vpop.f32.mrf.mxu2 }
 0x68a   :  { %v1873_v6 = vadd.f32 %v1847_v8, %v5338_v54 }
 0x68c   :  { %v5581_v5 = vadd.f32 %v2060_v17, %v1873_v6 }
 0x68d   :  { %v2161_v45 = vpop.f32.mrf.mxu1  ;;  %v2063_v25 = vpop.f32.mrf.mxu0 }
 0x68e   :  { %3676 = vmatmul.msk.f32.gmra.mxu2 %vm799_vm2, %v2161_v45 }
 0x68f   :  { %v2374_v61 = vpop.f32.mrf.mxu3 }
 0x690   :  { %3709 = vmatmul.msk.f32.gmra.mxu0 %vm799_vm2, %v2374_v61 }
 0x691   :  { %v1850_v48 = vpop.f32.mrf.mxu2 }
 0x692   :  { %v1874_v49 = vadd.f32 %v1850_v48, %v5352_v26 }
 0x694   :  { %v5586_v33 = vadd.f32 %v2063_v25, %v1874_v49 }
 0x695   :  { %v2164_v54 = vpop.f32.mrf.mxu1  ;;  %v2066_v38 = vpop.f32.mrf.mxu0 }
 0x696   :  { %3677 = vmatmul.msk.f32.gmra.mxu2 %vm799_vm2, %v2164_v54 }
 0x697   :  { %v2377_v57 = vpop.f32.mrf.mxu3 }
 0x698   :  { %3710 = vmatmul.msk.f32.gmra.mxu0 %vm799_vm2, %v2377_v57 }
 0x699   :  { %v1853_v39 = vpop.f32.mrf.mxu2 }
 0x69a   :  { %v1875_v34 = vadd.f32 %v1853_v39, %v5366_v4 }
 0x69c   :  { %v5591_v43 = vadd.f32 %v2066_v38, %v1875_v34 }
 0x69d   :  { %v2167_v46 = vpop.f32.mrf.mxu1  ;;  %v2069_v14 = vpop.f32.mrf.mxu0 }
 0x69e   :  { %3678 = vmatmul.msk.f32.gmra.mxu2 %vm799_vm2, %v2167_v46 }
 0x69f   :  { %v2380_v1 = vpop.f32.mrf.mxu3 }
 0x6a0   :  { %3711 = vmatmul.msk.f32.gmra.mxu0 %vm799_vm2, %v2380_v1 }
 0x6a1   :  { %v1856_v26 = vpop.f32.mrf.mxu2 }
 0x6a2   :  { %v1876_v27 = vadd.f32 %v1856_v26, %v5377_v19 }
 0x6a4   :  { %v5596_v28 = vadd.f32 %v2069_v14, %v1876_v27 }
 0x6a5   :  { %v2170_v55 = vpop.f32.mrf.mxu1  ;;  %v2072_v42 = vpop.f32.mrf.mxu0 }
 0x6a6   :  { %3679 = vmatmul.msk.f32.gmra.mxu2 %vm799_vm2, %v2170_v55 }
 0x6a7   :  { %v2383_v41 = vpop.f32.mrf.mxu3 }
 0x6a8   :  { %3712 = vmatmul.msk.f32.gmra.mxu0 %vm799_vm2, %v2383_v41 }
 0x6a9   :  { %v1859_v4 = vpop.f32.mrf.mxu2 }
 0x6aa   :  { %v1877_v11 = vadd.f32 %v1859_v4, %v5386_v16 }
 0x6ac   :  { %v5601_v22 = vadd.f32 %v2072_v42, %v1877_v11 }
 0x6ad   :  { %v2453_v30 = vpop.f32.mrf.mxu0 }
 0x6b1   :  { %v2240_v36 = vpop.f32.mrf.mxu2 }
 0x6b2   :  { %v2288_v3 = vadd.f32 %v2240_v36, %v5519_v60  ;;  %v3713_v60 = vld [vmem:[%s6101_s6 + $0x10] sm:$0xff] }
 0x6b3   :  { %2595 = vmatpush.msrb.mxu1 %v3713_v60 }
 0x6b4   :  { %v2501_v40 = vadd.f32 %v2453_v30, %v2288_v3 }
 0x6b5   :  { %v2456_v19 = vpop.f32.mrf.mxu0 }
 0x6b9   :  { %v2243_v53 = vpop.f32.mrf.mxu2 }
 0x6ba   :  { %v2289_v12 = vadd.f32 %v2243_v53, %v5524_v0 }
 0x6bc   :  { %v2502_v62 = vadd.f32 %v2456_v19, %v2289_v12 }
 0x6bd   :  { %v2459_v24 = vpop.f32.mrf.mxu0 }
 0x6c1   :  { %v2246_v31 = vpop.f32.mrf.mxu2 }
 0x6c2   :  { %v2290_v44 = vadd.f32 %v2246_v31, %v5529_v10  ;;  %v5616_v10 = vld [vmem:[%s6100_s5] ss:$0 sm:$0xff]  ;;  %v1870_v31 = vadd.f32 %v5560_v23, %v5305_v2 }
 0x6c3   :  { %v2521_v37 = vadd.f32 %v5616_v10, %v2501_v40  ;;  %v2522_v25 = vadd.f32 %v5616_v10, %v2502_v62  ;;  %v3717_v2 = vld [vmem:[%s6101_s6 + $0x20] sm:$0xff] }
 0x6c4   :  { %v2503_v20 = vadd.f32 %v2459_v24, %v2290_v44  ;;  %v2083_v44 = vadd.f32 %v5556_v18, %v1870_v31 }
 0x6c5   :  { %v2462_v59 = vpop.f32.mrf.mxu0  ;;  %v2537_v9 = vmax.f32 %v2521_v37, 0.0 }
 0x6c6   :  { %v2523_v34 = vadd.f32 %v5616_v10, %v2503_v20  ;;  %v3721_v20 = vld [vmem:[%s6101_s6 + $0x38] sm:$0xff] }
 0x6c7   :  { %2672 = vmatpush.msra.mxu2 %v3721_v20 }
 0x6c9   :  { %v2249_v63 = vpop.f32.mrf.mxu2  ;;  %2673 = vmatpush.msra.mxu2 %v3720_v50 }
 0x6ca   :  { %v2291_v16 = vadd.f32 %v2249_v63, %v5534_v13 }
 0x6cc   :  { %v2504_v0 = vadd.f32 %v2462_v59, %v2291_v16  ;;  %v3718_v59 = vld [vmem:[%s6101_s6 + $0x28] sm:$0xff] }
 0x6cd   :  { %v2465_v51 = vpop.f32.mrf.mxu0  ;;  %2644 = vmatpush.msra.mxu1 %v3718_v59  ;;  %v3739_v59 = vld [vmem:[%s6101_s6 + $0x98] sm:$0xff] }
 0x6ce   :  { %v2524_v41 = vadd.f32 %v5616_v10, %v2504_v0 }
 0x6cf   :  { %2645 = vmatpush.msra.mxu1 %v3717_v2  ;;  %v3735_v2 = vld [vmem:[%s6101_s6 + $0x80] sm:$0xff] }
 0x6d1   :  { %v2252_v47 = vpop.f32.mrf.mxu2 }
 0x6d2   :  { %v2292_v13 = vadd.f32 %v2252_v47, %v5539_v35  ;;  %v2538_v35 = vmax.f32 %v2522_v25, 0.0 }
 0x6d4   :  { %v2505_v15 = vadd.f32 %v2465_v51, %v2292_v13 }
 0x6d5   :  { %v2468_v17 = vpop.f32.mrf.mxu0 }
 0x6d6   :  { %v2525_v21 = vadd.f32 %v5616_v10, %v2505_v15 }
 0x6d8   :  { %v2541_v8 = vmax.f32 %v2525_v21, 0.0 }
 0x6d9   :  { %v2255_v6 = vpop.f32.mrf.mxu2 }
 0x6da   :  { %v5621_v56 = vmax.f32 %v2537_v9, %v2541_v8  ;;  %v2293_v45 = vadd.f32 %v2255_v6, %v5544_v58  ;;  %v2539_v58 = vmax.f32 %v2523_v34, 0.0 }
 0x6dc   :  { %v2506_v61 = vadd.f32 %v2468_v17, %v2293_v45 }
 0x6dd   :  { %v2471_v48 = vpop.f32.mrf.mxu0 }
 0x6de   :  { %v2526_v49 = vadd.f32 %v5616_v10, %v2506_v61 }
 0x6e0   :  { %v2542_v54 = vmax.f32 %v2526_v49, 0.0 }
 0x6e1   :  { %v2258_v38 = vpop.f32.mrf.mxu2 }
 0x6e2   :  { %v5626_v57 = vmax.f32 %v2538_v35, %v2542_v54  ;;  %v2294_v39 = vadd.f32 %v2258_v38, %v5549_v7  ;;  %v2540_v7 = vmax.f32 %v2524_v41, 0.0 }
 0x6e4   :  { %v2507_v46 = vadd.f32 %v2471_v48, %v2294_v39 }
 0x6e5   :  { %v2474_v14 = vpop.f32.mrf.mxu0 }
 0x6e6   :  { %v2527_v1 = vadd.f32 %v5616_v10, %v2507_v46 }
 0x6e8   :  { %v2543_v26 = vmax.f32 %v2527_v1, 0.0  ;;  %v3724_v1 = vld [vmem:[%s6101_s6 + $0x48] sm:$0xff] }
 0x6e9   :  { %v2261_v27 = vpop.f32.mrf.mxu2 }
 0x6ea   :  { %v5631_v55 = vmax.f32 %v2539_v58, %v2543_v26  ;;  %v2295_v42 = vadd.f32 %v2261_v27, %v5554_v52 }
 0x6ec   :  { %v2508_v4 = vadd.f32 %v2474_v14, %v2295_v42  ;;  %v3727_v14 = vld [vmem:[%s6101_s6 + $0x58] sm:$0xff] }
 0x6ed   :  { %v2477_v11 = vpop.f32.mrf.mxu0 }
 0x6ee   :  { %v2528_v30 = vadd.f32 %v5616_v10, %v2508_v4 }
 0x6f0   :  { %v2544_v36 = vmax.f32 %v2528_v30, 0.0 }
 0x6f1   :  { %v2264_v3 = vpop.f32.mrf.mxu2 }
 0x6f2   :  { %v5636_v40 = vmax.f32 %v2540_v7, %v2544_v36  ;;  %v2296_v63 = vadd.f32 %v2264_v3, %v2083_v44 }
 0x6f4   :  { %v2509_v18 = vadd.f32 %v2477_v11, %v2296_v63  ;;  %v3736_v63 = vld [vmem:[%s6101_s6 + $0x88] sm:$0xff] }
 0x6f5   :  { %v2480_v19 = vpop.f32.mrf.mxu0 }
 0x6f6   :  { %v2529_v0 = vadd.f32 %v5616_v10, %v2509_v18  ;;  %v3745_v18 = vld [vmem:[%s6101_s6 + $0xb8] sm:$0xff] }
 0x6f8   :  { %v2545_v15 = vmax.f32 %v2529_v0, 0.0 }
 0x6f9   :  { %v2267_v53 = vpop.f32.mrf.mxu2 }
 0x6fa   :  { %v2297_v51 = vadd.f32 %v2267_v53, %v5565_v29  ;;  %v3733_v53 = vld [vmem:[%s6101_s6 + $0x78] sm:$0xff] }
 0x6fc   :  { %v2510_v17 = vadd.f32 %v2480_v19, %v2297_v51  ;;  %v3744_v51 = vld [vmem:[%s6101_s6 + $0xb0] sm:$0xff] }
 0x6fd   :  { %v2483_v12 = vpop.f32.mrf.mxu0 }
 0x6fe   :  { %v2530_v45 = vadd.f32 %v5616_v10, %v2510_v17 }
 0x700   :  { %v2546_v49 = vmax.f32 %v2530_v45, 0.0  ;;  %v3751_v45 = vld [vmem:[%s6101_s6 + $0xd8] sm:$0xff] }
 0x701   :  { %v2270_v62 = vpop.f32.mrf.mxu2 }
 0x705   :  { %v2486_v24 = vpop.f32.mrf.mxu0 }
 0x709   :  { %v2273_v52 = vpop.f32.mrf.mxu2 }
 0x70a   :  { %v2299_v46 = vadd.f32 %v2273_v52, %v5581_v5  ;;  %v3726_v5 = vld [vmem:[%s6101_s6 + $0x50] sm:$0xff] }
 0x70c   :  { %v2512_v42 = vadd.f32 %v2486_v24, %v2299_v46  ;;  %v3754_v46 = vld [vmem:[%s6101_s6 + $0xe8] sm:$0xff] }
 0x70d   :  { %v2489_v16 = vpop.f32.mrf.mxu0 }
 0x70e   :  { %v2532_v36 = vadd.f32 %v5616_v10, %v2512_v42 }
 0x710   :  { %v2548_v52 = vmax.f32 %v2532_v36, 0.0 }
 0x711   :  { %v2276_v23 = vpop.f32.mrf.mxu2 }
 0x712   :  { %v2300_v60 = vadd.f32 %v2276_v23, %v5586_v33  ;;  %v2298_v33 = vadd.f32 %v2270_v62, %v5570_v32  ;;  %v3742_v23 = vld [vmem:[%s6101_s6 + $0xa8] sm:$0xff] }
 0x714   :  { %v2513_v47 = vadd.f32 %v2489_v16, %v2300_v60  ;;  %v2511_v35 = vadd.f32 %v2483_v12, %v2298_v33  ;;  %v3730_v12 = vld [vmem:[%s6101_s6 + $0x68] sm:$0xff] }
 0x715   :  { %v2492_v13 = vpop.f32.mrf.mxu0  ;;  %v3748_v33 = vld [vmem:[%s6101_s6 + $0xc8] sm:$0xff] }
 0x716   :  { %v2533_v37 = vadd.f32 %v5616_v10, %v2513_v47  ;;  %v2531_v34 = vadd.f32 %v5616_v10, %v2511_v35  ;;  %v3741_v47 = vld [vmem:[%s6101_s6 + $0xa0] sm:$0xff]  ;;  %v3750_v35 = vld [vmem:[%s6101_s6 + $0xd0] sm:$0xff] }
 0x718   :  { %v2549_v21 = vmax.f32 %v2533_v37, 0.0  ;;  %v2547_v27 = vmax.f32 %v2531_v34, 0.0  ;;  %v5740_v37 = vld [vmem:[%s6105_s10 + $0x28] sm:$0xff]  ;;  %v3757_v34 = vld [vmem:[%s6101_s6 + $0xf8] sm:$0xff] }
 0x719   :  { %v2279_v9 = vpop.f32.mrf.mxu2  ;;  %v3237_v17 = vsel %vm799_vm2, %v5740_v37, -inf }
 0x71a   :  { %v2557_v8 = vmax.f32 %v2545_v15, %v2549_v21  ;;  %v2301_v6 = vadd.f32 %v2279_v9, %v5591_v43  ;;  %v5749_v21 = vld [vmem:[%s6105_s10 + $0x18] sm:$0xff]  ;;  %3238 = vmax.xlane.f32.xlu1 %v3237_v17 }
 0x71b   :  { %v3231_v9 = vsel %vm799_vm2, %v5749_v21, -inf }
 0x71c   :  { %v2561_v25 = vmax.f32 %v5621_v56, %v2557_v8  ;;  %v2514_v61 = vadd.f32 %v2492_v13, %v2301_v6  ;;  %v5735_v13 = vld [vmem:[%s6105_s10 + $0x38] sm:$0xff]  ;;  %v5756_v8 = vld [vmem:[%s6105_s10 + $0x30] sm:$0xff]  ;;  %v5761_v6 = vld [vmem:[%s6105_s10 + $0x20] sm:$0xff]  ;;  %3232 = vmax.xlane.f32.xlu2 %v3231_v9 }
 0x71d   :  { %v2495_v48 = vpop.f32.mrf.mxu0  ;;  %v3243_v15 = vsel %vm799_vm2, %v5735_v13, -inf }
 0x71e   :  { %2566 = vst.msk [vmem:[#allocation2] sm:$0xff] %vm2565_vm3, %v2561_v25  ;;  %v2534_v29 = vadd.f32 %v5616_v10, %v2514_v61  ;;  %3244 = vmax.xlane.f32.xlu0 %v3243_v15  ;;  %v5772_v25 = vld [vmem:[%s6105_s10 + $0x10] sm:$0xff] }
 0x71f   :  { %v3806_v15 = vld [vmem:[%s6104_s9 + $0x1f0] sm:$0xff] }
 0x720   :  { %v2550_v54 = vmax.f32 %v2534_v29, 0.0 }
 0x721   :  { %v2282_v38 = vpop.f32.mrf.mxu2 }
 0x722   :  { %v2558_v39 = vmax.f32 %v2546_v49, %v2550_v54  ;;  %v2302_v43 = vadd.f32 %v2282_v38, %v5596_v28  ;;  %v3234_v49 = vsel %vm799_vm2, %v5761_v6, -inf  ;;  %v3747_v54 = vld [vmem:[%s6101_s6 + $0xc0] sm:$0xff]  ;;  %v3228_v38 = vsel %vm799_vm2, %v5772_v25, -inf }
 0x723   :  { %3235 = vmax.xlane.f32.xlu1 %v3234_v49 }
 0x724   :  { %v2562_v32 = vmax.f32 %v5626_v57, %v2558_v39  ;;  %v2515_v56 = vadd.f32 %v2495_v48, %v2302_v43  ;;  %v3723_v57 = vld [vmem:[%s6101_s6 + $0x40] sm:$0xff]  ;;  %v3240_v48 = vsel %vm799_vm2, %v5756_v8, -inf  ;;  %3229 = vmax.xlane.f32.xlu2 %v3228_v38  ;;  %v5791_v39 = vld [vmem:[%s6105_s10 + $0x8] sm:$0xff] }
 0x725   :  { %v2573_v58 = vld [vmem:[#allocation2 + $0x2] sm:$0x3]  ;;  %v2570_v26 = vld [vmem:[#allocation2] sm:$0x3]  ;;  %v2498_v11 = vpop.f32.mrf.mxu0  ;;  %v2623_v62 = vld [vmem:[#allocation2 + $0x4] sm:$0x3] }
 0x726   :  { %2567 = vst.msk [vmem:[#allocation2 + $0x8] sm:$0xff] %vm2565_vm3, %v2562_v32  ;;  %v2535_v28 = vadd.f32 %v5616_v10, %v2515_v56  ;;  %3715 = vmatmul.msk.f32.vlgmr.msrb.gmra.mxu1 %vm2565_vm3, %v2573_v58  ;;  %3716 = vmatmul.msk.f32.vlgmr.msrb.gmra.mxu2 %vm2565_vm3, %v2570_v26  ;;  %v2651_v24 = vld [vmem:[#allocation2 + $0x6] sm:$0x3]  ;;  %v3756_v58 = vld [vmem:[%s6101_s6 + $0xf0] sm:$0xff] }
 0x727   :  { %2728 = vmatpush.msrb.mxu2 %v3727_v14  ;;  %2700 = vmatpush.msrb.mxu1 %v3724_v1  ;;  %v5796_v43 = vld [vmem:[%s6105_s10] sm:$0xff]  ;;  %v3225_v14 = vsel %vm799_vm2, %v5791_v39, -inf }
 0x728   :  { %v2551_v41 = vmax.f32 %v2535_v28, 0.0  ;;  %3241 = vmax.xlane.f32.xlu0 %v3240_v48  ;;  %v3222_v1 = vsel %vm799_vm2, %v5796_v43, -inf  ;;  %v3753_v26 = vld [vmem:[%s6101_s6 + $0xe0] sm:$0xff] }
 0x729   :  { %v2285_v4 = vpop.f32.mrf.mxu2  ;;  %2729 = vmatpush.msrb.mxu2 %v3726_v5  ;;  %2701 = vmatpush.msrb.mxu1 %v3723_v57 }
 0x72a   :  { %v2559_v30 = vmax.f32 %v2547_v27, %v2551_v41  ;;  %v2303_v7 = vadd.f32 %v2285_v4, %v5601_v22  ;;  %v3732_v22 = vld [vmem:[%s6101_s6 + $0x70] sm:$0xff] }
 0x72b   :  { %3223 = vmax.xlane.f32.xlu1 %v3222_v1  ;;  %v3802_v1 = vld [vmem:[%s6104_s9 + $0x1d0] sm:$0xff] }
 0x72c   :  { %v2563_v3 = vmax.f32 %v5631_v55, %v2559_v30  ;;  %v2516_v19 = vadd.f32 %v2498_v11, %v2303_v7  ;;  %v3729_v55 = vld [vmem:[%s6101_s6 + $0x60] sm:$0xff]  ;;  %v3027_v7 = vld [vmem:[%s6103_s8 + $0x38] sm:$0xff] }
 0x72d   :  { %v2679_v16 = vld [vmem:[#allocation2 + $0x8] sm:$0x3]  ;;  %v2707_v50 = vld [vmem:[#allocation2 + $0xa] sm:$0x3]  ;;  %v2735_v60 = vld [vmem:[#allocation2 + $0xc] sm:$0x3] }
 0x72e   :  { %2568 = vst.msk [vmem:[#allocation2 + $0x10] sm:$0xff] %vm2565_vm3, %v2563_v3  ;;  %v2536_v31 = vadd.f32 %v5616_v10, %v2516_v19  ;;  %3719 = vmatmul.msk.f32.vlgmr.msra.gmra.mxu1 %vm2565_vm3, %v2623_v62  ;;  %3722 = vmatmul.msk.f32.vlgmr.msra.gmra.mxu2 %vm2565_vm3, %v2651_v24  ;;  %v2763_v0 = vld [vmem:[#allocation2 + $0xe] sm:$0x3]  ;;  %v3026_v19 = vld [vmem:[%s6103_s8 + $0x30] sm:$0xff]  ;;  %v3024_v24 = vld [vmem:[%s6103_s8 + $0x20] sm:$0xff] }
 0x72f   :  { %2784 = vmatpush.msra.mxu2 %v3733_v53  ;;  %2756 = vmatpush.msra.mxu1 %v3730_v12  ;;  %v3025_v12 = vld [vmem:[%s6103_s8 + $0x28] sm:$0xff] }
 0x730   :  { %v2552_v44 = vmax.f32 %v2536_v31, 0.0  ;;  %3226 = vmax.xlane.f32.xlu0 %v3225_v14  ;;  %v3023_v31 = vld [vmem:[%s6103_s8 + $0x18] sm:$0xff] }
 0x731   :  { %2785 = vmatpush.msra.mxu2 %v3732_v22  ;;  %2757 = vmatpush.msra.mxu1 %v3729_v55 }
 0x732   :  { %v2560_v20 = vmax.f32 %v2548_v52, %v2552_v44  ;;  %v3022_v52 = vld [vmem:[%s6103_s8 + $0x10] sm:$0xff] }
 0x734   :  { %v2564_v10 = vmax.f32 %v5636_v40, %v2560_v20  ;;  %v3738_v40 = vld [vmem:[%s6101_s6 + $0x90] sm:$0xff] }
 0x735   :  { %v2791_v61 = vld [vmem:[#allocation2 + $0x10] sm:$0x3]  ;;  %v2819_v29 = vld [vmem:[#allocation2 + $0x12] sm:$0x3]  ;;  %v2847_v32 = vld [vmem:[#allocation2 + $0x14] sm:$0x3] }
 0x736   :  { %2569 = vst.msk [vmem:[#allocation2 + $0x18] sm:$0xff] %vm2565_vm3, %v2564_v10  ;;  %3725 = vmatmul.msk.f32.vlgmr.msrb.gmra.mxu1 %vm2565_vm3, %v2679_v16  ;;  %3728 = vmatmul.msk.f32.vlgmr.msrb.gmra.mxu2 %vm2565_vm3, %v2707_v50  ;;  %v2875_v56 = vld [vmem:[#allocation2 + $0x16] sm:$0x3]  ;;  %v3020_v50 = vld [vmem:[%s6103_s8] sm:$0xff] }
 0x737   :  { %2840 = vmatpush.msrb.mxu2 %v3739_v59  ;;  %2812 = vmatpush.msrb.mxu1 %v3736_v63  ;;  %v3021_v59 = vld [vmem:[%s6103_s8 + $0x8] sm:$0xff] }
 0x739   :  { %2841 = vmatpush.msrb.mxu2 %v3738_v40  ;;  %2813 = vmatpush.msrb.mxu1 %v3735_v2 }
 0x73d   :  { %v2903_v28 = vld [vmem:[#allocation2 + $0x18] sm:$0x3]  ;;  %v2931_v5 = vld [vmem:[#allocation2 + $0x1a] sm:$0x3]  ;;  %v2959_v57 = vld [vmem:[#allocation2 + $0x1c] sm:$0x3] }
 0x73e   :  { %3731 = vmatmul.msk.f32.vlgmr.msra.gmra.mxu1 %vm2565_vm3, %v2735_v60  ;;  %3734 = vmatmul.msk.f32.vlgmr.msra.gmra.mxu2 %vm2565_vm3, %v2763_v0  ;;  %v2987_v27 = vld [vmem:[#allocation2 + $0x1e] sm:$0x3]  ;;  %v3774_v60 = vld [vmem:[%s6104_s9 + $0xf0] sm:$0xff] }
 0x73f   :  { %2896 = vmatpush.msra.mxu2 %v3745_v18  ;;  %2868 = vmatpush.msra.mxu1 %v3742_v23  ;;  %v3775_v23 = vld [vmem:[%s6104_s9 + $0xf8] sm:$0xff] }
 0x740   :  { %v3807_v0 = vld [vmem:[%s6104_s9 + $0x1f8] sm:$0xff]  ;;  %3115 = vmatpush.msra.mxu3 %v3775_v23 }
 0x741   :  { %2897 = vmatpush.msra.mxu2 %v3744_v51  ;;  %2869 = vmatpush.msra.mxu1 %v3741_v47 }
 0x742   :  { %3191 = vmatpush.msrb.mxu0 %v3807_v0  ;;  %3116 = vmatpush.msra.mxu3 %v3774_v60  ;;  %v3765_v60 = vld [vmem:[%s6104_s9 + $0xa8] sm:$0xff] }
 0x744   :  { %3192 = vmatpush.msrb.mxu0 %v3806_v15 }
 0x746   :  { %3737 = vmatmul.msk.f32.vlgmr.msrb.gmra.mxu1 %vm2565_vm3, %v2791_v61  ;;  %3740 = vmatmul.msk.f32.vlgmr.msrb.gmra.mxu2 %vm2565_vm3, %v2819_v29  ;;  %v3772_v61 = vld [vmem:[%s6104_s9 + $0xe0] sm:$0xff] }
 0x747   :  { %2952 = vmatpush.msrb.mxu2 %v3751_v45  ;;  %2924 = vmatpush.msrb.mxu1 %v3748_v33  ;;  %v3804_v29 = vld [vmem:[%s6104_s9 + $0x1e0] sm:$0xff] }
 0x749   :  { %2953 = vmatpush.msrb.mxu2 %v3750_v35  ;;  %2925 = vmatpush.msrb.mxu1 %v3747_v54  ;;  %v3771_v35 = vld [vmem:[%s6104_s9 + $0xd8] sm:$0xff] }
 0x74a   :  { %v3803_v54 = vld [vmem:[%s6104_s9 + $0x1d8] sm:$0xff] }
 0x74e   :  { %3743 = vmatmul.msk.f32.vlgmr.msra.gmra.mxu1 %vm2565_vm3, %v2847_v32  ;;  %3746 = vmatmul.msk.f32.vlgmr.msra.gmra.mxu2 %vm2565_vm3, %v2875_v56 }
 0x74f   :  { %3008 = vmatpush.msra.mxu2 %v3757_v34  ;;  %2980 = vmatpush.msra.mxu1 %v3754_v46 }
 0x751   :  { %3009 = vmatpush.msra.mxu2 %v3756_v58  ;;  %2981 = vmatpush.msra.mxu1 %v3753_v26  ;;  %v3077_v58 = vld [vmem:[%s6104_s9 + $0x78] sm:$0xff] }
 0x756   :  { %3749 = vmatmul.msk.f32.vlgmr.msrb.gmra.mxu1 %vm2565_vm3, %v2903_v28  ;;  %3752 = vmatmul.msk.f32.vlgmr.msrb.gmra.mxu2 %vm2565_vm3, %v2931_v5 }
 0x757   :  { %3040 = vmatpush.msrb.mxu1 %v3027_v7  ;;  %3078 = vmatpush.msrb.mxu2 %v3077_v58  ;;  %v3791_v7 = vld [vmem:[%s6104_s9 + $0x178] sm:$0xff] }
 0x759   :  { %3041 = vmatpush.msrb.mxu1 %v3026_v19  ;;  %v3790_v19 = vld [vmem:[%s6104_s9 + $0x170] sm:$0xff] }
 0x75b   :  { %3042 = vmatpush.msrb.mxu1 %v3025_v12 }
 0x75d   :  { %3043 = vmatpush.msrb.mxu1 %v3024_v24  ;;  %v3074_v24 = vld [vmem:[%s6104_s9 + $0x60] sm:$0xff] }
 0x75e   :  { %3755 = vmatmul.msk.f32.vlgmr.msra.gmra.mxu1 %vm2565_vm3, %v2959_v57  ;;  %3758 = vmatmul.msk.f32.vlgmr.msra.gmra.mxu2 %vm2565_vm3, %v2987_v27  ;;  %v3076_v57 = vld [vmem:[%s6104_s9 + $0x70] sm:$0xff] }
 0x75f   :  { %3044 = vmatpush.msrb.mxu1 %v3023_v31  ;;  %3079 = vmatpush.msrb.mxu2 %v3076_v57  ;;  %v3067_v57 = vld [vmem:[%s6104_s9 + $0x28] sm:$0xff] }
 0x761   :  { %3045 = vmatpush.msrb.mxu1 %v3022_v52  ;;  %v3789_v52 = vld [vmem:[%s6104_s9 + $0x168] sm:$0xff] }
 0x763   :  { %3046 = vmatpush.msrb.mxu1 %v3021_v59 }
 0x765   :  { %3047 = vmatpush.msrb.mxu1 %v3020_v50 }
 0x767   :  { %3153 = vmatpush.msra.mxu1 %v3791_v7  ;;  %v3064_v7 = vld [vmem:[%s6104_s9 + $0x10] sm:$0xff] }
 0x769   :  { %3154 = vmatpush.msra.mxu1 %v3790_v19  ;;  %v3063_v19 = vld [vmem:[%s6104_s9 + $0x8] sm:$0xff] }
 0x76b   :  { %3155 = vmatpush.msra.mxu1 %v3789_v52  ;;  %v3761_v52 = vld [vmem:[%s6104_s9 + $0x88] sm:$0xff] }
 0x78d   :  { %v3239_v2 = vpop.xlane.xlu1 %3238 }
 0x78e   :  { %v3251_v51 = vsub.f32 %v5740_v37, %v3239_v2  ;;  %v3805_v37 = vld [vmem:[%s6104_s9 + $0x1e8] sm:$0xff]  ;;  %v3798_v2 = vld [vmem:[%s6104_s9 + $0x1b0] sm:$0xff] }
 0x78f   :  { %v3233_v18 = vpop.xlane.xlu2 %3232  ;;  %3193 = vmatpush.msrb.mxu0 %v3805_v37 }
 0x790   :  { %v3264_v9 = vmul.f32 1.442695, %v3251_v51  ;;  %v3249_v45 = vsub.f32 %v5749_v21, %v3233_v18  ;;  %v3788_v18 = vld [vmem:[%s6104_s9 + $0x160] sm:$0xff] }
 0x791   :  { %v3245_v10 = vpop.xlane.xlu0 %3244  ;;  %3194 = vmatpush.msrb.mxu0 %v3804_v29  ;;  %3156 = vmatpush.msra.mxu1 %v3788_v18  ;;  %v3763_v29 = vld [vmem:[%s6104_s9 + $0x98] sm:$0xff]  ;;  %v3778_v18 = vld [vmem:[%s6104_s9 + $0x110] sm:$0xff] }
 0x792   :  { %v3253_v16 = vsub.f32 %v5735_v13, %v3245_v10  ;;  %v3773_v13 = vld [vmem:[%s6104_s9 + $0xe8] sm:$0xff]  ;;  %v3260_v38 = vmul.f32 1.442695, %v3249_v45  ;;  %v3072_v45 = vld [vmem:[%s6104_s9 + $0x50] sm:$0xff] }
 0x793   :  { %3117 = vmatpush.msra.mxu3 %v3773_v13  ;;  %3195 = vmatpush.msrb.mxu0 %v3803_v54  ;;  %v3070_v54 = vld [vmem:[%s6104_s9 + $0x40] sm:$0xff] }
 0x794   :  { %v3268_v40 = vmul.f32 1.442695, %v3253_v16  ;;  %v3073_v16 = vld [vmem:[%s6104_s9 + $0x58] sm:$0xff] }
 0x795   :  { %3118 = vmatpush.msra.mxu3 %v3772_v61  ;;  %3196 = vmatpush.msrb.mxu0 %v3802_v1 }
 0x796   :  { %3814 = vpow2.f32 %v3268_v40  ;;  %v3236_v56 = vpop.xlane.xlu1 %3235 }
 0x797   :  { %3816 = vpow2.f32 %v3264_v9  ;;  %v3230_v14 = vpop.xlane.xlu2 %3229  ;;  %v3250_v26 = vsub.f32 %v5761_v6, %v3236_v56  ;;  %3119 = vmatpush.msra.mxu3 %v3771_v35  ;;  %v3801_v6 = vld [vmem:[%s6104_s9 + $0x1c8] sm:$0xff]  ;;  %v3764_v9 = vld [vmem:[%s6104_s9 + $0xa0] sm:$0xff]  ;;  %v3069_v56 = vld [vmem:[%s6104_s9 + $0x38] sm:$0xff] }
 0x798   :  { %v3248_v5 = vsub.f32 %v5772_v25, %v3230_v14  ;;  %3197 = vmatpush.msrb.mxu0 %v3801_v6  ;;  %v3066_v6 = vld [vmem:[%s6104_s9 + $0x20] sm:$0xff] }
 0x79b   :  { %v3242_v49 = vpop.xlane.xlu0 %3241 }
 0x79c   :  { %v3252_v21 = vsub.f32 %v5756_v8, %v3242_v49  ;;  %v5878_v34 = vpop.eup %3814  ;;  %v3770_v8 = vld [vmem:[%s6104_s9 + $0xd0] sm:$0xff] }
 0x79d   :  { %v3291_v28 = vsel %vm799_vm2, %v5878_v34, 0.0  ;;  %3120 = vmatpush.msra.mxu3 %v3770_v8 }
 0x79e   :  { %v3266_v32 = vmul.f32 1.442695, %v3252_v21  ;;  %3292 = vadd.xlane.f32.xlu2 %v3291_v28  ;;  %v3224_v59 = vpop.xlane.xlu1 %3223  ;;  %v3068_v28 = vld [vmem:[%s6104_s9 + $0x30] sm:$0xff] }
 0x79f   :  { %v3246_v40 = vsub.f32 %v5796_v43, %v3224_v59 }
 0x7a0   :  { %3818 = vpow2.f32 %v3266_v32 }
 0x7a1   :  { %3820 = vpow2.f32 %v3260_v38  ;;  %v3254_v51 = vmul.f32 1.442695, %v3246_v40  ;;  %v3793_v40 = vld [vmem:[%s6104_s9 + $0x188] sm:$0xff] }
 0x7a3   :  { %v2597_v42 = vpop.f32.mrf.mxu1  ;;  %v3227_v12 = vpop.xlane.xlu0 %3226 }
 0x7a9   :  { %v2620_v41 = vpop.f32.mrf.mxu2 }
 0x7aa   :  { %v2621_v36 = vadd.f32 %v2620_v41, %v2597_v42  ;;  %v3769_v42 = vld [vmem:[%s6104_s9 + $0xc8] sm:$0xff]  ;;  %v5902_v41 = vpop.eup %3816 }
 0x7ab   :  { %v2647_v4 = vpop.f32.mrf.mxu1  ;;  %3121 = vmatpush.msra.mxu3 %v3769_v42 }
 0x7ac   :  { %v2650_v62 = vadd.f32 %v2647_v4, %v2621_v36  ;;  %v3262_v4 = vmul.f32 1.442695, %v3250_v26  ;;  %v3285_v36 = vsel %vm799_vm2, %v5902_v41, 0.0 }
 0x7ad   :  { %3286 = vadd.xlane.f32.xlu1 %v3285_v36  ;;  %v3783_v36 = vld [vmem:[%s6104_s9 + $0x138] sm:$0xff] }
 0x7ae   :  { %3822 = vpow2.f32 %v3262_v4  ;;  %v3065_v4 = vld [vmem:[%s6104_s9 + $0x18] sm:$0xff] }
 0x7b1   :  { %v2675_v11 = vpop.f32.mrf.mxu2 }
 0x7b2   :  { %v2678_v22 = vadd.f32 %v2675_v11, %v2650_v62  ;;  %v3258_v11 = vmul.f32 1.442695, %v3248_v5  ;;  %v3800_v62 = vld [vmem:[%s6104_s9 + $0x1c0] sm:$0xff]  ;;  %v3787_v5 = vld [vmem:[%s6104_s9 + $0x158] sm:$0xff] }
 0x7b3   :  { %v2703_v30 = vpop.f32.mrf.mxu1  ;;  %3198 = vmatpush.msrb.mxu0 %v3800_v62  ;;  %3157 = vmatpush.msra.mxu1 %v3787_v5  ;;  %v3062_v62 = vld [vmem:[%s6104_s9] sm:$0xff] }
 0x7b4   :  { %v2706_v44 = vadd.f32 %v2703_v30, %v2678_v22  ;;  %v3075_v30 = vld [vmem:[%s6104_s9 + $0x68] sm:$0xff]  ;;  %3824 = vpow2.f32 %v3258_v11  ;;  %v3247_v22 = vsub.f32 %v5791_v39, %v3227_v12  ;;  %v3784_v11 = vld [vmem:[%s6104_s9 + $0x140] sm:$0xff]  ;;  %v3782_v12 = vld [vmem:[%s6104_s9 + $0x130] sm:$0xff] }
 0x7b5   :  { %3080 = vmatpush.msrb.mxu2 %v3075_v30 }
 0x7b6   :  { %v3256_v39 = vmul.f32 1.442695, %v3247_v22  ;;  %v3762_v22 = vld [vmem:[%s6104_s9 + $0x90] sm:$0xff] }
 0x7b7   :  { %3081 = vmatpush.msrb.mxu2 %v3074_v24 }
 0x7b8   :  { %3826 = vpow2.f32 %v3256_v39  ;;  %v3780_v39 = vld [vmem:[%s6104_s9 + $0x120] sm:$0xff] }
 0x7b9   :  { %v2731_v3 = vpop.f32.mrf.mxu2  ;;  %3082 = vmatpush.msrb.mxu2 %v3073_v16  ;;  %3828 = vpow2.f32 %v3254_v51  ;;  %v3779_v16 = vld [vmem:[%s6104_s9 + $0x118] sm:$0xff]  ;;  %v3777_v51 = vld [vmem:[%s6104_s9 + $0x108] sm:$0xff] }
 0x7ba   :  { %v2734_v63 = vadd.f32 %v2731_v3, %v2706_v44  ;;  %v3768_v3 = vld [vmem:[%s6104_s9 + $0xc0] sm:$0xff]  ;;  %v3799_v44 = vld [vmem:[%s6104_s9 + $0x1b8] sm:$0xff] }
 0x7bb   :  { %v2759_v53 = vpop.f32.mrf.mxu1  ;;  %3122 = vmatpush.msra.mxu3 %v3768_v3  ;;  %3199 = vmatpush.msrb.mxu0 %v3799_v44 }
 0x7bc   :  { %v2762_v47 = vadd.f32 %v2759_v53, %v2734_v63  ;;  %v3766_v63 = vld [vmem:[%s6104_s9 + $0xb0] sm:$0xff]  ;;  %3083 = vmatpush.msrb.mxu2 %v3072_v45 }
 0x7bd   :  { %3200 = vmatpush.msrb.mxu0 %v3798_v2 }
 0x7c1   :  { %v2787_v55 = vpop.f32.mrf.mxu2 }
 0x7c2   :  { %v2790_v33 = vadd.f32 %v2787_v55, %v2762_v47  ;;  %v3767_v55 = vld [vmem:[%s6104_s9 + $0xb8] sm:$0xff]  ;;  %v3797_v47 = vld [vmem:[%s6104_s9 + $0x1a8] sm:$0xff] }
 0x7c3   :  { %v2815_v20 = vpop.f32.mrf.mxu1  ;;  %3123 = vmatpush.msra.mxu3 %v3767_v55  ;;  %3201 = vmatpush.msrb.mxu0 %v3797_v47  ;;  %v3795_v55 = vld [vmem:[%s6104_s9 + $0x198] sm:$0xff] }
 0x7c4   :  { %v2818_v46 = vadd.f32 %v2815_v20, %v2790_v33  ;;  %v5934_v20 = vpop.eup %3818  ;;  %v3796_v33 = vld [vmem:[%s6104_s9 + $0x1a0] sm:$0xff] }
 0x7c5   :  { %v3288_v50 = vsel %vm799_vm2, %v5934_v20, 0.0  ;;  %v5951_v23 = vpop.eup %3820  ;;  %3124 = vmatpush.msra.mxu3 %v3766_v63  ;;  %3202 = vmatpush.msrb.mxu0 %v3796_v33  ;;  %v3760_v63 = vld [vmem:[%s6104_s9 + $0x80] sm:$0xff] }
 0x7c6   :  { %3289 = vadd.xlane.f32.xlu0 %v3288_v50  ;;  %v5956_v43 = vpop.eup %3822  ;;  %v3279_v21 = vsel %vm799_vm2, %v5951_v23, 0.0 }
 0x7c7   :  { %v5961_v13 = vpop.eup %3824  ;;  %3125 = vmatpush.msra.mxu3 %v3765_v60  ;;  %3203 = vmatpush.msrb.mxu0 %v3795_v55 }
 0x7c8   :  { %v3276_v37 = vsel %vm799_vm2, %v5961_v13, 0.0  ;;  %v5984_v35 = vpop.eup %3826 }
 0x7c9   :  { %v2843_v17 = vpop.f32.mrf.mxu2  ;;  %3277 = vadd.xlane.f32.xlu1 %v3276_v37  ;;  %3126 = vmatpush.msra.mxu3 %v3764_v9  ;;  %v3273_v32 = vsel %vm799_vm2, %v5984_v35, 0.0  ;;  %v5997_v8 = vpop.eup %3828 }
 0x7ca   :  { %v2846_v27 = vadd.f32 %v2843_v17, %v2818_v46  ;;  %v3282_v17 = vsel %vm799_vm2, %v5956_v43, 0.0  ;;  %v3813_v46 = vld [vmem:[%s6102_s7] ss:$0 sm:$0xff]  ;;  %v3270_v26 = vsel %vm799_vm2, %v5997_v8, 0.0  ;;  %s3903_s7 = smov [#allocation3]  }
 0x7cb   :  { %v2871_v48 = vpop.f32.mrf.mxu1  ;;  %3283 = vadd.xlane.f32.xlu2 %v3282_v17  ;;  %3127 = vmatpush.msra.mxu3 %v3763_v29  ;;  %s3341_s14 = sshll.u32 %s3903_s7, 4  ;;  %s3342_s14 = int_to_ptr.vmem [resolvable:$true] %s3341_s14 }
 0x7cc   :  { %v2874_v31 = vadd.f32 %v2871_v48, %v2846_v27  ;;  %v3071_v48 = vld [vmem:[%s6104_s9 + $0x48] sm:$0xff]  ;;  %v3786_v27 = vld [vmem:[%s6104_s9 + $0x150] sm:$0xff] }
 0x7cd   :  { %3084 = vmatpush.msrb.mxu2 %v3071_v48  ;;  %3158 = vmatpush.msra.mxu1 %v3786_v27 }
 0x7ce   :  { %3280 = vadd.xlane.f32.xlu0 %v3279_v21  ;;  %3128 = vmatpush.msra.mxu3 %v3762_v22 }
 0x7cf   :  { %3085 = vmatpush.msrb.mxu2 %v3070_v54 }
 0x7d0   :  { %3129 = vmatpush.msra.mxu3 %v3761_v52 }
 0x7d1   :  { %v2899_v25 = vpop.f32.mrf.mxu2  ;;  %3086 = vmatpush.msrb.mxu2 %v3069_v56 }
 0x7d2   :  { %v2902_v10 = vadd.f32 %v2899_v25, %v2874_v31  ;;  %v3785_v25 = vld [vmem:[%s6104_s9 + $0x148] sm:$0xff]  ;;  %3130 = vmatpush.msra.mxu3 %v3760_v63 }
 0x7d3   :  { %v2927_v53 = vpop.f32.mrf.mxu1  ;;  %3274 = vadd.xlane.f32.xlu2 %v3273_v32  ;;  %3087 = vmatpush.msrb.mxu2 %v3068_v28  ;;  %v3781_v31 = vld [vmem:[%s6104_s9 + $0x128] sm:$0xff]  ;;  %v3057_v32 = vlaneseq }
 0x7d4   :  { %v2930_v15 = vadd.f32 %v2927_v53, %v2902_v10  ;;  %3159 = vmatpush.msra.mxu1 %v3785_v25  ;;  %v3794_v10 = vld [vmem:[%s6104_s9 + $0x190] sm:$0xff] }
 0x7d5   :  { %3088 = vmatpush.msrb.mxu2 %v3067_v57  ;;  %3204 = vmatpush.msrb.mxu0 %v3794_v10  ;;  %v3058_v56 = vand.u32 127, %v3057_v32 }
 0x7d6   :  { %3271 = vadd.xlane.f32.xlu0 %v3270_v26  ;;  %3160 = vmatpush.msra.mxu1 %v3784_v11 }
 0x7d7   :  { %3089 = vmatpush.msrb.mxu2 %v3066_v6  ;;  %3205 = vmatpush.msrb.mxu0 %v3793_v40  ;;  %vm3059_vm5 = vcmp.lt.s32.totalorder %v3058_v56, 64 }
 0x7d8   :  { %3161 = vmatpush.msra.mxu1 %v3783_v36 }
 0x7d9   :  { %v2955_v0 = vpop.f32.mrf.mxu2  ;;  %3090 = vmatpush.msrb.mxu2 %v3065_v4 }
 0x7da   :  { %v2958_v61 = vadd.f32 %v2955_v0, %v2930_v15  ;;  %3162 = vmatpush.msra.mxu1 %v3782_v12  ;;  %v3776_v15 = vld [vmem:[%s6104_s9 + $0x100] sm:$0xff] }
 0x7db   :  { %v2983_v49 = vpop.f32.mrf.mxu1  ;;  %3091 = vmatpush.msrb.mxu2 %v3064_v7 }
 0x7dc   :  { %v2986_v38 = vadd.f32 %v2983_v49, %v2958_v61  ;;  %3163 = vmatpush.msra.mxu1 %v3781_v31 }
 0x7dd   :  { %3092 = vmatpush.msrb.mxu2 %v3063_v19 }
 0x7de   :  { %3164 = vmatpush.msra.mxu1 %v3780_v39 }
 0x7df   :  { %3093 = vmatpush.msrb.mxu2 %v3062_v62 }
 0x7e0   :  { %3165 = vmatpush.msra.mxu1 %v3779_v16 }
 0x7e1   :  { %v3011_v14 = vpop.f32.mrf.mxu2 }
 0x7e2   :  { %v3014_v1 = vadd.f32 %v3011_v14, %v2986_v38  ;;  %3166 = vmatpush.msra.mxu1 %v3778_v18 }
 0x7e4   :  { %v3019_v58 = vadd.f32 %v3813_v46, %v3014_v1  ;;  %3167 = vmatpush.msra.mxu1 %v3777_v51 }
 0x7e6   :  { %3759 = vmatmul.msk.f32.vlgmr.msrb.gmra.mxu1 %vm3028_vm4, %v3019_v58 }
 0x7e7   :  { %3168 = vmatpush.msra.mxu1 %v3776_v15 }
 0x811   :  { %v3293_v42 = vpop.xlane.xlu2 %3292 }
 0x812   :  { %3830 = vrcp.f32 %v3293_v42 }
 0x818   :  { %v3831_v53 = vpop.eup %3830 }
 0x819   :  { %v3309_v24 = vmul.f32 %v3831_v53, %v5878_v34 }
 0x81b   :  { %3321 = vmatpush.msra.mxu2 %v3309_v24 }
 0x820   :  { %v3287_v3 = vpop.xlane.xlu1 %3286 }
 0x839   :  { %v3290_v30 = vpop.xlane.xlu0 %3289 }
 0x83a   :  { %3832 = vrcp.f32 %v3290_v30 }
 0x83b   :  { %3834 = vrcp.f32 %v3287_v3 }
 0x83c   :  { %v3278_v0 = vpop.xlane.xlu1 %3277 }
 0x83e   :  { %v3284_v44 = vpop.xlane.xlu2 %3283 }
 0x83f   :  { %3836 = vrcp.f32 %v3284_v44 }
 0x840   :  { %v3833_v34 = vpop.eup %3832 }
 0x841   :  { %v3281_v59 = vpop.xlane.xlu0 %3280  ;;  %v3308_v50 = vmul.f32 %v3833_v34, %v5934_v20  ;;  %v3835_v2 = vpop.eup %3834  ;;  %v3792_v20 = vld [vmem:[%s6104_s9 + $0x180] sm:$0xff]  ;;  %s3902_s9 = smov [#allocation5]  }
 0x842   :  { %3838 = vrcp.f32 %v3281_v59  ;;  %v3307_v60 = vmul.f32 %v3835_v2, %v5902_v41  ;;  %3206 = vmatpush.msrb.mxu0 %v3792_v20  ;;  %s3352_s28 = sshll.u32 %s3902_s9, 4  ;;  %s3353_s28 = int_to_ptr.vmem [resolvable:$true] %s3352_s28 }
 0x843   :  { %3322 = vmatpush.msra.mxu2 %v3308_v50  ;;  %3840 = vrcp.f32 %v3278_v0 }
 0x845   :  { %3323 = vmatpush.msra.mxu2 %v3307_v60  ;;  %v3837_v47 = vpop.eup %3836 }
 0x846   :  { %v3306_v41 = vmul.f32 %v3837_v47, %v5956_v43  ;;  %v3275_v37 = vpop.xlane.xlu2 %3274 }
 0x847   :  { %3842 = vrcp.f32 %v3275_v37 }
 0x848   :  { %v3839_v17 = vpop.eup %3838  ;;  %3324 = vmatpush.msra.mxu2 %v3306_v41 }
 0x849   :  { %v3305_v9 = vmul.f32 %v3839_v17, %v5951_v23  ;;  %v3841_v45 = vpop.eup %3840  ;;  %v3272_v33 = vpop.xlane.xlu0 %3271 }
 0x84a   :  { %v3304_v61 = vmul.f32 %v3841_v45, %v5961_v13  ;;  %3844 = vrcp.f32 %v3272_v33 }
 0x84b   :  { %3325 = vmatpush.msra.mxu2 %v3305_v9 }
 0x84d   :  { %3326 = vmatpush.msra.mxu2 %v3304_v61  ;;  %v3843_v29 = vpop.eup %3842 }
 0x84e   :  { %v3303_v43 = vmul.f32 %v3843_v29, %v5984_v35 }
 0x850   :  { %v3845_v49 = vpop.eup %3844  ;;  %3327 = vmatpush.msra.mxu2 %v3303_v43 }
 0x851   :  { %v3302_v54 = vmul.f32 %v3845_v49, %v5997_v8 }
 0x853   :  { %3328 = vmatpush.msra.mxu2 %v3302_v54 }
 0x863   :  { %v3049_v48 = vpop.f32.mrf.mxu1 }
 0x864   :  { %v3052_v21 = vsub.f32 0.0, %v3049_v48 }
 0x866   :  { %v3053_v38 = vmul.f32 1.442695, %v3052_v21 }
 0x868   :  { %3846 = vpow2.f32 %v3053_v38 }
 0x86e   :  { %v3847_v23 = vpop.eup %3846 }
 0x86f   :  { %v3055_v46 = vadd.f32 1.0, %v3847_v23 }
 0x871   :  { %3848 = vrcp.f32 %v3055_v46 }
 0x877   :  { %v3849_v13 = vpop.eup %3848 }
 0x878   :  { %v3060_v14 = vsub.f32 1.0, %v3849_v13 }
 0x87a   :  { %v3061_v1 = vsel %vm3059_vm5, %v3849_v13, %v3060_v14 }
 0x87b   :  { %3094 = vmatmul.f32.vlgmr.msrb.gmra.mxu2 %v3061_v1  ;;  %3131 = vmatmul.f32.vlgmr.msra.gmra.mxu3 %v3061_v1 }
 0x87c   :  { %3169 = vmatmul.f32.vlgmr.msra.gmra.mxu1 %v3061_v1  ;;  %3207 = vmatmul.f32.vlgmr.msrb.gmra.mxu0 %v3061_v1 }
 0x8f9   :  { %v3170_v26 = vpop.f32.mrf.mxu1  ;;  %v3208_v5 = vpop.f32.mrf.mxu0 }
 0x8fe   :  { %v3095_v35 = vpop.f32.mrf.mxu2  ;;  %v3132_v58 = vpop.f32.mrf.mxu3 }
 0x8ff   :  { %v3135_v8 = vmul.f32 %v3132_v58, %v3095_v35 }
 0x901   :  { %v3173_v28 = vmul.f32 %v3170_v26, %v3135_v8 }
 0x903   :  { %v3211_v57 = vmul.f32 %v3208_v5, %v3173_v28 }
 0x905   :  { %3808 = vmatmul.msk.f32.vlgmr.msra.gmra.mxu2 %vm3028_vm4, %v3211_v57  ;;  %3213 = vst.msk [vmem:[#allocation5] sm:$0x3] %vm3212_vm6, %v3211_v57 }
 0x906   :  { %3357 = dma.vmem_to_hbm [thread:$0]  %s3353_s28, 32, %s3355_s13, [#allocation6]  }
 0x988   :  { %v3330_v27 = vpop.f32.mrf.mxu2 }
 0x989   :  { %v3333_v42 = vmul.f32 0.25, %v3330_v27 }
 0x98b   :  { %3335 = vst.msk [vmem:[#allocation3] sm:$0x3] %vm3334_vm7, %v3333_v42 }
 0x98c   :  { %3346 = dma.vmem_to_hbm [thread:$0]  %s3342_s14, 32, %s3344_s3, [#allocation4]  }
 0x98d   :  { %3898 = dma.done.wait [#allocation4], 32  }
 0x98e   :  { %3899 = vsyncadd [#allocation4], 4294967264 }
 0x98f   :  { %3900 = dma.done.wait [#allocation6], 32  }
 0x990   :  { %3901 = vsyncadd [#allocation6], 4294967264 }
 0x991   :  { %3366 = vsyncpa [#allocation4], 1 }
 0x992   :  { %3367 = vsyncpa [#allocation6], 1 }

</bundles_post_ra>
